<compile_context>
chip_gen: v6e
topology: v6e:2x2x1
jax: 0.10.0
libtpu: 0.0.40
codegen_flags: <defaults>
</compile_context>

<pallas_src>
import math

import jax
import jax.numpy as jnp
from jax import lax
from jax.experimental import pallas as pl

# ---- model dimensions (synthetic, deterministic) ----
D_MODEL = 32
N_HEADS = 4
HEAD_DIM = D_MODEL // N_HEADS
D_FF = 64
VOCAB = 64
LANE = 128
VOCAB_PAD = LANE          # lane-dense LM-head / output width
MAX_POS = 64
NEG_INF = -1e9

# ---- packed-parameter slab indices --------------------------------------------------
# wd slab: (12, D_MODEL, 128) bf16 — every D_MODEL-row weight matrix zero-padded to
# 128 lanes; FFN second matrices stored TRANSPOSED so they share the same shape and the
# second FFN matmul contracts on the last dim of both operands (trans_b form).
W_ENC_QKV, W_ENC_O, W_ENC_W1, W_ENC_W2T = 0, 1, 2, 3
(W_DEC_QKV, W_DEC_O, W_DEC_CQ, W_DEC_CKV,
 W_DEC_CO, W_DEC_W1, W_DEC_W2T, W_LM) = 4, 5, 6, 7, 8, 9, 10, 11
# bv slab: (22, 128) f32 — every bias / layernorm vector zero-padded to 128 lanes.
B_ENC_QKV, B_ENC_O, B_ENC_LN1G, B_ENC_LN1B = 0, 1, 2, 3
B_ENC_B1, B_ENC_B2, B_ENC_LN2G, B_ENC_LN2B = 4, 5, 6, 7
B_DEC_QKV, B_DEC_O, B_DEC_LN1G, B_DEC_LN1B = 8, 9, 10, 11
B_DEC_CQ, B_DEC_CKV, B_DEC_CO, B_DEC_LN2G, B_DEC_LN2B = 12, 13, 14, 15, 16
B_DEC_B1, B_DEC_B2, B_DEC_LN3G, B_DEC_LN3B = 17, 18, 19, 20
B_LM = 21


# --------------------------------------------------------------------------------------
# In-kernel building blocks (values already resident in vregs / VMEM)
# --------------------------------------------------------------------------------------
def _layer_norm(x, gamma, beta, eps=1e-5):
    # x: (N, D) f32; gamma/beta: (1, D) f32 — elementwise math kept in f32 (v5e).
    mu = jnp.mean(x, axis=-1, keepdims=True)
    var = jnp.mean((x - mu) ** 2, axis=-1, keepdims=True)
    return (x - mu) * lax.rsqrt(var + eps) * gamma + beta


def _ffn(x, w1_bf, w2t_bf, b1_row, b2_row):
    """x: (N, D) f32. w1_bf: (D, 128) bf16 (cols >= D_FF are zero).
    w2t_bf: (D, 128) bf16 = W2^T zero-padded.  b1_row/b2_row: (1, 128) f32."""
    h = jnp.dot(x.astype(jnp.bfloat16), w1_bf,
                preferred_element_type=jnp.float32) + b1_row            # (N, 128)
    h = jnp.maximum(h, 0.0)
    # contract on the last dim of BOTH operands (trans_b form — no transpose in-kernel)
    f = lax.dot_general(h.astype(jnp.bfloat16), w2t_bf,
                        (((1,), (1,)), ((), ())),
                        preferred_element_type=jnp.float32)             # (N, D)
    return f + b2_row[:, :D_MODEL]


def _attn_core(q_src, q_off, kv_src, k_off, v_off, B, Tq, Tk, bias3, wo_bf, bo_row):
    """Multi-head attention core, batched over B, static loop over heads.

    q_src: (B*Tq, 128) bf16 projection output; head h queries at cols q_off+h*HEAD_DIM.
    kv_src: (B*Tk, 128) bf16; keys at k_off+..., values at v_off+... .
    bias3: (B, Tq, Tk) f32 additive mask (built once by the caller).
    wo_bf: (D, 128) bf16 output-proj weight (cols >= D zero); bo_row: (1, 128) f32.
    Returns (B*Tq, D) f32.
    """
    scale = 1.0 / math.sqrt(HEAD_DIM)
    out = None
    for h in range(N_HEADS):                      # static 4-iteration loop
        hs, he = h * HEAD_DIM, (h + 1) * HEAD_DIM
        qh = q_src[:, q_off + hs:q_off + he].reshape(B, Tq, HEAD_DIM)
        kh = kv_src[:, k_off + hs:k_off + he].reshape(B, Tk, HEAD_DIM)
        vh = kv_src[:, v_off + hs:v_off + he].reshape(B, Tk, HEAD_DIM)
        # batched scores, contraction on the last dim of both operands (no K transpose)
        s = jnp.einsum('bqd,bkd->bqk', qh, kh,
                       preferred_element_type=jnp.float32) * scale + bias3
        s = s - jnp.max(s, axis=-1, keepdims=True)          # softmax kept in f32
        p = jnp.exp(s)
        p = p * pl.reciprocal(jnp.sum(p, axis=-1, keepdims=True), approx=True)
        ctx = jnp.einsum('bqk,bkd->bqd', p.astype(jnp.bfloat16), vh,
                         preferred_element_type=jnp.float32)            # (B, Tq, hd)
        # accumulate the output projection per head — no concat over heads
        contrib = jnp.dot(ctx.reshape(B * Tq, HEAD_DIM).astype(jnp.bfloat16),
                          wo_bf[hs:he, :], preferred_element_type=jnp.float32)
        out = contrib if out is None else out + contrib                 # (B*Tq, 128)
    return (out + bo_row)[:, :D_MODEL]


def _self_attention(x2, B, T, wd_ref, w_qkv, w_o, bv_ref, b_qkv, b_o, bias3):
    # ONE fused QKV projection for the whole flattened batch.
    qkv = jnp.dot(x2.astype(jnp.bfloat16), wd_ref[w_qkv],
                  preferred_element_type=jnp.float32) + bv_ref[b_qkv:b_qkv + 1, :]
    qkv_bf = qkv.astype(jnp.bfloat16)                                   # (B*T, 128)
    return _attn_core(qkv_bf, 0, qkv_bf, D_MODEL, 2 * D_MODEL, B, T, T,
                      bias3, wd_ref[w_o], bv_ref[b_o:b_o + 1, :])


def _cross_attention(xq2, xkv2, B, Tq, Tk, wd_ref, w_q, w_kv, w_o,
                     bv_ref, b_q, b_kv, b_o, bias3):
    q = jnp.dot(xq2.astype(jnp.bfloat16), wd_ref[w_q],
                preferred_element_type=jnp.float32) + bv_ref[b_q:b_q + 1, :]
    kv = jnp.dot(xkv2.astype(jnp.bfloat16), wd_ref[w_kv],
                 preferred_element_type=jnp.float32) + bv_ref[b_kv:b_kv + 1, :]
    return _attn_core(q.astype(jnp.bfloat16), 0, kv.astype(jnp.bfloat16), 0, D_MODEL,
                      B, Tq, Tk, bias3, wd_ref[w_o], bv_ref[b_o:b_o + 1, :])


# --------------------------------------------------------------------------------------
# Fused kernel: encoder layer + decoder layer + LM head, whole batch, no grid
# --------------------------------------------------------------------------------------
def fused_autoencoder_kernel(x_ref, y_ref, mask_ref, wd_ref, bv_ref, out_ref):
    B, S, D = x_ref.shape
    _, T, _ = y_ref.shape

    # row-flattened f32 activations (major-dim merge only — free reshape)
    x2 = x_ref[...].reshape(B * S, D).astype(jnp.float32)
    y2 = y_ref[...].reshape(B * T, D).astype(jnp.float32)

    # additive attention biases, each built ONCE (0 = attend, -1e9 = masked)
    key_bias = (1.0 - mask_ref[...].astype(jnp.float32)) * NEG_INF       # (B, S)
    enc_bias3 = jnp.broadcast_to(key_bias[:, None, :], (B, S, S))
    cross_bias3 = jnp.broadcast_to(key_bias[:, None, :], (B, T, S))
    qi = lax.broadcasted_iota(jnp.int32, (T, T), 0)
    ki = lax.broadcasted_iota(jnp.int32, (T, T), 1)
    causal = jnp.where(ki <= qi, 0.0, NEG_INF).astype(jnp.float32)       # (T, T)
    dec_bias3 = jnp.broadcast_to(causal[None], (B, T, T))

    def brow(i):                       # (1, 128) f32 bias / LN row from the packed slab
        return bv_ref[i:i + 1, :]

    def ln(x, gi, bi):
        return _layer_norm(x, brow(gi)[:, :D_MODEL], brow(bi)[:, :D_MODEL])

    # ---------------- encoder layer (post-norm) ----------------
    attn = _self_attention(x2, B, S, wd_ref, W_ENC_QKV, W_ENC_O,
                           bv_ref, B_ENC_QKV, B_ENC_O, enc_bias3)
    h = ln(x2 + attn, B_ENC_LN1G, B_ENC_LN1B)
    f = _ffn(h, wd_ref[W_ENC_W1], wd_ref[W_ENC_W2T], brow(B_ENC_B1), brow(B_ENC_B2))
    enc_h = ln(h + f, B_ENC_LN2G, B_ENC_LN2B)                            # (B*S, D)

    # ---------------- decoder layer ----------------
    sa = _self_attention(y2, B, T, wd_ref, W_DEC_QKV, W_DEC_O,
                         bv_ref, B_DEC_QKV, B_DEC_O, dec_bias3)
    g = ln(y2 + sa, B_DEC_LN1G, B_DEC_LN1B)
    ca = _cross_attention(g, enc_h, B, T, S, wd_ref, W_DEC_CQ, W_DEC_CKV, W_DEC_CO,
                          bv_ref, B_DEC_CQ, B_DEC_CKV, B_DEC_CO, cross_bias3)
    g = ln(g + ca, B_DEC_LN2G, B_DEC_LN2B)
    f = _ffn(g, wd_ref[W_DEC_W1], wd_ref[W_DEC_W2T], brow(B_DEC_B1), brow(B_DEC_B2))
    dec_h = ln(g + f, B_DEC_LN3G, B_DEC_LN3B)                            # (B*T, D)

    # ---------------- LM head: single lane-dense (128-wide) HBM store ----------------
    logits = jnp.dot(dec_h.astype(jnp.bfloat16), wd_ref[W_LM],
                     preferred_element_type=jnp.float32) + brow(B_LM)
    out_ref[...] = logits.reshape(B, T, VOCAB_PAD).astype(out_ref.dtype)


def autoencoder_pallas(x_emb, y_emb, mask, wd, bv):
    B, S, D = x_emb.shape
    _, T, _ = y_emb.shape
    # No grid: one kernel invocation, whole arrays as single VMEM blocks, 5 input DMAs.
    return pl.pallas_call(
        fused_autoencoder_kernel,
        out_shape=jax.ShapeDtypeStruct((B, T, VOCAB_PAD), jnp.float32),
    )(x_emb, y_emb, mask, wd, bv)


# --------------------------------------------------------------------------------------
# Parameters (packed once at init) + full forward (embedding gather / slice in plain JAX)
# --------------------------------------------------------------------------------------
def init_params(key):
    ks = iter(jax.random.split(key, 16))

    def n(shape, s=0.02):
        return jax.random.normal(next(ks), shape, jnp.float32) * s

    # raw weights (same shapes / init as the reference module)
    enc_qkv = n((D_MODEL, 3 * D_MODEL)); enc_o = n((D_MODEL, D_MODEL))
    enc_w1 = n((D_MODEL, D_FF));         enc_w2 = n((D_FF, D_MODEL))
    dec_qkv = n((D_MODEL, 3 * D_MODEL)); dec_o = n((D_MODEL, D_MODEL))
    dec_cq = n((D_MODEL, D_MODEL));      dec_ckv = n((D_MODEL, 2 * D_MODEL))
    dec_co = n((D_MODEL, D_MODEL))
    dec_w1 = n((D_MODEL, D_FF));         dec_w2 = n((D_FF, D_MODEL))
    lm_w = n((D_MODEL, VOCAB))
    tok_emb = n((VOCAB, D_MODEL));       pos_emb = n((MAX_POS, D_MODEL))

    def padw(w):                                   # (D_MODEL, c) -> (D_MODEL, 128)
        return jnp.pad(w, ((0, 0), (0, LANE - w.shape[1])))

    # ONE bf16 weight slab — padding/packing done here, never inside the jitted forward.
    wd = jnp.stack([
        padw(enc_qkv), padw(enc_o), padw(enc_w1), padw(enc_w2.T),
        padw(dec_qkv), padw(dec_o), padw(dec_cq), padw(dec_ckv), padw(dec_co),
        padw(dec_w1), padw(dec_w2.T), padw(lm_w),
    ]).astype(jnp.bfloat16)                                              # (12, 32, 128)

    def padv(v):                                   # (c,) -> (128,)
        return jnp.pad(v, (0, LANE - v.shape[0]))

    ones_d = jnp.ones((D_MODEL,), jnp.float32)
    zeros_d = jnp.zeros((D_MODEL,), jnp.float32)
    z3d = jnp.zeros((3 * D_MODEL,), jnp.float32)
    z2d = jnp.zeros((2 * D_MODEL,), jnp.float32)
    zff = jnp.zeros((D_FF,), jnp.float32)

    bv = jnp.stack([
        padv(z3d), padv(zeros_d), padv(ones_d), padv(zeros_d),   # enc: qkv_b, o_b, ln1 g/b
        padv(zff), padv(zeros_d), padv(ones_d), padv(zeros_d),   # enc: ffn b1/b2, ln2 g/b
        padv(z3d), padv(zeros_d), padv(ones_d), padv(zeros_d),   # dec: self qkv_b, o_b, ln1 g/b
        padv(zeros_d), padv(z2d), padv(zeros_d),                 # dec: cross q_b, kv_b, o_b
        padv(ones_d), padv(zeros_d),                             # dec: ln2 g/b
        padv(zff), padv(zeros_d), padv(ones_d), padv(zeros_d),   # dec: ffn b1/b2, ln3 g/b
        jnp.zeros((LANE,), jnp.float32),                         # lm_b (pre-padded to 128)
    ]).astype(jnp.float32)                                               # (22, 128)

    return dict(tok_emb=tok_emb, pos_emb=pos_emb, wd=wd, bv=bv)


@jax.jit
def autoencoder_forward(params, input_ids, decoder_input_ids, attention_mask):
    """AutoEncoder.forward: encoder(input_ids, mask).last_hidden_state -> decoder logits."""
    B, S = input_ids.shape
    _, T = decoder_input_ids.shape
    # embedding gather + positional add in plain JAX (outside the kernel)
    x = params["tok_emb"][input_ids] + params["pos_emb"][:S][None]
    y = params["tok_emb"][decoder_input_ids] + params["pos_emb"][:T][None]
    mask = attention_mask.astype(jnp.float32)                            # (B, S)
    logits_pad = autoencoder_pallas(x, y, mask, params["wd"], params["bv"])
    return logits_pad[..., :VOCAB]   # padded vocab cols 64..127 are exactly 0; slice off

# TODO(synk): `generate` (autoregressive decode loop with KV growth) is host-side
# control flow around the same decoder kernel and is not implemented here.


if __name__ == "__main__":
    key = jax.random.PRNGKey(0)
    k_ids, k_dec, k_par = jax.random.split(key, 3)
    B, S_ENC, S_DEC = 2, 8, 8
    input_ids = jax.random.randint(k_ids, (B, S_ENC), 0, VOCAB, dtype=jnp.int32)
    decoder_input_ids = jax.random.randint(k_dec, (B, S_DEC), 0, VOCAB, dtype=jnp.int32)
    attention_mask = jnp.ones((B, S_ENC), jnp.float32).at[1, 6:].set(0.0)  # pad tail of batch 1
    params = init_params(k_par)

    logits = autoencoder_forward(params, input_ids, decoder_input_ids, attention_mask)
    jax.block_until_ready(logits)
    assert logits.shape == (B, S_DEC, VOCAB) and jnp.all(jnp.isfinite(logits))
    print("KERNEL_OK")
</pallas_src>

<mosaic_0001>
module attributes {stable_mosaic.version = 11 : i64} {
  func.func @fused_autoencoder_kernel(%arg0: memref<2x8x32xf32, #tpu.memory_space<vmem>>, %arg1: memref<2x8x32xf32, #tpu.memory_space<vmem>>, %arg2: memref<2x8xf32, #tpu.memory_space<vmem>>, %arg3: memref<12x32x128xbf16, #tpu.memory_space<vmem>>, %arg4: memref<22x128xf32, #tpu.memory_space<vmem>>, %arg5: memref<2x8x128xf32, #tpu.memory_space<vmem>>) attributes {dimension_semantics = [], scalar_prefetch = 0 : i64, scratch_operands = 0 : i64, tpu.core_type = #tpu.core_type<tc>} {
    %c0 = arith.constant 0 : index
    %c0_0 = arith.constant 0 : index
    %c0_1 = arith.constant 0 : index
    %0 = vector.load %arg0[%c0, %c0_0, %c0_1] : memref<2x8x32xf32, #tpu.memory_space<vmem>>, vector<2x8x32xf32>
    %1 = vector.shape_cast %0 : vector<2x8x32xf32> to vector<16x32xf32>
    %c0_2 = arith.constant 0 : index
    %c0_3 = arith.constant 0 : index
    %c0_4 = arith.constant 0 : index
    %2 = vector.load %arg1[%c0_2, %c0_3, %c0_4] : memref<2x8x32xf32, #tpu.memory_space<vmem>>, vector<2x8x32xf32>
    %3 = vector.shape_cast %2 : vector<2x8x32xf32> to vector<16x32xf32>
    %c0_5 = arith.constant 0 : index
    %c0_6 = arith.constant 0 : index
    %4 = vector.load %arg2[%c0_5, %c0_6] : memref<2x8xf32, #tpu.memory_space<vmem>>, vector<2x8xf32>
    %cst = arith.constant 1.000000e+00 : f32
    %5 = vector.broadcast %cst : f32 to vector<2x8xf32>
    %6 = arith.subf %5, %4 : vector<2x8xf32>
    %cst_7 = arith.constant -1.000000e+09 : f32
    %7 = vector.broadcast %cst_7 : f32 to vector<2x8xf32>
    %8 = arith.mulf %6, %7 : vector<2x8xf32>
    %9 = vector.shape_cast %8 : vector<2x8xf32> to vector<2x1x8xf32>
    %10 = vector.shape_cast %9 : vector<2x1x8xf32> to vector<2x1x8xf32>
    %11 = vector.broadcast %10 : vector<2x1x8xf32> to vector<2x8x8xf32>
    %12 = vector.shape_cast %8 : vector<2x8xf32> to vector<2x1x8xf32>
    %13 = vector.shape_cast %12 : vector<2x1x8xf32> to vector<2x1x8xf32>
    %14 = vector.broadcast %13 : vector<2x1x8xf32> to vector<2x8x8xf32>
    %15 = tpu.iota {dimensions = array<i32: 0>} : vector<8x8xi32>
    %16 = tpu.iota {dimensions = array<i32: 1>} : vector<8x8xi32>
    %17 = arith.cmpi sle, %16, %15 : vector<8x8xi32>
    %cst_8 = arith.constant 0.000000e+00 : f32
    %cst_9 = arith.constant -1.000000e+09 : f32
    %18 = vector.broadcast %cst_8 : f32 to vector<8x8xf32>
    %19 = vector.broadcast %cst_9 : f32 to vector<8x8xf32>
    %20 = arith.select %17, %18, %19 : vector<8x8xi1>, vector<8x8xf32>
    %21 = vector.shape_cast %20 : vector<8x8xf32> to vector<1x8x8xf32>
    %22 = vector.shape_cast %21 : vector<1x8x8xf32> to vector<1x8x8xf32>
    %23 = vector.broadcast %22 : vector<1x8x8xf32> to vector<2x8x8xf32>
    %24 = arith.truncf %1 : vector<16x32xf32> to vector<16x32xbf16>
    %c0_10 = arith.constant 0 : index
    %c0_11 = arith.constant 0 : index
    %c0_12 = arith.constant 0 : index
    %25 = vector.load %arg3[%c0_10, %c0_11, %c0_12] : memref<12x32x128xbf16, #tpu.memory_space<vmem>>, vector<1x32x128xbf16>
    %26 = vector.shape_cast %25 : vector<1x32x128xbf16> to vector<32x128xbf16>
    %cst_13 = arith.constant dense<0.000000e+00> : vector<16x128xf32>
    %27 = tpu.matmul %24, %26, %cst_13 {dimension_numbers = #tpu.dot_dimension_numbers<[1], [0], [0], [1], [0, 0, 1, 1], [], []>} : vector<16x32xbf16>, vector<32x128xbf16>, vector<16x128xf32> -> vector<16x128xf32>
    %c0_14 = arith.constant 0 : index
    %c0_15 = arith.constant 0 : index
    %28 = vector.load %arg4[%c0_14, %c0_15] : memref<22x128xf32, #tpu.memory_space<vmem>>, vector<1x128xf32>
    %29 = vector.broadcast %28 : vector<1x128xf32> to vector<16x128xf32>
    %30 = arith.addf %27, %29 : vector<16x128xf32>
    %31 = arith.truncf %30 : vector<16x128xf32> to vector<16x128xbf16>
    %c1 = arith.constant 1 : index
    %c0_16 = arith.constant 0 : index
    %c0_17 = arith.constant 0 : index
    %32 = vector.load %arg3[%c1, %c0_16, %c0_17] : memref<12x32x128xbf16, #tpu.memory_space<vmem>>, vector<1x32x128xbf16>
    %33 = vector.shape_cast %32 : vector<1x32x128xbf16> to vector<32x128xbf16>
    %c1_18 = arith.constant 1 : index
    %c0_19 = arith.constant 0 : index
    %34 = vector.load %arg4[%c1_18, %c0_19] : memref<22x128xf32, #tpu.memory_space<vmem>>, vector<1x128xf32>
    %35 = vector.extract_strided_slice %31 {offsets = [0, 0], sizes = [16, 8], strides = [1, 1]} : vector<16x128xbf16> to vector<16x8xbf16>
    %36 = vector.shape_cast %35 : vector<16x8xbf16> to vector<2x8x8xbf16>
    %37 = vector.extract_strided_slice %31 {offsets = [0, 32], sizes = [16, 8], strides = [1, 1]} : vector<16x128xbf16> to vector<16x8xbf16>
    %38 = vector.shape_cast %37 : vector<16x8xbf16> to vector<2x8x8xbf16>
    %39 = vector.extract_strided_slice %31 {offsets = [0, 64], sizes = [16, 8], strides = [1, 1]} : vector<16x128xbf16> to vector<16x8xbf16>
    %40 = vector.shape_cast %39 : vector<16x8xbf16> to vector<2x8x8xbf16>
    "tpu.trace_start"() <{level = 10 : i32, message = "bqd,bkd->bqk"}> : () -> ()
    %cst_20 = arith.constant dense<0.000000e+00> : vector<2x8x8xf32>
    %41 = tpu.matmul %36, %38, %cst_20 {dimension_numbers = #tpu.dot_dimension_numbers<[2], [2], [1], [1], [0, 0, 0, 1, 1, 1], [0], [0]>} : vector<2x8x8xbf16>, vector<2x8x8xbf16>, vector<2x8x8xf32> -> vector<2x8x8xf32>
    "tpu.trace_stop"() : () -> ()
    %cst_21 = arith.constant 0.353553385 : f32
    %42 = vector.broadcast %cst_21 : f32 to vector<2x8x8xf32>
    %43 = arith.mulf %41, %42 : vector<2x8x8xf32>
    %44 = arith.addf %43, %11 : vector<2x8x8xf32>
    %cst_22 = arith.constant dense<0xFF800000> : vector<2x8xf32>
    %45 = vector.multi_reduction <maximumf>, %44, %cst_22 [2] : vector<2x8x8xf32> to vector<2x8xf32>
    %46 = vector.shape_cast %45 : vector<2x8xf32> to vector<2x8x1xf32>
    %47 = vector.broadcast %46 : vector<2x8x1xf32> to vector<2x8x8xf32>
    %48 = arith.subf %44, %47 : vector<2x8x8xf32>
    %49 = math.exp %48 : vector<2x8x8xf32>
    %cst_23 = arith.constant dense<0.000000e+00> : vector<2x8xf32>
    %50 = vector.multi_reduction <add>, %49, %cst_23 [2] : vector<2x8x8xf32> to vector<2x8xf32>
    %51 = vector.shape_cast %50 : vector<2x8xf32> to vector<2x8x1xf32>
    %52 = tpu.reciprocal %51 {approx = true} : vector<2x8x1xf32> -> vector<2x8x1xf32>
    %53 = vector.broadcast %52 : vector<2x8x1xf32> to vector<2x8x8xf32>
    %54 = arith.mulf %49, %53 : vector<2x8x8xf32>
    %55 = arith.truncf %54 : vector<2x8x8xf32> to vector<2x8x8xbf16>
    "tpu.trace_start"() <{level = 10 : i32, message = "bqk,bkd->bqd"}> : () -> ()
    %cst_24 = arith.constant dense<0.000000e+00> : vector<2x8x8xf32>
    %56 = tpu.matmul %55, %40, %cst_24 {dimension_numbers = #tpu.dot_dimension_numbers<[2], [1], [1], [2], [0, 0, 0, 1, 1, 2], [0], [0]>} : vector<2x8x8xbf16>, vector<2x8x8xbf16>, vector<2x8x8xf32> -> vector<2x8x8xf32>
    "tpu.trace_stop"() : () -> ()
    %57 = vector.shape_cast %56 : vector<2x8x8xf32> to vector<16x8xf32>
    %58 = arith.truncf %57 : vector<16x8xf32> to vector<16x8xbf16>
    %59 = vector.extract_strided_slice %33 {offsets = [0, 0], sizes = [8, 128], strides = [1, 1]} : vector<32x128xbf16> to vector<8x128xbf16>
    %cst_25 = arith.constant dense<0.000000e+00> : vector<16x128xf32>
    %60 = tpu.matmul %58, %59, %cst_25 {dimension_numbers = #tpu.dot_dimension_numbers<[1], [0], [0], [1], [0, 0, 1, 1], [], []>} : vector<16x8xbf16>, vector<8x128xbf16>, vector<16x128xf32> -> vector<16x128xf32>
    %61 = vector.extract_strided_slice %31 {offsets = [0, 8], sizes = [16, 8], strides = [1, 1]} : vector<16x128xbf16> to vector<16x8xbf16>
    %62 = vector.shape_cast %61 : vector<16x8xbf16> to vector<2x8x8xbf16>
    %63 = vector.extract_strided_slice %31 {offsets = [0, 40], sizes = [16, 8], strides = [1, 1]} : vector<16x128xbf16> to vector<16x8xbf16>
    %64 = vector.shape_cast %63 : vector<16x8xbf16> to vector<2x8x8xbf16>
    %65 = vector.extract_strided_slice %31 {offsets = [0, 72], sizes = [16, 8], strides = [1, 1]} : vector<16x128xbf16> to vector<16x8xbf16>
    %66 = vector.shape_cast %65 : vector<16x8xbf16> to vector<2x8x8xbf16>
    "tpu.trace_start"() <{level = 10 : i32, message = "bqd,bkd->bqk"}> : () -> ()
    %cst_26 = arith.constant dense<0.000000e+00> : vector<2x8x8xf32>
    %67 = tpu.matmul %62, %64, %cst_26 {dimension_numbers = #tpu.dot_dimension_numbers<[2], [2], [1], [1], [0, 0, 0, 1, 1, 1], [0], [0]>} : vector<2x8x8xbf16>, vector<2x8x8xbf16>, vector<2x8x8xf32> -> vector<2x8x8xf32>
    "tpu.trace_stop"() : () -> ()
    %cst_27 = arith.constant 0.353553385 : f32
    %68 = vector.broadcast %cst_27 : f32 to vector<2x8x8xf32>
    %69 = arith.mulf %67, %68 : vector<2x8x8xf32>
    %70 = arith.addf %69, %11 : vector<2x8x8xf32>
    %cst_28 = arith.constant dense<0xFF800000> : vector<2x8xf32>
    %71 = vector.multi_reduction <maximumf>, %70, %cst_28 [2] : vector<2x8x8xf32> to vector<2x8xf32>
    %72 = vector.shape_cast %71 : vector<2x8xf32> to vector<2x8x1xf32>
    %73 = vector.broadcast %72 : vector<2x8x1xf32> to vector<2x8x8xf32>
    %74 = arith.subf %70, %73 : vector<2x8x8xf32>
    %75 = math.exp %74 : vector<2x8x8xf32>
    %cst_29 = arith.constant dense<0.000000e+00> : vector<2x8xf32>
    %76 = vector.multi_reduction <add>, %75, %cst_29 [2] : vector<2x8x8xf32> to vector<2x8xf32>
    %77 = vector.shape_cast %76 : vector<2x8xf32> to vector<2x8x1xf32>
    %78 = tpu.reciprocal %77 {approx = true} : vector<2x8x1xf32> -> vector<2x8x1xf32>
    %79 = vector.broadcast %78 : vector<2x8x1xf32> to vector<2x8x8xf32>
    %80 = arith.mulf %75, %79 : vector<2x8x8xf32>
    %81 = arith.truncf %80 : vector<2x8x8xf32> to vector<2x8x8xbf16>
    "tpu.trace_start"() <{level = 10 : i32, message = "bqk,bkd->bqd"}> : () -> ()
    %cst_30 = arith.constant dense<0.000000e+00> : vector<2x8x8xf32>
    %82 = tpu.matmul %81, %66, %cst_30 {dimension_numbers = #tpu.dot_dimension_numbers<[2], [1], [1], [2], [0, 0, 0, 1, 1, 2], [0], [0]>} : vector<2x8x8xbf16>, vector<2x8x8xbf16>, vector<2x8x8xf32> -> vector<2x8x8xf32>
    "tpu.trace_stop"() : () -> ()
    %83 = vector.shape_cast %82 : vector<2x8x8xf32> to vector<16x8xf32>
    %84 = arith.truncf %83 : vector<16x8xf32> to vector<16x8xbf16>
    %85 = vector.extract_strided_slice %33 {offsets = [8, 0], sizes = [8, 128], strides = [1, 1]} : vector<32x128xbf16> to vector<8x128xbf16>
    %cst_31 = arith.constant dense<0.000000e+00> : vector<16x128xf32>
    %86 = tpu.matmul %84, %85, %cst_31 {dimension_numbers = #tpu.dot_dimension_numbers<[1], [0], [0], [1], [0, 0, 1, 1], [], []>} : vector<16x8xbf16>, vector<8x128xbf16>, vector<16x128xf32> -> vector<16x128xf32>
    %87 = arith.addf %60, %86 : vector<16x128xf32>
    %88 = vector.extract_strided_slice %31 {offsets = [0, 16], sizes = [16, 8], strides = [1, 1]} : vector<16x128xbf16> to vector<16x8xbf16>
    %89 = vector.shape_cast %88 : vector<16x8xbf16> to vector<2x8x8xbf16>
    %90 = vector.extract_strided_slice %31 {offsets = [0, 48], sizes = [16, 8], strides = [1, 1]} : vector<16x128xbf16> to vector<16x8xbf16>
    %91 = vector.shape_cast %90 : vector<16x8xbf16> to vector<2x8x8xbf16>
    %92 = vector.extract_strided_slice %31 {offsets = [0, 80], sizes = [16, 8], strides = [1, 1]} : vector<16x128xbf16> to vector<16x8xbf16>
    %93 = vector.shape_cast %92 : vector<16x8xbf16> to vector<2x8x8xbf16>
    "tpu.trace_start"() <{level = 10 : i32, message = "bqd,bkd->bqk"}> : () -> ()
    %cst_32 = arith.constant dense<0.000000e+00> : vector<2x8x8xf32>
    %94 = tpu.matmul %89, %91, %cst_32 {dimension_numbers = #tpu.dot_dimension_numbers<[2], [2], [1], [1], [0, 0, 0, 1, 1, 1], [0], [0]>} : vector<2x8x8xbf16>, vector<2x8x8xbf16>, vector<2x8x8xf32> -> vector<2x8x8xf32>
    "tpu.trace_stop"() : () -> ()
    %cst_33 = arith.constant 0.353553385 : f32
    %95 = vector.broadcast %cst_33 : f32 to vector<2x8x8xf32>
    %96 = arith.mulf %94, %95 : vector<2x8x8xf32>
    %97 = arith.addf %96, %11 : vector<2x8x8xf32>
    %cst_34 = arith.constant dense<0xFF800000> : vector<2x8xf32>
    %98 = vector.multi_reduction <maximumf>, %97, %cst_34 [2] : vector<2x8x8xf32> to vector<2x8xf32>
    %99 = vector.shape_cast %98 : vector<2x8xf32> to vector<2x8x1xf32>
    %100 = vector.broadcast %99 : vector<2x8x1xf32> to vector<2x8x8xf32>
    %101 = arith.subf %97, %100 : vector<2x8x8xf32>
    %102 = math.exp %101 : vector<2x8x8xf32>
    %cst_35 = arith.constant dense<0.000000e+00> : vector<2x8xf32>
    %103 = vector.multi_reduction <add>, %102, %cst_35 [2] : vector<2x8x8xf32> to vector<2x8xf32>
    %104 = vector.shape_cast %103 : vector<2x8xf32> to vector<2x8x1xf32>
    %105 = tpu.reciprocal %104 {approx = true} : vector<2x8x1xf32> -> vector<2x8x1xf32>
    %106 = vector.broadcast %105 : vector<2x8x1xf32> to vector<2x8x8xf32>
    %107 = arith.mulf %102, %106 : vector<2x8x8xf32>
    %108 = arith.truncf %107 : vector<2x8x8xf32> to vector<2x8x8xbf16>
    "tpu.trace_start"() <{level = 10 : i32, message = "bqk,bkd->bqd"}> : () -> ()
    %cst_36 = arith.constant dense<0.000000e+00> : vector<2x8x8xf32>
    %109 = tpu.matmul %108, %93, %cst_36 {dimension_numbers = #tpu.dot_dimension_numbers<[2], [1], [1], [2], [0, 0, 0, 1, 1, 2], [0], [0]>} : vector<2x8x8xbf16>, vector<2x8x8xbf16>, vector<2x8x8xf32> -> vector<2x8x8xf32>
    "tpu.trace_stop"() : () -> ()
    %110 = vector.shape_cast %109 : vector<2x8x8xf32> to vector<16x8xf32>
    %111 = arith.truncf %110 : vector<16x8xf32> to vector<16x8xbf16>
    %112 = vector.extract_strided_slice %33 {offsets = [16, 0], sizes = [8, 128], strides = [1, 1]} : vector<32x128xbf16> to vector<8x128xbf16>
    %cst_37 = arith.constant dense<0.000000e+00> : vector<16x128xf32>
    %113 = tpu.matmul %111, %112, %cst_37 {dimension_numbers = #tpu.dot_dimension_numbers<[1], [0], [0], [1], [0, 0, 1, 1], [], []>} : vector<16x8xbf16>, vector<8x128xbf16>, vector<16x128xf32> -> vector<16x128xf32>
    %114 = arith.addf %87, %113 : vector<16x128xf32>
    %115 = vector.extract_strided_slice %31 {offsets = [0, 24], sizes = [16, 8], strides = [1, 1]} : vector<16x128xbf16> to vector<16x8xbf16>
    %116 = vector.shape_cast %115 : vector<16x8xbf16> to vector<2x8x8xbf16>
    %117 = vector.extract_strided_slice %31 {offsets = [0, 56], sizes = [16, 8], strides = [1, 1]} : vector<16x128xbf16> to vector<16x8xbf16>
    %118 = vector.shape_cast %117 : vector<16x8xbf16> to vector<2x8x8xbf16>
    %119 = vector.extract_strided_slice %31 {offsets = [0, 88], sizes = [16, 8], strides = [1, 1]} : vector<16x128xbf16> to vector<16x8xbf16>
    %120 = vector.shape_cast %119 : vector<16x8xbf16> to vector<2x8x8xbf16>
    "tpu.trace_start"() <{level = 10 : i32, message = "bqd,bkd->bqk"}> : () -> ()
    %cst_38 = arith.constant dense<0.000000e+00> : vector<2x8x8xf32>
    %121 = tpu.matmul %116, %118, %cst_38 {dimension_numbers = #tpu.dot_dimension_numbers<[2], [2], [1], [1], [0, 0, 0, 1, 1, 1], [0], [0]>} : vector<2x8x8xbf16>, vector<2x8x8xbf16>, vector<2x8x8xf32> -> vector<2x8x8xf32>
    "tpu.trace_stop"() : () -> ()
    %cst_39 = arith.constant 0.353553385 : f32
    %122 = vector.broadcast %cst_39 : f32 to vector<2x8x8xf32>
    %123 = arith.mulf %121, %122 : vector<2x8x8xf32>
    %124 = arith.addf %123, %11 : vector<2x8x8xf32>
    %cst_40 = arith.constant dense<0xFF800000> : vector<2x8xf32>
    %125 = vector.multi_reduction <maximumf>, %124, %cst_40 [2] : vector<2x8x8xf32> to vector<2x8xf32>
    %126 = vector.shape_cast %125 : vector<2x8xf32> to vector<2x8x1xf32>
    %127 = vector.broadcast %126 : vector<2x8x1xf32> to vector<2x8x8xf32>
    %128 = arith.subf %124, %127 : vector<2x8x8xf32>
    %129 = math.exp %128 : vector<2x8x8xf32>
    %cst_41 = arith.constant dense<0.000000e+00> : vector<2x8xf32>
    %130 = vector.multi_reduction <add>, %129, %cst_41 [2] : vector<2x8x8xf32> to vector<2x8xf32>
    %131 = vector.shape_cast %130 : vector<2x8xf32> to vector<2x8x1xf32>
    %132 = tpu.reciprocal %131 {approx = true} : vector<2x8x1xf32> -> vector<2x8x1xf32>
    %133 = vector.broadcast %132 : vector<2x8x1xf32> to vector<2x8x8xf32>
    %134 = arith.mulf %129, %133 : vector<2x8x8xf32>
    %135 = arith.truncf %134 : vector<2x8x8xf32> to vector<2x8x8xbf16>
    "tpu.trace_start"() <{level = 10 : i32, message = "bqk,bkd->bqd"}> : () -> ()
    %cst_42 = arith.constant dense<0.000000e+00> : vector<2x8x8xf32>
    %136 = tpu.matmul %135, %120, %cst_42 {dimension_numbers = #tpu.dot_dimension_numbers<[2], [1], [1], [2], [0, 0, 0, 1, 1, 2], [0], [0]>} : vector<2x8x8xbf16>, vector<2x8x8xbf16>, vector<2x8x8xf32> -> vector<2x8x8xf32>
    "tpu.trace_stop"() : () -> ()
    %137 = vector.shape_cast %136 : vector<2x8x8xf32> to vector<16x8xf32>
    %138 = arith.truncf %137 : vector<16x8xf32> to vector<16x8xbf16>
    %139 = vector.extract_strided_slice %33 {offsets = [24, 0], sizes = [8, 128], strides = [1, 1]} : vector<32x128xbf16> to vector<8x128xbf16>
    %cst_43 = arith.constant dense<0.000000e+00> : vector<16x128xf32>
    %140 = tpu.matmul %138, %139, %cst_43 {dimension_numbers = #tpu.dot_dimension_numbers<[1], [0], [0], [1], [0, 0, 1, 1], [], []>} : vector<16x8xbf16>, vector<8x128xbf16>, vector<16x128xf32> -> vector<16x128xf32>
    %141 = arith.addf %114, %140 : vector<16x128xf32>
    %142 = vector.broadcast %34 : vector<1x128xf32> to vector<16x128xf32>
    %143 = arith.addf %141, %142 : vector<16x128xf32>
    %144 = vector.extract_strided_slice %143 {offsets = [0, 0], sizes = [16, 32], strides = [1, 1]} : vector<16x128xf32> to vector<16x32xf32>
    %145 = arith.addf %1, %144 : vector<16x32xf32>
    %c2 = arith.constant 2 : index
    %c0_44 = arith.constant 0 : index
    %146 = vector.load %arg4[%c2, %c0_44] : memref<22x128xf32, #tpu.memory_space<vmem>>, vector<1x128xf32>
    %147 = vector.extract_strided_slice %146 {offsets = [0, 0], sizes = [1, 32], strides = [1, 1]} : vector<1x128xf32> to vector<1x32xf32>
    %c3 = arith.constant 3 : index
    %c0_45 = arith.constant 0 : index
    %148 = vector.load %arg4[%c3, %c0_45] : memref<22x128xf32, #tpu.memory_space<vmem>>, vector<1x128xf32>
    %149 = vector.extract_strided_slice %148 {offsets = [0, 0], sizes = [1, 32], strides = [1, 1]} : vector<1x128xf32> to vector<1x32xf32>
    %cst_46 = arith.constant dense<0.000000e+00> : vector<16xf32>
    %150 = vector.multi_reduction <add>, %145, %cst_46 [1] : vector<16x32xf32> to vector<16xf32>
    %151 = vector.shape_cast %150 : vector<16xf32> to vector<16x1xf32>
    %cst_47 = arith.constant 3.200000e+01 : f32
    %152 = vector.broadcast %cst_47 : f32 to vector<16x1xf32>
    %153 = arith.divf %151, %152 : vector<16x1xf32>
    %154 = vector.broadcast %153 : vector<16x1xf32> to vector<16x32xf32>
    %155 = arith.subf %145, %154 : vector<16x32xf32>
    %156 = arith.mulf %155, %155 : vector<16x32xf32>
    %cst_48 = arith.constant dense<0.000000e+00> : vector<16xf32>
    %157 = vector.multi_reduction <add>, %156, %cst_48 [1] : vector<16x32xf32> to vector<16xf32>
    %158 = vector.shape_cast %157 : vector<16xf32> to vector<16x1xf32>
    %cst_49 = arith.constant 3.200000e+01 : f32
    %159 = vector.broadcast %cst_49 : f32 to vector<16x1xf32>
    %160 = arith.divf %158, %159 : vector<16x1xf32>
    %161 = vector.broadcast %153 : vector<16x1xf32> to vector<16x32xf32>
    %162 = arith.subf %145, %161 : vector<16x32xf32>
    %cst_50 = arith.constant 9.99999974E-6 : f32
    %163 = vector.broadcast %cst_50 : f32 to vector<16x1xf32>
    %164 = arith.addf %160, %163 : vector<16x1xf32>
    %165 = math.rsqrt %164 : vector<16x1xf32>
    %166 = vector.broadcast %165 : vector<16x1xf32> to vector<16x32xf32>
    %167 = arith.mulf %162, %166 : vector<16x32xf32>
    %168 = vector.broadcast %147 : vector<1x32xf32> to vector<16x32xf32>
    %169 = arith.mulf %167, %168 : vector<16x32xf32>
    %170 = vector.broadcast %149 : vector<1x32xf32> to vector<16x32xf32>
    %171 = arith.addf %169, %170 : vector<16x32xf32>
    %c2_51 = arith.constant 2 : index
    %c0_52 = arith.constant 0 : index
    %c0_53 = arith.constant 0 : index
    %172 = vector.load %arg3[%c2_51, %c0_52, %c0_53] : memref<12x32x128xbf16, #tpu.memory_space<vmem>>, vector<1x32x128xbf16>
    %173 = vector.shape_cast %172 : vector<1x32x128xbf16> to vector<32x128xbf16>
    %c3_54 = arith.constant 3 : index
    %c0_55 = arith.constant 0 : index
    %c0_56 = arith.constant 0 : index
    %174 = vector.load %arg3[%c3_54, %c0_55, %c0_56] : memref<12x32x128xbf16, #tpu.memory_space<vmem>>, vector<1x32x128xbf16>
    %175 = vector.shape_cast %174 : vector<1x32x128xbf16> to vector<32x128xbf16>
    %c4 = arith.constant 4 : index
    %c0_57 = arith.constant 0 : index
    %176 = vector.load %arg4[%c4, %c0_57] : memref<22x128xf32, #tpu.memory_space<vmem>>, vector<1x128xf32>
    %c5 = arith.constant 5 : index
    %c0_58 = arith.constant 0 : index
    %177 = vector.load %arg4[%c5, %c0_58] : memref<22x128xf32, #tpu.memory_space<vmem>>, vector<1x128xf32>
    %178 = arith.truncf %171 : vector<16x32xf32> to vector<16x32xbf16>
    %cst_59 = arith.constant dense<0.000000e+00> : vector<16x128xf32>
    %179 = tpu.matmul %178, %173, %cst_59 {dimension_numbers = #tpu.dot_dimension_numbers<[1], [0], [0], [1], [0, 0, 1, 1], [], []>} : vector<16x32xbf16>, vector<32x128xbf16>, vector<16x128xf32> -> vector<16x128xf32>
    %180 = vector.broadcast %176 : vector<1x128xf32> to vector<16x128xf32>
    %181 = arith.addf %179, %180 : vector<16x128xf32>
    %cst_60 = arith.constant 0.000000e+00 : f32
    %182 = vector.broadcast %cst_60 : f32 to vector<16x128xf32>
    %183 = arith.maximumf %181, %182 : vector<16x128xf32>
    %184 = arith.truncf %183 : vector<16x128xf32> to vector<16x128xbf16>
    %cst_61 = arith.constant dense<0.000000e+00> : vector<16x32xf32>
    %185 = tpu.matmul %184, %175, %cst_61 {dimension_numbers = #tpu.dot_dimension_numbers<[1], [1], [0], [0], [0, 0, 1, 0], [], []>} : vector<16x128xbf16>, vector<32x128xbf16>, vector<16x32xf32> -> vector<16x32xf32>
    %186 = vector.extract_strided_slice %177 {offsets = [0, 0], sizes = [1, 32], strides = [1, 1]} : vector<1x128xf32> to vector<1x32xf32>
    %187 = vector.broadcast %186 : vector<1x32xf32> to vector<16x32xf32>
    %188 = arith.addf %185, %187 : vector<16x32xf32>
    %189 = arith.addf %171, %188 : vector<16x32xf32>
    %c6 = arith.constant 6 : index
    %c0_62 = arith.constant 0 : index
    %190 = vector.load %arg4[%c6, %c0_62] : memref<22x128xf32, #tpu.memory_space<vmem>>, vector<1x128xf32>
    %191 = vector.extract_strided_slice %190 {offsets = [0, 0], sizes = [1, 32], strides = [1, 1]} : vector<1x128xf32> to vector<1x32xf32>
    %c7 = arith.constant 7 : index
    %c0_63 = arith.constant 0 : index
    %192 = vector.load %arg4[%c7, %c0_63] : memref<22x128xf32, #tpu.memory_space<vmem>>, vector<1x128xf32>
    %193 = vector.extract_strided_slice %192 {offsets = [0, 0], sizes = [1, 32], strides = [1, 1]} : vector<1x128xf32> to vector<1x32xf32>
    %cst_64 = arith.constant dense<0.000000e+00> : vector<16xf32>
    %194 = vector.multi_reduction <add>, %189, %cst_64 [1] : vector<16x32xf32> to vector<16xf32>
    %195 = vector.shape_cast %194 : vector<16xf32> to vector<16x1xf32>
    %cst_65 = arith.constant 3.200000e+01 : f32
    %196 = vector.broadcast %cst_65 : f32 to vector<16x1xf32>
    %197 = arith.divf %195, %196 : vector<16x1xf32>
    %198 = vector.broadcast %197 : vector<16x1xf32> to vector<16x32xf32>
    %199 = arith.subf %189, %198 : vector<16x32xf32>
    %200 = arith.mulf %199, %199 : vector<16x32xf32>
    %cst_66 = arith.constant dense<0.000000e+00> : vector<16xf32>
    %201 = vector.multi_reduction <add>, %200, %cst_66 [1] : vector<16x32xf32> to vector<16xf32>
    %202 = vector.shape_cast %201 : vector<16xf32> to vector<16x1xf32>
    %cst_67 = arith.constant 3.200000e+01 : f32
    %203 = vector.broadcast %cst_67 : f32 to vector<16x1xf32>
    %204 = arith.divf %202, %203 : vector<16x1xf32>
    %205 = vector.broadcast %197 : vector<16x1xf32> to vector<16x32xf32>
    %206 = arith.subf %189, %205 : vector<16x32xf32>
    %cst_68 = arith.constant 9.99999974E-6 : f32
    %207 = vector.broadcast %cst_68 : f32 to vector<16x1xf32>
    %208 = arith.addf %204, %207 : vector<16x1xf32>
    %209 = math.rsqrt %208 : vector<16x1xf32>
    %210 = vector.broadcast %209 : vector<16x1xf32> to vector<16x32xf32>
    %211 = arith.mulf %206, %210 : vector<16x32xf32>
    %212 = vector.broadcast %191 : vector<1x32xf32> to vector<16x32xf32>
    %213 = arith.mulf %211, %212 : vector<16x32xf32>
    %214 = vector.broadcast %193 : vector<1x32xf32> to vector<16x32xf32>
    %215 = arith.addf %213, %214 : vector<16x32xf32>
    %216 = arith.truncf %3 : vector<16x32xf32> to vector<16x32xbf16>
    %c4_69 = arith.constant 4 : index
    %c0_70 = arith.constant 0 : index
    %c0_71 = arith.constant 0 : index
    %217 = vector.load %arg3[%c4_69, %c0_70, %c0_71] : memref<12x32x128xbf16, #tpu.memory_space<vmem>>, vector<1x32x128xbf16>
    %218 = vector.shape_cast %217 : vector<1x32x128xbf16> to vector<32x128xbf16>
    %cst_72 = arith.constant dense<0.000000e+00> : vector<16x128xf32>
    %219 = tpu.matmul %216, %218, %cst_72 {dimension_numbers = #tpu.dot_dimension_numbers<[1], [0], [0], [1], [0, 0, 1, 1], [], []>} : vector<16x32xbf16>, vector<32x128xbf16>, vector<16x128xf32> -> vector<16x128xf32>
    %c8 = arith.constant 8 : index
    %c0_73 = arith.constant 0 : index
    %220 = vector.load %arg4[%c8, %c0_73] : memref<22x128xf32, #tpu.memory_space<vmem>>, vector<1x128xf32>
    %221 = vector.broadcast %220 : vector<1x128xf32> to vector<16x128xf32>
    %222 = arith.addf %219, %221 : vector<16x128xf32>
    %223 = arith.truncf %222 : vector<16x128xf32> to vector<16x128xbf16>
    %c5_74 = arith.constant 5 : index
    %c0_75 = arith.constant 0 : index
    %c0_76 = arith.constant 0 : index
    %224 = vector.load %arg3[%c5_74, %c0_75, %c0_76] : memref<12x32x128xbf16, #tpu.memory_space<vmem>>, vector<1x32x128xbf16>
    %225 = vector.shape_cast %224 : vector<1x32x128xbf16> to vector<32x128xbf16>
    %c9 = arith.constant 9 : index
    %c0_77 = arith.constant 0 : index
    %226 = vector.load %arg4[%c9, %c0_77] : memref<22x128xf32, #tpu.memory_space<vmem>>, vector<1x128xf32>
    %227 = vector.extract_strided_slice %223 {offsets = [0, 0], sizes = [16, 8], strides = [1, 1]} : vector<16x128xbf16> to vector<16x8xbf16>
    %228 = vector.shape_cast %227 : vector<16x8xbf16> to vector<2x8x8xbf16>
    %229 = vector.extract_strided_slice %223 {offsets = [0, 32], sizes = [16, 8], strides = [1, 1]} : vector<16x128xbf16> to vector<16x8xbf16>
    %230 = vector.shape_cast %229 : vector<16x8xbf16> to vector<2x8x8xbf16>
    %231 = vector.extract_strided_slice %223 {offsets = [0, 64], sizes = [16, 8], strides = [1, 1]} : vector<16x128xbf16> to vector<16x8xbf16>
    %232 = vector.shape_cast %231 : vector<16x8xbf16> to vector<2x8x8xbf16>
    "tpu.trace_start"() <{level = 10 : i32, message = "bqd,bkd->bqk"}> : () -> ()
    %cst_78 = arith.constant dense<0.000000e+00> : vector<2x8x8xf32>
    %233 = tpu.matmul %228, %230, %cst_78 {dimension_numbers = #tpu.dot_dimension_numbers<[2], [2], [1], [1], [0, 0, 0, 1, 1, 1], [0], [0]>} : vector<2x8x8xbf16>, vector<2x8x8xbf16>, vector<2x8x8xf32> -> vector<2x8x8xf32>
    "tpu.trace_stop"() : () -> ()
    %cst_79 = arith.constant 0.353553385 : f32
    %234 = vector.broadcast %cst_79 : f32 to vector<2x8x8xf32>
    %235 = arith.mulf %233, %234 : vector<2x8x8xf32>
    %236 = arith.addf %235, %23 : vector<2x8x8xf32>
    %cst_80 = arith.constant dense<0xFF800000> : vector<2x8xf32>
    %237 = vector.multi_reduction <maximumf>, %236, %cst_80 [2] : vector<2x8x8xf32> to vector<2x8xf32>
    %238 = vector.shape_cast %237 : vector<2x8xf32> to vector<2x8x1xf32>
    %239 = vector.broadcast %238 : vector<2x8x1xf32> to vector<2x8x8xf32>
    %240 = arith.subf %236, %239 : vector<2x8x8xf32>
    %241 = math.exp %240 : vector<2x8x8xf32>
    %cst_81 = arith.constant dense<0.000000e+00> : vector<2x8xf32>
    %242 = vector.multi_reduction <add>, %241, %cst_81 [2] : vector<2x8x8xf32> to vector<2x8xf32>
    %243 = vector.shape_cast %242 : vector<2x8xf32> to vector<2x8x1xf32>
    %244 = tpu.reciprocal %243 {approx = true} : vector<2x8x1xf32> -> vector<2x8x1xf32>
    %245 = vector.broadcast %244 : vector<2x8x1xf32> to vector<2x8x8xf32>
    %246 = arith.mulf %241, %245 : vector<2x8x8xf32>
    %247 = arith.truncf %246 : vector<2x8x8xf32> to vector<2x8x8xbf16>
    "tpu.trace_start"() <{level = 10 : i32, message = "bqk,bkd->bqd"}> : () -> ()
    %cst_82 = arith.constant dense<0.000000e+00> : vector<2x8x8xf32>
    %248 = tpu.matmul %247, %232, %cst_82 {dimension_numbers = #tpu.dot_dimension_numbers<[2], [1], [1], [2], [0, 0, 0, 1, 1, 2], [0], [0]>} : vector<2x8x8xbf16>, vector<2x8x8xbf16>, vector<2x8x8xf32> -> vector<2x8x8xf32>
    "tpu.trace_stop"() : () -> ()
    %249 = vector.shape_cast %248 : vector<2x8x8xf32> to vector<16x8xf32>
    %250 = arith.truncf %249 : vector<16x8xf32> to vector<16x8xbf16>
    %251 = vector.extract_strided_slice %225 {offsets = [0, 0], sizes = [8, 128], strides = [1, 1]} : vector<32x128xbf16> to vector<8x128xbf16>
    %cst_83 = arith.constant dense<0.000000e+00> : vector<16x128xf32>
    %252 = tpu.matmul %250, %251, %cst_83 {dimension_numbers = #tpu.dot_dimension_numbers<[1], [0], [0], [1], [0, 0, 1, 1], [], []>} : vector<16x8xbf16>, vector<8x128xbf16>, vector<16x128xf32> -> vector<16x128xf32>
    %253 = vector.extract_strided_slice %223 {offsets = [0, 8], sizes = [16, 8], strides = [1, 1]} : vector<16x128xbf16> to vector<16x8xbf16>
    %254 = vector.shape_cast %253 : vector<16x8xbf16> to vector<2x8x8xbf16>
    %255 = vector.extract_strided_slice %223 {offsets = [0, 40], sizes = [16, 8], strides = [1, 1]} : vector<16x128xbf16> to vector<16x8xbf16>
    %256 = vector.shape_cast %255 : vector<16x8xbf16> to vector<2x8x8xbf16>
    %257 = vector.extract_strided_slice %223 {offsets = [0, 72], sizes = [16, 8], strides = [1, 1]} : vector<16x128xbf16> to vector<16x8xbf16>
    %258 = vector.shape_cast %257 : vector<16x8xbf16> to vector<2x8x8xbf16>
    "tpu.trace_start"() <{level = 10 : i32, message = "bqd,bkd->bqk"}> : () -> ()
    %cst_84 = arith.constant dense<0.000000e+00> : vector<2x8x8xf32>
    %259 = tpu.matmul %254, %256, %cst_84 {dimension_numbers = #tpu.dot_dimension_numbers<[2], [2], [1], [1], [0, 0, 0, 1, 1, 1], [0], [0]>} : vector<2x8x8xbf16>, vector<2x8x8xbf16>, vector<2x8x8xf32> -> vector<2x8x8xf32>
    "tpu.trace_stop"() : () -> ()
    %cst_85 = arith.constant 0.353553385 : f32
    %260 = vector.broadcast %cst_85 : f32 to vector<2x8x8xf32>
    %261 = arith.mulf %259, %260 : vector<2x8x8xf32>
    %262 = arith.addf %261, %23 : vector<2x8x8xf32>
    %cst_86 = arith.constant dense<0xFF800000> : vector<2x8xf32>
    %263 = vector.multi_reduction <maximumf>, %262, %cst_86 [2] : vector<2x8x8xf32> to vector<2x8xf32>
    %264 = vector.shape_cast %263 : vector<2x8xf32> to vector<2x8x1xf32>
    %265 = vector.broadcast %264 : vector<2x8x1xf32> to vector<2x8x8xf32>
    %266 = arith.subf %262, %265 : vector<2x8x8xf32>
    %267 = math.exp %266 : vector<2x8x8xf32>
    %cst_87 = arith.constant dense<0.000000e+00> : vector<2x8xf32>
    %268 = vector.multi_reduction <add>, %267, %cst_87 [2] : vector<2x8x8xf32> to vector<2x8xf32>
    %269 = vector.shape_cast %268 : vector<2x8xf32> to vector<2x8x1xf32>
    %270 = tpu.reciprocal %269 {approx = true} : vector<2x8x1xf32> -> vector<2x8x1xf32>
    %271 = vector.broadcast %270 : vector<2x8x1xf32> to vector<2x8x8xf32>
    %272 = arith.mulf %267, %271 : vector<2x8x8xf32>
    %273 = arith.truncf %272 : vector<2x8x8xf32> to vector<2x8x8xbf16>
    "tpu.trace_start"() <{level = 10 : i32, message = "bqk,bkd->bqd"}> : () -> ()
    %cst_88 = arith.constant dense<0.000000e+00> : vector<2x8x8xf32>
    %274 = tpu.matmul %273, %258, %cst_88 {dimension_numbers = #tpu.dot_dimension_numbers<[2], [1], [1], [2], [0, 0, 0, 1, 1, 2], [0], [0]>} : vector<2x8x8xbf16>, vector<2x8x8xbf16>, vector<2x8x8xf32> -> vector<2x8x8xf32>
    "tpu.trace_stop"() : () -> ()
    %275 = vector.shape_cast %274 : vector<2x8x8xf32> to vector<16x8xf32>
    %276 = arith.truncf %275 : vector<16x8xf32> to vector<16x8xbf16>
    %277 = vector.extract_strided_slice %225 {offsets = [8, 0], sizes = [8, 128], strides = [1, 1]} : vector<32x128xbf16> to vector<8x128xbf16>
    %cst_89 = arith.constant dense<0.000000e+00> : vector<16x128xf32>
    %278 = tpu.matmul %276, %277, %cst_89 {dimension_numbers = #tpu.dot_dimension_numbers<[1], [0], [0], [1], [0, 0, 1, 1], [], []>} : vector<16x8xbf16>, vector<8x128xbf16>, vector<16x128xf32> -> vector<16x128xf32>
    %279 = arith.addf %252, %278 : vector<16x128xf32>
    %280 = vector.extract_strided_slice %223 {offsets = [0, 16], sizes = [16, 8], strides = [1, 1]} : vector<16x128xbf16> to vector<16x8xbf16>
    %281 = vector.shape_cast %280 : vector<16x8xbf16> to vector<2x8x8xbf16>
    %282 = vector.extract_strided_slice %223 {offsets = [0, 48], sizes = [16, 8], strides = [1, 1]} : vector<16x128xbf16> to vector<16x8xbf16>
    %283 = vector.shape_cast %282 : vector<16x8xbf16> to vector<2x8x8xbf16>
    %284 = vector.extract_strided_slice %223 {offsets = [0, 80], sizes = [16, 8], strides = [1, 1]} : vector<16x128xbf16> to vector<16x8xbf16>
    %285 = vector.shape_cast %284 : vector<16x8xbf16> to vector<2x8x8xbf16>
    "tpu.trace_start"() <{level = 10 : i32, message = "bqd,bkd->bqk"}> : () -> ()
    %cst_90 = arith.constant dense<0.000000e+00> : vector<2x8x8xf32>
    %286 = tpu.matmul %281, %283, %cst_90 {dimension_numbers = #tpu.dot_dimension_numbers<[2], [2], [1], [1], [0, 0, 0, 1, 1, 1], [0], [0]>} : vector<2x8x8xbf16>, vector<2x8x8xbf16>, vector<2x8x8xf32> -> vector<2x8x8xf32>
    "tpu.trace_stop"() : () -> ()
    %cst_91 = arith.constant 0.353553385 : f32
    %287 = vector.broadcast %cst_91 : f32 to vector<2x8x8xf32>
    %288 = arith.mulf %286, %287 : vector<2x8x8xf32>
    %289 = arith.addf %288, %23 : vector<2x8x8xf32>
    %cst_92 = arith.constant dense<0xFF800000> : vector<2x8xf32>
    %290 = vector.multi_reduction <maximumf>, %289, %cst_92 [2] : vector<2x8x8xf32> to vector<2x8xf32>
    %291 = vector.shape_cast %290 : vector<2x8xf32> to vector<2x8x1xf32>
    %292 = vector.broadcast %291 : vector<2x8x1xf32> to vector<2x8x8xf32>
    %293 = arith.subf %289, %292 : vector<2x8x8xf32>
    %294 = math.exp %293 : vector<2x8x8xf32>
    %cst_93 = arith.constant dense<0.000000e+00> : vector<2x8xf32>
    %295 = vector.multi_reduction <add>, %294, %cst_93 [2] : vector<2x8x8xf32> to vector<2x8xf32>
    %296 = vector.shape_cast %295 : vector<2x8xf32> to vector<2x8x1xf32>
    %297 = tpu.reciprocal %296 {approx = true} : vector<2x8x1xf32> -> vector<2x8x1xf32>
    %298 = vector.broadcast %297 : vector<2x8x1xf32> to vector<2x8x8xf32>
    %299 = arith.mulf %294, %298 : vector<2x8x8xf32>
    %300 = arith.truncf %299 : vector<2x8x8xf32> to vector<2x8x8xbf16>
    "tpu.trace_start"() <{level = 10 : i32, message = "bqk,bkd->bqd"}> : () -> ()
    %cst_94 = arith.constant dense<0.000000e+00> : vector<2x8x8xf32>
    %301 = tpu.matmul %300, %285, %cst_94 {dimension_numbers = #tpu.dot_dimension_numbers<[2], [1], [1], [2], [0, 0, 0, 1, 1, 2], [0], [0]>} : vector<2x8x8xbf16>, vector<2x8x8xbf16>, vector<2x8x8xf32> -> vector<2x8x8xf32>
    "tpu.trace_stop"() : () -> ()
    %302 = vector.shape_cast %301 : vector<2x8x8xf32> to vector<16x8xf32>
    %303 = arith.truncf %302 : vector<16x8xf32> to vector<16x8xbf16>
    %304 = vector.extract_strided_slice %225 {offsets = [16, 0], sizes = [8, 128], strides = [1, 1]} : vector<32x128xbf16> to vector<8x128xbf16>
    %cst_95 = arith.constant dense<0.000000e+00> : vector<16x128xf32>
    %305 = tpu.matmul %303, %304, %cst_95 {dimension_numbers = #tpu.dot_dimension_numbers<[1], [0], [0], [1], [0, 0, 1, 1], [], []>} : vector<16x8xbf16>, vector<8x128xbf16>, vector<16x128xf32> -> vector<16x128xf32>
    %306 = arith.addf %279, %305 : vector<16x128xf32>
    %307 = vector.extract_strided_slice %223 {offsets = [0, 24], sizes = [16, 8], strides = [1, 1]} : vector<16x128xbf16> to vector<16x8xbf16>
    %308 = vector.shape_cast %307 : vector<16x8xbf16> to vector<2x8x8xbf16>
    %309 = vector.extract_strided_slice %223 {offsets = [0, 56], sizes = [16, 8], strides = [1, 1]} : vector<16x128xbf16> to vector<16x8xbf16>
    %310 = vector.shape_cast %309 : vector<16x8xbf16> to vector<2x8x8xbf16>
    %311 = vector.extract_strided_slice %223 {offsets = [0, 88], sizes = [16, 8], strides = [1, 1]} : vector<16x128xbf16> to vector<16x8xbf16>
    %312 = vector.shape_cast %311 : vector<16x8xbf16> to vector<2x8x8xbf16>
    "tpu.trace_start"() <{level = 10 : i32, message = "bqd,bkd->bqk"}> : () -> ()
    %cst_96 = arith.constant dense<0.000000e+00> : vector<2x8x8xf32>
    %313 = tpu.matmul %308, %310, %cst_96 {dimension_numbers = #tpu.dot_dimension_numbers<[2], [2], [1], [1], [0, 0, 0, 1, 1, 1], [0], [0]>} : vector<2x8x8xbf16>, vector<2x8x8xbf16>, vector<2x8x8xf32> -> vector<2x8x8xf32>
    "tpu.trace_stop"() : () -> ()
    %cst_97 = arith.constant 0.353553385 : f32
    %314 = vector.broadcast %cst_97 : f32 to vector<2x8x8xf32>
    %315 = arith.mulf %313, %314 : vector<2x8x8xf32>
    %316 = arith.addf %315, %23 : vector<2x8x8xf32>
    %cst_98 = arith.constant dense<0xFF800000> : vector<2x8xf32>
    %317 = vector.multi_reduction <maximumf>, %316, %cst_98 [2] : vector<2x8x8xf32> to vector<2x8xf32>
    %318 = vector.shape_cast %317 : vector<2x8xf32> to vector<2x8x1xf32>
    %319 = vector.broadcast %318 : vector<2x8x1xf32> to vector<2x8x8xf32>
    %320 = arith.subf %316, %319 : vector<2x8x8xf32>
    %321 = math.exp %320 : vector<2x8x8xf32>
    %cst_99 = arith.constant dense<0.000000e+00> : vector<2x8xf32>
    %322 = vector.multi_reduction <add>, %321, %cst_99 [2] : vector<2x8x8xf32> to vector<2x8xf32>
    %323 = vector.shape_cast %322 : vector<2x8xf32> to vector<2x8x1xf32>
    %324 = tpu.reciprocal %323 {approx = true} : vector<2x8x1xf32> -> vector<2x8x1xf32>
    %325 = vector.broadcast %324 : vector<2x8x1xf32> to vector<2x8x8xf32>
    %326 = arith.mulf %321, %325 : vector<2x8x8xf32>
    %327 = arith.truncf %326 : vector<2x8x8xf32> to vector<2x8x8xbf16>
    "tpu.trace_start"() <{level = 10 : i32, message = "bqk,bkd->bqd"}> : () -> ()
    %cst_100 = arith.constant dense<0.000000e+00> : vector<2x8x8xf32>
    %328 = tpu.matmul %327, %312, %cst_100 {dimension_numbers = #tpu.dot_dimension_numbers<[2], [1], [1], [2], [0, 0, 0, 1, 1, 2], [0], [0]>} : vector<2x8x8xbf16>, vector<2x8x8xbf16>, vector<2x8x8xf32> -> vector<2x8x8xf32>
    "tpu.trace_stop"() : () -> ()
    %329 = vector.shape_cast %328 : vector<2x8x8xf32> to vector<16x8xf32>
    %330 = arith.truncf %329 : vector<16x8xf32> to vector<16x8xbf16>
    %331 = vector.extract_strided_slice %225 {offsets = [24, 0], sizes = [8, 128], strides = [1, 1]} : vector<32x128xbf16> to vector<8x128xbf16>
    %cst_101 = arith.constant dense<0.000000e+00> : vector<16x128xf32>
    %332 = tpu.matmul %330, %331, %cst_101 {dimension_numbers = #tpu.dot_dimension_numbers<[1], [0], [0], [1], [0, 0, 1, 1], [], []>} : vector<16x8xbf16>, vector<8x128xbf16>, vector<16x128xf32> -> vector<16x128xf32>
    %333 = arith.addf %306, %332 : vector<16x128xf32>
    %334 = vector.broadcast %226 : vector<1x128xf32> to vector<16x128xf32>
    %335 = arith.addf %333, %334 : vector<16x128xf32>
    %336 = vector.extract_strided_slice %335 {offsets = [0, 0], sizes = [16, 32], strides = [1, 1]} : vector<16x128xf32> to vector<16x32xf32>
    %337 = arith.addf %3, %336 : vector<16x32xf32>
    %c10 = arith.constant 10 : index
    %c0_102 = arith.constant 0 : index
    %338 = vector.load %arg4[%c10, %c0_102] : memref<22x128xf32, #tpu.memory_space<vmem>>, vector<1x128xf32>
    %339 = vector.extract_strided_slice %338 {offsets = [0, 0], sizes = [1, 32], strides = [1, 1]} : vector<1x128xf32> to vector<1x32xf32>
    %c11 = arith.constant 11 : index
    %c0_103 = arith.constant 0 : index
    %340 = vector.load %arg4[%c11, %c0_103] : memref<22x128xf32, #tpu.memory_space<vmem>>, vector<1x128xf32>
    %341 = vector.extract_strided_slice %340 {offsets = [0, 0], sizes = [1, 32], strides = [1, 1]} : vector<1x128xf32> to vector<1x32xf32>
    %cst_104 = arith.constant dense<0.000000e+00> : vector<16xf32>
    %342 = vector.multi_reduction <add>, %337, %cst_104 [1] : vector<16x32xf32> to vector<16xf32>
    %343 = vector.shape_cast %342 : vector<16xf32> to vector<16x1xf32>
    %cst_105 = arith.constant 3.200000e+01 : f32
    %344 = vector.broadcast %cst_105 : f32 to vector<16x1xf32>
    %345 = arith.divf %343, %344 : vector<16x1xf32>
    %346 = vector.broadcast %345 : vector<16x1xf32> to vector<16x32xf32>
    %347 = arith.subf %337, %346 : vector<16x32xf32>
    %348 = arith.mulf %347, %347 : vector<16x32xf32>
    %cst_106 = arith.constant dense<0.000000e+00> : vector<16xf32>
    %349 = vector.multi_reduction <add>, %348, %cst_106 [1] : vector<16x32xf32> to vector<16xf32>
    %350 = vector.shape_cast %349 : vector<16xf32> to vector<16x1xf32>
    %cst_107 = arith.constant 3.200000e+01 : f32
    %351 = vector.broadcast %cst_107 : f32 to vector<16x1xf32>
    %352 = arith.divf %350, %351 : vector<16x1xf32>
    %353 = vector.broadcast %345 : vector<16x1xf32> to vector<16x32xf32>
    %354 = arith.subf %337, %353 : vector<16x32xf32>
    %cst_108 = arith.constant 9.99999974E-6 : f32
    %355 = vector.broadcast %cst_108 : f32 to vector<16x1xf32>
    %356 = arith.addf %352, %355 : vector<16x1xf32>
    %357 = math.rsqrt %356 : vector<16x1xf32>
    %358 = vector.broadcast %357 : vector<16x1xf32> to vector<16x32xf32>
    %359 = arith.mulf %354, %358 : vector<16x32xf32>
    %360 = vector.broadcast %339 : vector<1x32xf32> to vector<16x32xf32>
    %361 = arith.mulf %359, %360 : vector<16x32xf32>
    %362 = vector.broadcast %341 : vector<1x32xf32> to vector<16x32xf32>
    %363 = arith.addf %361, %362 : vector<16x32xf32>
    %364 = arith.truncf %363 : vector<16x32xf32> to vector<16x32xbf16>
    %c6_109 = arith.constant 6 : index
    %c0_110 = arith.constant 0 : index
    %c0_111 = arith.constant 0 : index
    %365 = vector.load %arg3[%c6_109, %c0_110, %c0_111] : memref<12x32x128xbf16, #tpu.memory_space<vmem>>, vector<1x32x128xbf16>
    %366 = vector.shape_cast %365 : vector<1x32x128xbf16> to vector<32x128xbf16>
    %cst_112 = arith.constant dense<0.000000e+00> : vector<16x128xf32>
    %367 = tpu.matmul %364, %366, %cst_112 {dimension_numbers = #tpu.dot_dimension_numbers<[1], [0], [0], [1], [0, 0, 1, 1], [], []>} : vector<16x32xbf16>, vector<32x128xbf16>, vector<16x128xf32> -> vector<16x128xf32>
    %c12 = arith.constant 12 : index
    %c0_113 = arith.constant 0 : index
    %368 = vector.load %arg4[%c12, %c0_113] : memref<22x128xf32, #tpu.memory_space<vmem>>, vector<1x128xf32>
    %369 = vector.broadcast %368 : vector<1x128xf32> to vector<16x128xf32>
    %370 = arith.addf %367, %369 : vector<16x128xf32>
    %371 = arith.truncf %215 : vector<16x32xf32> to vector<16x32xbf16>
    %c7_114 = arith.constant 7 : index
    %c0_115 = arith.constant 0 : index
    %c0_116 = arith.constant 0 : index
    %372 = vector.load %arg3[%c7_114, %c0_115, %c0_116] : memref<12x32x128xbf16, #tpu.memory_space<vmem>>, vector<1x32x128xbf16>
    %373 = vector.shape_cast %372 : vector<1x32x128xbf16> to vector<32x128xbf16>
    %cst_117 = arith.constant dense<0.000000e+00> : vector<16x128xf32>
    %374 = tpu.matmul %371, %373, %cst_117 {dimension_numbers = #tpu.dot_dimension_numbers<[1], [0], [0], [1], [0, 0, 1, 1], [], []>} : vector<16x32xbf16>, vector<32x128xbf16>, vector<16x128xf32> -> vector<16x128xf32>
    %c13 = arith.constant 13 : index
    %c0_118 = arith.constant 0 : index
    %375 = vector.load %arg4[%c13, %c0_118] : memref<22x128xf32, #tpu.memory_space<vmem>>, vector<1x128xf32>
    %376 = vector.broadcast %375 : vector<1x128xf32> to vector<16x128xf32>
    %377 = arith.addf %374, %376 : vector<16x128xf32>
    %378 = arith.truncf %370 : vector<16x128xf32> to vector<16x128xbf16>
    %379 = arith.truncf %377 : vector<16x128xf32> to vector<16x128xbf16>
    %c8_119 = arith.constant 8 : index
    %c0_120 = arith.constant 0 : index
    %c0_121 = arith.constant 0 : index
    %380 = vector.load %arg3[%c8_119, %c0_120, %c0_121] : memref<12x32x128xbf16, #tpu.memory_space<vmem>>, vector<1x32x128xbf16>
    %381 = vector.shape_cast %380 : vector<1x32x128xbf16> to vector<32x128xbf16>
    %c14 = arith.constant 14 : index
    %c0_122 = arith.constant 0 : index
    %382 = vector.load %arg4[%c14, %c0_122] : memref<22x128xf32, #tpu.memory_space<vmem>>, vector<1x128xf32>
    %383 = vector.extract_strided_slice %378 {offsets = [0, 0], sizes = [16, 8], strides = [1, 1]} : vector<16x128xbf16> to vector<16x8xbf16>
    %384 = vector.shape_cast %383 : vector<16x8xbf16> to vector<2x8x8xbf16>
    %385 = vector.extract_strided_slice %379 {offsets = [0, 0], sizes = [16, 8], strides = [1, 1]} : vector<16x128xbf16> to vector<16x8xbf16>
    %386 = vector.shape_cast %385 : vector<16x8xbf16> to vector<2x8x8xbf16>
    %387 = vector.extract_strided_slice %379 {offsets = [0, 32], sizes = [16, 8], strides = [1, 1]} : vector<16x128xbf16> to vector<16x8xbf16>
    %388 = vector.shape_cast %387 : vector<16x8xbf16> to vector<2x8x8xbf16>
    "tpu.trace_start"() <{level = 10 : i32, message = "bqd,bkd->bqk"}> : () -> ()
    %cst_123 = arith.constant dense<0.000000e+00> : vector<2x8x8xf32>
    %389 = tpu.matmul %384, %386, %cst_123 {dimension_numbers = #tpu.dot_dimension_numbers<[2], [2], [1], [1], [0, 0, 0, 1, 1, 1], [0], [0]>} : vector<2x8x8xbf16>, vector<2x8x8xbf16>, vector<2x8x8xf32> -> vector<2x8x8xf32>
    "tpu.trace_stop"() : () -> ()
    %cst_124 = arith.constant 0.353553385 : f32
    %390 = vector.broadcast %cst_124 : f32 to vector<2x8x8xf32>
    %391 = arith.mulf %389, %390 : vector<2x8x8xf32>
    %392 = arith.addf %391, %14 : vector<2x8x8xf32>
    %cst_125 = arith.constant dense<0xFF800000> : vector<2x8xf32>
    %393 = vector.multi_reduction <maximumf>, %392, %cst_125 [2] : vector<2x8x8xf32> to vector<2x8xf32>
    %394 = vector.shape_cast %393 : vector<2x8xf32> to vector<2x8x1xf32>
    %395 = vector.broadcast %394 : vector<2x8x1xf32> to vector<2x8x8xf32>
    %396 = arith.subf %392, %395 : vector<2x8x8xf32>
    %397 = math.exp %396 : vector<2x8x8xf32>
    %cst_126 = arith.constant dense<0.000000e+00> : vector<2x8xf32>
    %398 = vector.multi_reduction <add>, %397, %cst_126 [2] : vector<2x8x8xf32> to vector<2x8xf32>
    %399 = vector.shape_cast %398 : vector<2x8xf32> to vector<2x8x1xf32>
    %400 = tpu.reciprocal %399 {approx = true} : vector<2x8x1xf32> -> vector<2x8x1xf32>
    %401 = vector.broadcast %400 : vector<2x8x1xf32> to vector<2x8x8xf32>
    %402 = arith.mulf %397, %401 : vector<2x8x8xf32>
    %403 = arith.truncf %402 : vector<2x8x8xf32> to vector<2x8x8xbf16>
    "tpu.trace_start"() <{level = 10 : i32, message = "bqk,bkd->bqd"}> : () -> ()
    %cst_127 = arith.constant dense<0.000000e+00> : vector<2x8x8xf32>
    %404 = tpu.matmul %403, %388, %cst_127 {dimension_numbers = #tpu.dot_dimension_numbers<[2], [1], [1], [2], [0, 0, 0, 1, 1, 2], [0], [0]>} : vector<2x8x8xbf16>, vector<2x8x8xbf16>, vector<2x8x8xf32> -> vector<2x8x8xf32>
    "tpu.trace_stop"() : () -> ()
    %405 = vector.shape_cast %404 : vector<2x8x8xf32> to vector<16x8xf32>
    %406 = arith.truncf %405 : vector<16x8xf32> to vector<16x8xbf16>
    %407 = vector.extract_strided_slice %381 {offsets = [0, 0], sizes = [8, 128], strides = [1, 1]} : vector<32x128xbf16> to vector<8x128xbf16>
    %cst_128 = arith.constant dense<0.000000e+00> : vector<16x128xf32>
    %408 = tpu.matmul %406, %407, %cst_128 {dimension_numbers = #tpu.dot_dimension_numbers<[1], [0], [0], [1], [0, 0, 1, 1], [], []>} : vector<16x8xbf16>, vector<8x128xbf16>, vector<16x128xf32> -> vector<16x128xf32>
    %409 = vector.extract_strided_slice %378 {offsets = [0, 8], sizes = [16, 8], strides = [1, 1]} : vector<16x128xbf16> to vector<16x8xbf16>
    %410 = vector.shape_cast %409 : vector<16x8xbf16> to vector<2x8x8xbf16>
    %411 = vector.extract_strided_slice %379 {offsets = [0, 8], sizes = [16, 8], strides = [1, 1]} : vector<16x128xbf16> to vector<16x8xbf16>
    %412 = vector.shape_cast %411 : vector<16x8xbf16> to vector<2x8x8xbf16>
    %413 = vector.extract_strided_slice %379 {offsets = [0, 40], sizes = [16, 8], strides = [1, 1]} : vector<16x128xbf16> to vector<16x8xbf16>
    %414 = vector.shape_cast %413 : vector<16x8xbf16> to vector<2x8x8xbf16>
    "tpu.trace_start"() <{level = 10 : i32, message = "bqd,bkd->bqk"}> : () -> ()
    %cst_129 = arith.constant dense<0.000000e+00> : vector<2x8x8xf32>
    %415 = tpu.matmul %410, %412, %cst_129 {dimension_numbers = #tpu.dot_dimension_numbers<[2], [2], [1], [1], [0, 0, 0, 1, 1, 1], [0], [0]>} : vector<2x8x8xbf16>, vector<2x8x8xbf16>, vector<2x8x8xf32> -> vector<2x8x8xf32>
    "tpu.trace_stop"() : () -> ()
    %cst_130 = arith.constant 0.353553385 : f32
    %416 = vector.broadcast %cst_130 : f32 to vector<2x8x8xf32>
    %417 = arith.mulf %415, %416 : vector<2x8x8xf32>
    %418 = arith.addf %417, %14 : vector<2x8x8xf32>
    %cst_131 = arith.constant dense<0xFF800000> : vector<2x8xf32>
    %419 = vector.multi_reduction <maximumf>, %418, %cst_131 [2] : vector<2x8x8xf32> to vector<2x8xf32>
    %420 = vector.shape_cast %419 : vector<2x8xf32> to vector<2x8x1xf32>
    %421 = vector.broadcast %420 : vector<2x8x1xf32> to vector<2x8x8xf32>
    %422 = arith.subf %418, %421 : vector<2x8x8xf32>
    %423 = math.exp %422 : vector<2x8x8xf32>
    %cst_132 = arith.constant dense<0.000000e+00> : vector<2x8xf32>
    %424 = vector.multi_reduction <add>, %423, %cst_132 [2] : vector<2x8x8xf32> to vector<2x8xf32>
    %425 = vector.shape_cast %424 : vector<2x8xf32> to vector<2x8x1xf32>
    %426 = tpu.reciprocal %425 {approx = true} : vector<2x8x1xf32> -> vector<2x8x1xf32>
    %427 = vector.broadcast %426 : vector<2x8x1xf32> to vector<2x8x8xf32>
    %428 = arith.mulf %423, %427 : vector<2x8x8xf32>
    %429 = arith.truncf %428 : vector<2x8x8xf32> to vector<2x8x8xbf16>
    "tpu.trace_start"() <{level = 10 : i32, message = "bqk,bkd->bqd"}> : () -> ()
    %cst_133 = arith.constant dense<0.000000e+00> : vector<2x8x8xf32>
    %430 = tpu.matmul %429, %414, %cst_133 {dimension_numbers = #tpu.dot_dimension_numbers<[2], [1], [1], [2], [0, 0, 0, 1, 1, 2], [0], [0]>} : vector<2x8x8xbf16>, vector<2x8x8xbf16>, vector<2x8x8xf32> -> vector<2x8x8xf32>
    "tpu.trace_stop"() : () -> ()
    %431 = vector.shape_cast %430 : vector<2x8x8xf32> to vector<16x8xf32>
    %432 = arith.truncf %431 : vector<16x8xf32> to vector<16x8xbf16>
    %433 = vector.extract_strided_slice %381 {offsets = [8, 0], sizes = [8, 128], strides = [1, 1]} : vector<32x128xbf16> to vector<8x128xbf16>
    %cst_134 = arith.constant dense<0.000000e+00> : vector<16x128xf32>
    %434 = tpu.matmul %432, %433, %cst_134 {dimension_numbers = #tpu.dot_dimension_numbers<[1], [0], [0], [1], [0, 0, 1, 1], [], []>} : vector<16x8xbf16>, vector<8x128xbf16>, vector<16x128xf32> -> vector<16x128xf32>
    %435 = arith.addf %408, %434 : vector<16x128xf32>
    %436 = vector.extract_strided_slice %378 {offsets = [0, 16], sizes = [16, 8], strides = [1, 1]} : vector<16x128xbf16> to vector<16x8xbf16>
    %437 = vector.shape_cast %436 : vector<16x8xbf16> to vector<2x8x8xbf16>
    %438 = vector.extract_strided_slice %379 {offsets = [0, 16], sizes = [16, 8], strides = [1, 1]} : vector<16x128xbf16> to vector<16x8xbf16>
    %439 = vector.shape_cast %438 : vector<16x8xbf16> to vector<2x8x8xbf16>
    %440 = vector.extract_strided_slice %379 {offsets = [0, 48], sizes = [16, 8], strides = [1, 1]} : vector<16x128xbf16> to vector<16x8xbf16>
    %441 = vector.shape_cast %440 : vector<16x8xbf16> to vector<2x8x8xbf16>
    "tpu.trace_start"() <{level = 10 : i32, message = "bqd,bkd->bqk"}> : () -> ()
    %cst_135 = arith.constant dense<0.000000e+00> : vector<2x8x8xf32>
    %442 = tpu.matmul %437, %439, %cst_135 {dimension_numbers = #tpu.dot_dimension_numbers<[2], [2], [1], [1], [0, 0, 0, 1, 1, 1], [0], [0]>} : vector<2x8x8xbf16>, vector<2x8x8xbf16>, vector<2x8x8xf32> -> vector<2x8x8xf32>
    "tpu.trace_stop"() : () -> ()
    %cst_136 = arith.constant 0.353553385 : f32
    %443 = vector.broadcast %cst_136 : f32 to vector<2x8x8xf32>
    %444 = arith.mulf %442, %443 : vector<2x8x8xf32>
    %445 = arith.addf %444, %14 : vector<2x8x8xf32>
    %cst_137 = arith.constant dense<0xFF800000> : vector<2x8xf32>
    %446 = vector.multi_reduction <maximumf>, %445, %cst_137 [2] : vector<2x8x8xf32> to vector<2x8xf32>
    %447 = vector.shape_cast %446 : vector<2x8xf32> to vector<2x8x1xf32>
    %448 = vector.broadcast %447 : vector<2x8x1xf32> to vector<2x8x8xf32>
    %449 = arith.subf %445, %448 : vector<2x8x8xf32>
    %450 = math.exp %449 : vector<2x8x8xf32>
    %cst_138 = arith.constant dense<0.000000e+00> : vector<2x8xf32>
    %451 = vector.multi_reduction <add>, %450, %cst_138 [2] : vector<2x8x8xf32> to vector<2x8xf32>
    %452 = vector.shape_cast %451 : vector<2x8xf32> to vector<2x8x1xf32>
    %453 = tpu.reciprocal %452 {approx = true} : vector<2x8x1xf32> -> vector<2x8x1xf32>
    %454 = vector.broadcast %453 : vector<2x8x1xf32> to vector<2x8x8xf32>
    %455 = arith.mulf %450, %454 : vector<2x8x8xf32>
    %456 = arith.truncf %455 : vector<2x8x8xf32> to vector<2x8x8xbf16>
    "tpu.trace_start"() <{level = 10 : i32, message = "bqk,bkd->bqd"}> : () -> ()
    %cst_139 = arith.constant dense<0.000000e+00> : vector<2x8x8xf32>
    %457 = tpu.matmul %456, %441, %cst_139 {dimension_numbers = #tpu.dot_dimension_numbers<[2], [1], [1], [2], [0, 0, 0, 1, 1, 2], [0], [0]>} : vector<2x8x8xbf16>, vector<2x8x8xbf16>, vector<2x8x8xf32> -> vector<2x8x8xf32>
    "tpu.trace_stop"() : () -> ()
    %458 = vector.shape_cast %457 : vector<2x8x8xf32> to vector<16x8xf32>
    %459 = arith.truncf %458 : vector<16x8xf32> to vector<16x8xbf16>
    %460 = vector.extract_strided_slice %381 {offsets = [16, 0], sizes = [8, 128], strides = [1, 1]} : vector<32x128xbf16> to vector<8x128xbf16>
    %cst_140 = arith.constant dense<0.000000e+00> : vector<16x128xf32>
    %461 = tpu.matmul %459, %460, %cst_140 {dimension_numbers = #tpu.dot_dimension_numbers<[1], [0], [0], [1], [0, 0, 1, 1], [], []>} : vector<16x8xbf16>, vector<8x128xbf16>, vector<16x128xf32> -> vector<16x128xf32>
    %462 = arith.addf %435, %461 : vector<16x128xf32>
    %463 = vector.extract_strided_slice %378 {offsets = [0, 24], sizes = [16, 8], strides = [1, 1]} : vector<16x128xbf16> to vector<16x8xbf16>
    %464 = vector.shape_cast %463 : vector<16x8xbf16> to vector<2x8x8xbf16>
    %465 = vector.extract_strided_slice %379 {offsets = [0, 24], sizes = [16, 8], strides = [1, 1]} : vector<16x128xbf16> to vector<16x8xbf16>
    %466 = vector.shape_cast %465 : vector<16x8xbf16> to vector<2x8x8xbf16>
    %467 = vector.extract_strided_slice %379 {offsets = [0, 56], sizes = [16, 8], strides = [1, 1]} : vector<16x128xbf16> to vector<16x8xbf16>
    %468 = vector.shape_cast %467 : vector<16x8xbf16> to vector<2x8x8xbf16>
    "tpu.trace_start"() <{level = 10 : i32, message = "bqd,bkd->bqk"}> : () -> ()
    %cst_141 = arith.constant dense<0.000000e+00> : vector<2x8x8xf32>
    %469 = tpu.matmul %464, %466, %cst_141 {dimension_numbers = #tpu.dot_dimension_numbers<[2], [2], [1], [1], [0, 0, 0, 1, 1, 1], [0], [0]>} : vector<2x8x8xbf16>, vector<2x8x8xbf16>, vector<2x8x8xf32> -> vector<2x8x8xf32>
    "tpu.trace_stop"() : () -> ()
    %cst_142 = arith.constant 0.353553385 : f32
    %470 = vector.broadcast %cst_142 : f32 to vector<2x8x8xf32>
    %471 = arith.mulf %469, %470 : vector<2x8x8xf32>
    %472 = arith.addf %471, %14 : vector<2x8x8xf32>
    %cst_143 = arith.constant dense<0xFF800000> : vector<2x8xf32>
    %473 = vector.multi_reduction <maximumf>, %472, %cst_143 [2] : vector<2x8x8xf32> to vector<2x8xf32>
    %474 = vector.shape_cast %473 : vector<2x8xf32> to vector<2x8x1xf32>
    %475 = vector.broadcast %474 : vector<2x8x1xf32> to vector<2x8x8xf32>
    %476 = arith.subf %472, %475 : vector<2x8x8xf32>
    %477 = math.exp %476 : vector<2x8x8xf32>
    %cst_144 = arith.constant dense<0.000000e+00> : vector<2x8xf32>
    %478 = vector.multi_reduction <add>, %477, %cst_144 [2] : vector<2x8x8xf32> to vector<2x8xf32>
    %479 = vector.shape_cast %478 : vector<2x8xf32> to vector<2x8x1xf32>
    %480 = tpu.reciprocal %479 {approx = true} : vector<2x8x1xf32> -> vector<2x8x1xf32>
    %481 = vector.broadcast %480 : vector<2x8x1xf32> to vector<2x8x8xf32>
    %482 = arith.mulf %477, %481 : vector<2x8x8xf32>
    %483 = arith.truncf %482 : vector<2x8x8xf32> to vector<2x8x8xbf16>
    "tpu.trace_start"() <{level = 10 : i32, message = "bqk,bkd->bqd"}> : () -> ()
    %cst_145 = arith.constant dense<0.000000e+00> : vector<2x8x8xf32>
    %484 = tpu.matmul %483, %468, %cst_145 {dimension_numbers = #tpu.dot_dimension_numbers<[2], [1], [1], [2], [0, 0, 0, 1, 1, 2], [0], [0]>} : vector<2x8x8xbf16>, vector<2x8x8xbf16>, vector<2x8x8xf32> -> vector<2x8x8xf32>
    "tpu.trace_stop"() : () -> ()
    %485 = vector.shape_cast %484 : vector<2x8x8xf32> to vector<16x8xf32>
    %486 = arith.truncf %485 : vector<16x8xf32> to vector<16x8xbf16>
    %487 = vector.extract_strided_slice %381 {offsets = [24, 0], sizes = [8, 128], strides = [1, 1]} : vector<32x128xbf16> to vector<8x128xbf16>
    %cst_146 = arith.constant dense<0.000000e+00> : vector<16x128xf32>
    %488 = tpu.matmul %486, %487, %cst_146 {dimension_numbers = #tpu.dot_dimension_numbers<[1], [0], [0], [1], [0, 0, 1, 1], [], []>} : vector<16x8xbf16>, vector<8x128xbf16>, vector<16x128xf32> -> vector<16x128xf32>
    %489 = arith.addf %462, %488 : vector<16x128xf32>
    %490 = vector.broadcast %382 : vector<1x128xf32> to vector<16x128xf32>
    %491 = arith.addf %489, %490 : vector<16x128xf32>
    %492 = vector.extract_strided_slice %491 {offsets = [0, 0], sizes = [16, 32], strides = [1, 1]} : vector<16x128xf32> to vector<16x32xf32>
    %493 = arith.addf %363, %492 : vector<16x32xf32>
    %c15 = arith.constant 15 : index
    %c0_147 = arith.constant 0 : index
    %494 = vector.load %arg4[%c15, %c0_147] : memref<22x128xf32, #tpu.memory_space<vmem>>, vector<1x128xf32>
    %495 = vector.extract_strided_slice %494 {offsets = [0, 0], sizes = [1, 32], strides = [1, 1]} : vector<1x128xf32> to vector<1x32xf32>
    %c16 = arith.constant 16 : index
    %c0_148 = arith.constant 0 : index
    %496 = vector.load %arg4[%c16, %c0_148] : memref<22x128xf32, #tpu.memory_space<vmem>>, vector<1x128xf32>
    %497 = vector.extract_strided_slice %496 {offsets = [0, 0], sizes = [1, 32], strides = [1, 1]} : vector<1x128xf32> to vector<1x32xf32>
    %cst_149 = arith.constant dense<0.000000e+00> : vector<16xf32>
    %498 = vector.multi_reduction <add>, %493, %cst_149 [1] : vector<16x32xf32> to vector<16xf32>
    %499 = vector.shape_cast %498 : vector<16xf32> to vector<16x1xf32>
    %cst_150 = arith.constant 3.200000e+01 : f32
    %500 = vector.broadcast %cst_150 : f32 to vector<16x1xf32>
    %501 = arith.divf %499, %500 : vector<16x1xf32>
    %502 = vector.broadcast %501 : vector<16x1xf32> to vector<16x32xf32>
    %503 = arith.subf %493, %502 : vector<16x32xf32>
    %504 = arith.mulf %503, %503 : vector<16x32xf32>
    %cst_151 = arith.constant dense<0.000000e+00> : vector<16xf32>
    %505 = vector.multi_reduction <add>, %504, %cst_151 [1] : vector<16x32xf32> to vector<16xf32>
    %506 = vector.shape_cast %505 : vector<16xf32> to vector<16x1xf32>
    %cst_152 = arith.constant 3.200000e+01 : f32
    %507 = vector.broadcast %cst_152 : f32 to vector<16x1xf32>
    %508 = arith.divf %506, %507 : vector<16x1xf32>
    %509 = vector.broadcast %501 : vector<16x1xf32> to vector<16x32xf32>
    %510 = arith.subf %493, %509 : vector<16x32xf32>
    %cst_153 = arith.constant 9.99999974E-6 : f32
    %511 = vector.broadcast %cst_153 : f32 to vector<16x1xf32>
    %512 = arith.addf %508, %511 : vector<16x1xf32>
    %513 = math.rsqrt %512 : vector<16x1xf32>
    %514 = vector.broadcast %513 : vector<16x1xf32> to vector<16x32xf32>
    %515 = arith.mulf %510, %514 : vector<16x32xf32>
    %516 = vector.broadcast %495 : vector<1x32xf32> to vector<16x32xf32>
    %517 = arith.mulf %515, %516 : vector<16x32xf32>
    %518 = vector.broadcast %497 : vector<1x32xf32> to vector<16x32xf32>
    %519 = arith.addf %517, %518 : vector<16x32xf32>
    %c9_154 = arith.constant 9 : index
    %c0_155 = arith.constant 0 : index
    %c0_156 = arith.constant 0 : index
    %520 = vector.load %arg3[%c9_154, %c0_155, %c0_156] : memref<12x32x128xbf16, #tpu.memory_space<vmem>>, vector<1x32x128xbf16>
    %521 = vector.shape_cast %520 : vector<1x32x128xbf16> to vector<32x128xbf16>
    %c10_157 = arith.constant 10 : index
    %c0_158 = arith.constant 0 : index
    %c0_159 = arith.constant 0 : index
    %522 = vector.load %arg3[%c10_157, %c0_158, %c0_159] : memref<12x32x128xbf16, #tpu.memory_space<vmem>>, vector<1x32x128xbf16>
    %523 = vector.shape_cast %522 : vector<1x32x128xbf16> to vector<32x128xbf16>
    %c17 = arith.constant 17 : index
    %c0_160 = arith.constant 0 : index
    %524 = vector.load %arg4[%c17, %c0_160] : memref<22x128xf32, #tpu.memory_space<vmem>>, vector<1x128xf32>
    %c18 = arith.constant 18 : index
    %c0_161 = arith.constant 0 : index
    %525 = vector.load %arg4[%c18, %c0_161] : memref<22x128xf32, #tpu.memory_space<vmem>>, vector<1x128xf32>
    %526 = arith.truncf %519 : vector<16x32xf32> to vector<16x32xbf16>
    %cst_162 = arith.constant dense<0.000000e+00> : vector<16x128xf32>
    %527 = tpu.matmul %526, %521, %cst_162 {dimension_numbers = #tpu.dot_dimension_numbers<[1], [0], [0], [1], [0, 0, 1, 1], [], []>} : vector<16x32xbf16>, vector<32x128xbf16>, vector<16x128xf32> -> vector<16x128xf32>
    %528 = vector.broadcast %524 : vector<1x128xf32> to vector<16x128xf32>
    %529 = arith.addf %527, %528 : vector<16x128xf32>
    %cst_163 = arith.constant 0.000000e+00 : f32
    %530 = vector.broadcast %cst_163 : f32 to vector<16x128xf32>
    %531 = arith.maximumf %529, %530 : vector<16x128xf32>
    %532 = arith.truncf %531 : vector<16x128xf32> to vector<16x128xbf16>
    %cst_164 = arith.constant dense<0.000000e+00> : vector<16x32xf32>
    %533 = tpu.matmul %532, %523, %cst_164 {dimension_numbers = #tpu.dot_dimension_numbers<[1], [1], [0], [0], [0, 0, 1, 0], [], []>} : vector<16x128xbf16>, vector<32x128xbf16>, vector<16x32xf32> -> vector<16x32xf32>
    %534 = vector.extract_strided_slice %525 {offsets = [0, 0], sizes = [1, 32], strides = [1, 1]} : vector<1x128xf32> to vector<1x32xf32>
    %535 = vector.broadcast %534 : vector<1x32xf32> to vector<16x32xf32>
    %536 = arith.addf %533, %535 : vector<16x32xf32>
    %537 = arith.addf %519, %536 : vector<16x32xf32>
    %c19 = arith.constant 19 : index
    %c0_165 = arith.constant 0 : index
    %538 = vector.load %arg4[%c19, %c0_165] : memref<22x128xf32, #tpu.memory_space<vmem>>, vector<1x128xf32>
    %539 = vector.extract_strided_slice %538 {offsets = [0, 0], sizes = [1, 32], strides = [1, 1]} : vector<1x128xf32> to vector<1x32xf32>
    %c20 = arith.constant 20 : index
    %c0_166 = arith.constant 0 : index
    %540 = vector.load %arg4[%c20, %c0_166] : memref<22x128xf32, #tpu.memory_space<vmem>>, vector<1x128xf32>
    %541 = vector.extract_strided_slice %540 {offsets = [0, 0], sizes = [1, 32], strides = [1, 1]} : vector<1x128xf32> to vector<1x32xf32>
    %cst_167 = arith.constant dense<0.000000e+00> : vector<16xf32>
    %542 = vector.multi_reduction <add>, %537, %cst_167 [1] : vector<16x32xf32> to vector<16xf32>
    %543 = vector.shape_cast %542 : vector<16xf32> to vector<16x1xf32>
    %cst_168 = arith.constant 3.200000e+01 : f32
    %544 = vector.broadcast %cst_168 : f32 to vector<16x1xf32>
    %545 = arith.divf %543, %544 : vector<16x1xf32>
    %546 = vector.broadcast %545 : vector<16x1xf32> to vector<16x32xf32>
    %547 = arith.subf %537, %546 : vector<16x32xf32>
    %548 = arith.mulf %547, %547 : vector<16x32xf32>
    %cst_169 = arith.constant dense<0.000000e+00> : vector<16xf32>
    %549 = vector.multi_reduction <add>, %548, %cst_169 [1] : vector<16x32xf32> to vector<16xf32>
    %550 = vector.shape_cast %549 : vector<16xf32> to vector<16x1xf32>
    %cst_170 = arith.constant 3.200000e+01 : f32
    %551 = vector.broadcast %cst_170 : f32 to vector<16x1xf32>
    %552 = arith.divf %550, %551 : vector<16x1xf32>
    %553 = vector.broadcast %545 : vector<16x1xf32> to vector<16x32xf32>
    %554 = arith.subf %537, %553 : vector<16x32xf32>
    %cst_171 = arith.constant 9.99999974E-6 : f32
    %555 = vector.broadcast %cst_171 : f32 to vector<16x1xf32>
    %556 = arith.addf %552, %555 : vector<16x1xf32>
    %557 = math.rsqrt %556 : vector<16x1xf32>
    %558 = vector.broadcast %557 : vector<16x1xf32> to vector<16x32xf32>
    %559 = arith.mulf %554, %558 : vector<16x32xf32>
    %560 = vector.broadcast %539 : vector<1x32xf32> to vector<16x32xf32>
    %561 = arith.mulf %559, %560 : vector<16x32xf32>
    %562 = vector.broadcast %541 : vector<1x32xf32> to vector<16x32xf32>
    %563 = arith.addf %561, %562 : vector<16x32xf32>
    %564 = arith.truncf %563 : vector<16x32xf32> to vector<16x32xbf16>
    %c11_172 = arith.constant 11 : index
    %c0_173 = arith.constant 0 : index
    %c0_174 = arith.constant 0 : index
    %565 = vector.load %arg3[%c11_172, %c0_173, %c0_174] : memref<12x32x128xbf16, #tpu.memory_space<vmem>>, vector<1x32x128xbf16>
    %566 = vector.shape_cast %565 : vector<1x32x128xbf16> to vector<32x128xbf16>
    %cst_175 = arith.constant dense<0.000000e+00> : vector<16x128xf32>
    %567 = tpu.matmul %564, %566, %cst_175 {dimension_numbers = #tpu.dot_dimension_numbers<[1], [0], [0], [1], [0, 0, 1, 1], [], []>} : vector<16x32xbf16>, vector<32x128xbf16>, vector<16x128xf32> -> vector<16x128xf32>
    %c21 = arith.constant 21 : index
    %c0_176 = arith.constant 0 : index
    %568 = vector.load %arg4[%c21, %c0_176] : memref<22x128xf32, #tpu.memory_space<vmem>>, vector<1x128xf32>
    %569 = vector.broadcast %568 : vector<1x128xf32> to vector<16x128xf32>
    %570 = arith.addf %567, %569 : vector<16x128xf32>
    %571 = vector.shape_cast %570 : vector<16x128xf32> to vector<2x8x128xf32>
    %c0_177 = arith.constant 0 : index
    %c0_178 = arith.constant 0 : index
    %c0_179 = arith.constant 0 : index
    %572 = vector.load %arg5[%c0_177, %c0_178, %c0_179] : memref<2x8x128xf32, #tpu.memory_space<vmem>>, vector<2x8x128xf32>
    tpu.vector_store %arg5[%c0_177, %c0_178, %c0_179], %571 {strides = array<i32>} : memref<2x8x128xf32, #tpu.memory_space<vmem>>, vector<2x8x128xf32>,
    return
  }
}

</mosaic_0001>

<bundles_post_ra>
// kernel: autoencoder_forward.1
= control target key start
LH: loop header
LB: loop body
LE: loop exit
PB: predicated region body
PF: predicated region fallthrough
CT: control target
= control target key end

     0   :  { %v5140_v1 = vmov 0.0   ;;  %vm5141_vm0 = vmmov 0   ;;  %vm90_vm1 = vcmask 261120   ;;  %s6079_s0 = inlined_call_operand.vmem [shape: f32[2,8,32], index: 0, kind: input, shape index: {}]   ;;  %s6080_s1 = inlined_call_operand.vmem [shape: f32[2,8,32], index: 1, kind: input, shape index: {}]   ;;  %s6081_s2 = inlined_call_operand.vmem [shape: f32[2,8], index: 2, kind: input, shape index: {}]   ;;  %s6082_s3 = inlined_call_operand.vmem [shape: bf16[12,32,128], index: 3, kind: input, shape index: {}]   ;;  %s6083_s4 = inlined_call_operand.vmem [shape: f32[22,128], index: 4, kind: input, shape index: {}]   ;;  %s6084_s5 = inlined_call_operand.hbm [shape: f32[2,8,128], index: 5, kind: output, shape index: {}]  }
   0x1   :  { %v4984_v0 = vld [vmem:[%s6082_s3 + $0x8] sm:$0xff]   ;;  %4534 = vmatprep.subr.bf16.mxu0 %v5140_v1  ;;  %4542 = vmatprep.subr.bf16.mxu1 %v5140_v1  ;;  %v4985_v2 = vld [vmem:[%s6082_s3] sm:$0xff]  }
   0x2   :  { %4535 = vmatpush3.bf16.msra.mxu0 %v4984_v0  ;;  %4538 = vmatprep.mubr.msk.bf16.mxu0 %vm5141_vm0, %v5140_v1  ;;  %v5201_v3 = vld [vmem:[%s6079_s0] sm:$0xff]  ;;  %v5206_v4 = vld [vmem:[%s6079_s0 + $0x8] sm:$0xff] }
   0x3   :  { %4536 = vmatprep.subr.bf16.mxu0 %v5140_v1  ;;  %4544 = vmatprep.mubr.msk.bf16.mxu1 %vm5141_vm0, %v5140_v1  ;;  %v68_v5 = vpack.c.bf16 %v5206_v4, %v5201_v3 }
   0x6   :  { %4537 = vmatpush3.bf16.msra.mxu0 %v4985_v2 }
   0x7   :  { %4548 = vmatprep.subr.bf16.mxu0 %v5140_v1 }
   0x9   :  { %4539 = vmatmul.mubr.msk.bf16.vlgmr.msra.gmra.mxu0 %vm90_vm1, %v68_v5 }
   0xa   :  { %4550 = vmatprep.mubr.msk.bf16.mxu0 %vm5141_vm0, %v5140_v1 }
   0xb   :  { %10 = vsyncpa [#allocation3], 0  ;;  %v4220_v6 = vld [vmem:[%s6083_s4] ss:$0 sm:$0xff]  ;;  %s5142_s27 = smov 96   ;;  %vm149_vm2 = vcmask 64512   ;;  %v33_v21 = vlaneseq }
   0xc   :  { %v5143_v19 = vmov 1966171168   ;;  %v26_v22 = vld [vmem:[%s6081_s2] sm:$0x3]  ;;  %s5144_s2 = smov 64   ;;  %s5145_s30 = smov 88  }
   0xd   :  { %v31_v20 = vunpack.c.l.s4 %v5143_v19  ;;  %v27_v23 = vsub.f32 1.0, %v26_v22  ;;  %v5244_v25 = vshrl.u32 %v33_v21, 7  ;;  %vm277_vm3 = vcmask 1043456   ;;  %s5146_s6 = smov 120   ;;  %s5147_s7 = smov 56  }
   0xe   :  { %s5148_s8 = smov 112   ;;  %s5149_s9 = smov 80  }
   0xf   :  { %v32_v24 = vunpack.c.0.s8 %v31_v20  ;;  %v28_v26 = vmul.f32 -1e+09, %v27_v23  ;;  %v54_v30 = vsub.s32 0, %v5244_v25  ;;  %s5150_s14 = smov 48   ;;  %s5151_s15 = smov 72  }
  0x10   :  { %s5152_s16 = smov 104   ;;  %s5153_s19 = smov 40  }
  0x11   :  { %v35_v27 = vsub.s32 %v32_v24, %v5244_v25  ;;  %s5155_s23 = smov [#allocation2]  }
  0x13   :  { %v36_v28 = vrot.slane %v28_v26, %v35_v27 }
  0x15   :  { %v44_v29 = vrot.slane %v36_v28, %v35_v27  ;;  %v37_v31 = vcombine.high %v36_v28, %v36_v28 }
  0x17   :  { %v5248_v32 = vrot.slane %v44_v29, %v54_v30  ;;  %v51_v33 = vrot.slane %v37_v31, %v35_v27 }
  0x19   :  { %v5251_v38 = vrot.slane %v51_v33, %v54_v30 }
  0xc9   :  { %v128_v7 = vpop.f32.mrf.mxu0 }
  0xca   :  { %v129_v8 = vadd.f32 %v4220_v6, %v128_v7 }
  0xcb   :  { %v4540_v9 = vpop.f32.mrf.mxu0 }
  0xcc   :  { %v5220_v10 = vpack.c.bf16 %v129_v8, %v129_v8 }
  0xcd   :  { %v131_v11 = vpop.f32.mrf.mxu0 }
  0xce   :  { %v132_v12 = vadd.f32 %v4220_v6, %v131_v11  ;;  %147 = vrot.lane.b32.xlu0 %v5220_v10, %s5142_s27 }
  0xcf   :  { %v4541_v13 = vpop.f32.mrf.mxu0 }
  0xd0   :  { %v5224_v14 = vpack.c.bf16 %v132_v12, %v132_v12 }
  0xd2   :  { %196 = vrot.lane.b32.xlu0 %v5224_v14, %s5142_s27 }
 0x140   :  { %v148_v15 = vpop.permute.xlu0 %147 }
 0x141   :  { %v154_v16 = vsel %vm149_vm2, %v148_v15, 0 }
 0x142   :  { %4543 = vmatpush3.bf16.xpose.msra.mxu1 %v154_v16 }
 0x143   :  { %4554 = vmatprep.subr.bf16.mxu1 %v5140_v1 }
 0x144   :  { %v197_v17 = vpop.permute.xlu0 %196 }
 0x145   :  { %v202_v18 = vsel %vm149_vm2, %v197_v17, 0 }
 0x146   :  { %4549 = vmatpush3.bf16.xpose.msra.mxu0 %v202_v18 }
 0x147   :  { %4560 = vmatprep.subr.bf16.mxu0 %v5140_v1 }
 0x149   :  { %4545 = vmatmul.mubr.msk.bf16.vlgmr.msra.gmra.mxu1 %vm149_vm2, %v5220_v10 }
 0x14a   :  { %4556 = vmatprep.mubr.msk.bf16.mxu1 %vm5141_vm0, %v5140_v1 }
 0x14d   :  { %4551 = vmatmul.mubr.msk.bf16.vlgmr.msra.gmra.mxu0 %vm149_vm2, %v5224_v14 }
 0x14e   :  { %4562 = vmatprep.mubr.msk.bf16.mxu0 %vm5141_vm0, %v5140_v1 }
 0x209   :  { %v190_v34 = vpop.f32.mrf.mxu1 }
 0x20a   :  { %v244_v35 = vmul.f32 0.35355338, %v190_v34 }
 0x20b   :  { %v4546_v36 = vpop.f32.mrf.mxu1 }
 0x20c   :  { %v246_v37 = vadd.f32 %v244_v35, %v5248_v32 }
 0x20d   :  { %v193_v39 = vpop.f32.mrf.mxu1  ;;  %v238_v40 = vpop.f32.mrf.mxu0 }
 0x20e   :  { %v245_v41 = vmul.f32 0.35355338, %v238_v40  ;;  %v248_v42 = vsel %vm149_vm2, %v246_v37, -inf }
 0x20f   :  { %249 = vmax.xlane.f32.xlu1 %v248_v42  ;;  %v4547_v43 = vpop.f32.mrf.mxu1  ;;  %v4552_v44 = vpop.f32.mrf.mxu0 }
 0x210   :  { %v247_v45 = vadd.f32 %v245_v41, %v5251_v38 }
 0x211   :  { %v241_v46 = vpop.f32.mrf.mxu0 }
 0x212   :  { %v251_v47 = vsel %vm149_vm2, %v247_v45, -inf }
 0x213   :  { %252 = vmax.xlane.f32.xlu1 %v251_v47  ;;  %v4553_v48 = vpop.f32.mrf.mxu0 }
 0x224   :  { %272 = vrot.lane.b32.xlu1 %v5220_v10, %s5144_s2 }
 0x228   :  { %321 = vrot.lane.b32.xlu1 %v5224_v14, %s5144_s2 }
 0x22c   :  { %372 = vrot.lane.b32.xlu1 %v5220_v10, %s5145_s30 }
 0x298   :  { %v250_v49 = vpop.xlane.xlu1 %249 }
 0x299   :  { %v254_v50 = vsub.f32 %v246_v37, %v250_v49 }
 0x29b   :  { %v256_v51 = vmul.f32 1.442695, %v254_v50 }
 0x29c   :  { %v253_v52 = vpop.xlane.xlu1 %252 }
 0x29d   :  { %5002 = vpow2.f32 %v256_v51  ;;  %v255_v53 = vsub.f32 %v247_v45, %v253_v52 }
 0x29f   :  { %v258_v54 = vmul.f32 1.442695, %v255_v53 }
 0x2a0   :  { %v273_v55 = vpop.permute.xlu1 %272 }
 0x2a1   :  { %5004 = vpow2.f32 %v258_v54  ;;  %v279_v56 = vsel %vm277_vm3, %v273_v55, 0 }
 0x2a2   :  { %4555 = vmatpush3.bf16.msra.mxu1 %v279_v56 }
 0x2a3   :  { %4566 = vmatprep.subr.bf16.mxu1 %v5140_v1 }
 0x2a4   :  { %v322_v57 = vpop.permute.xlu1 %321 }
 0x2a5   :  { %v327_v58 = vsel %vm277_vm3, %v322_v57, 0 }
 0x2a6   :  { %4561 = vmatpush3.bf16.msra.mxu0 %v327_v58 }
 0x2a7   :  { %4572 = vmatprep.subr.bf16.mxu0 %v5140_v1 }
 0x2a8   :  { %v373_v63 = vpop.permute.xlu1 %372 }
 0x2a9   :  { %v378_v9 = vsel %vm149_vm2, %v373_v63, 0 }
 0x2aa   :  { %v5003_v59 = vpop.eup %5002 }
 0x2ab   :  { %v260_v60 = vsel %vm149_vm2, %v5003_v59, 0.0 }
 0x2ac   :  { %261 = vadd.xlane.f32.xlu0 %v260_v60 }
 0x2ae   :  { %v5005_v61 = vpop.eup %5004 }
 0x2af   :  { %v263_v62 = vsel %vm149_vm2, %v5005_v61, 0.0 }
 0x2b0   :  { %264 = vadd.xlane.f32.xlu1 %v263_v62 }
 0x2c1   :  { %422 = vrot.lane.b32.xlu1 %v5224_v14, %s5145_s30 }
 0x2c2   :  { %370 = vrot.lane.b32.xlu0 %v5220_v10, %s5146_s6 }
 0x2c5   :  { %420 = vrot.lane.b32.xlu1 %v5224_v14, %s5146_s6 }
 0x335   :  { %v262_v0 = vpop.xlane.xlu0 %261 }
 0x336   :  { %5006 = vrcp.f32 %v262_v0 }
 0x339   :  { %v265_v2 = vpop.xlane.xlu1 %264  ;;  %v371_v16 = vpop.permute.xlu0 %370 }
 0x33a   :  { %5008 = vrcp.f32 %v265_v2  ;;  %v4224_v2 = vld [vmem:[%s6082_s3 + $0x10] sm:$0xf] }
 0x33d   :  { %v423_v12 = vpop.permute.xlu1 %422 }
 0x33e   :  { %v428_v15 = vsel %vm149_vm2, %v423_v12, 0 }
 0x341   :  { %v421_v17 = vpop.permute.xlu1 %420 }
 0x343   :  { %v5007_v5 = vpop.eup %5006 }
 0x344   :  { %v268_v6 = vmul.f32 %v5007_v5, %v5003_v59 }
 0x346   :  { %v270_v7 = vpack.c.bf16 %v268_v6, %v268_v6 }
 0x347   :  { %v5009_v8 = vpop.eup %5008 }
 0x348   :  { %4557 = vmatmul.mubr.msk.bf16.vlgmr.msra.gmra.mxu1 %vm149_vm2, %v270_v7  ;;  %v269_v11 = vmul.f32 %v5009_v8, %v5005_v61  ;;  %v646_v7 = vsel %vm277_vm3, %v4224_v2, 0 }
 0x349   :  { %4567 = vmatpush3.bf16.xpose.msra.mxu1 %v378_v9  ;;  %4568 = vmatprep.mubr.msk.bf16.mxu1 %vm5141_vm0, %v5140_v1 }
 0x34a   :  { %v271_v13 = vpack.c.bf16 %v269_v11, %v269_v11  ;;  %4578 = vmatprep.subr.bf16.mxu1 %v5140_v1 }
 0x34c   :  { %4563 = vmatmul.mubr.msk.bf16.vlgmr.msra.gmra.mxu0 %vm149_vm2, %v271_v13  ;;  %v4225_v13 = vld [vmem:[%s6082_s3 + $0x14] sm:$0xf] }
 0x34d   :  { %4573 = vmatpush3.bf16.xpose.msra.mxu0 %v428_v15  ;;  %4574 = vmatprep.mubr.msk.bf16.mxu0 %vm5141_vm0, %v5140_v1  ;;  %v599_v15 = vsel %vm277_vm3, %v4225_v13, 0 }
 0x34e   :  { %4584 = vmatprep.subr.bf16.mxu0 %v5140_v1 }
 0x350   :  { %4569 = vmatmul.mubr.msk.bf16.vlgmr.msra.gmra.mxu1 %vm149_vm2, %v371_v16 }
 0x351   :  { %4580 = vmatprep.mubr.msk.bf16.mxu1 %vm5141_vm0, %v5140_v1 }
 0x354   :  { %4575 = vmatmul.mubr.msk.bf16.vlgmr.msra.gmra.mxu0 %vm149_vm2, %v421_v17 }
 0x355   :  { %4586 = vmatprep.mubr.msk.bf16.mxu0 %vm5141_vm0, %v5140_v1 }
 0x408   :  { %v5290_v18 = vpop.f32.mrf.mxu1 }
 0x40a   :  { %v4558_v19 = vpop.f32.mrf.mxu1 }
 0x40c   :  { %v318_v20 = vpop.f32.mrf.mxu1  ;;  %v5292_v22 = vpop.f32.mrf.mxu0 }
 0x40d   :  { %v369_v23 = vpack.c.bf16 %v5292_v22, %v5290_v18 }
 0x40e   :  { %v4559_v24 = vpop.f32.mrf.mxu1  ;;  %v4564_v26 = vpop.f32.mrf.mxu0 }
 0x410   :  { %v366_v27 = vpop.f32.mrf.mxu0  ;;  %v414_v28 = vpop.f32.mrf.mxu1 }
 0x411   :  { %v470_v29 = vmul.f32 0.35355338, %v414_v28 }
 0x412   :  { %v4565_v30 = vpop.f32.mrf.mxu0  ;;  %v4570_v31 = vpop.f32.mrf.mxu1 }
 0x413   :  { %v472_v33 = vadd.f32 %v470_v29, %v5248_v32 }
 0x414   :  { %v417_v34 = vpop.f32.mrf.mxu1  ;;  %v464_v35 = vpop.f32.mrf.mxu0 }
 0x415   :  { %v471_v36 = vmul.f32 0.35355338, %v464_v35  ;;  %v474_v37 = vsel %vm149_vm2, %v472_v33, -inf }
 0x416   :  { %475 = vmax.xlane.f32.xlu1 %v474_v37  ;;  %v4571_v39 = vpop.f32.mrf.mxu1  ;;  %v4576_v40 = vpop.f32.mrf.mxu0 }
 0x417   :  { %v473_v41 = vadd.f32 %v471_v36, %v5251_v38 }
 0x418   :  { %v467_v42 = vpop.f32.mrf.mxu0 }
 0x419   :  { %v477_v43 = vsel %vm149_vm2, %v473_v41, -inf }
 0x41a   :  { %478 = vmax.xlane.f32.xlu0 %v477_v43  ;;  %v4577_v44 = vpop.f32.mrf.mxu0 }
 0x430   :  { %546 = vrot.lane.b32.xlu0 %v5224_v14, %s5147_s7 }
 0x434   :  { %689 = vrot.lane.b32.xlu0 %v5220_v10, %s5148_s8 }
 0x49f   :  { %v476_v45 = vpop.xlane.xlu1 %475 }
 0x4a0   :  { %v480_v46 = vsub.f32 %v472_v33, %v476_v45 }
 0x4a2   :  { %v482_v47 = vmul.f32 1.442695, %v480_v46 }
 0x4a3   :  { %v479_v48 = vpop.xlane.xlu0 %478 }
 0x4a4   :  { %5010 = vpow2.f32 %v482_v47  ;;  %v481_v49 = vsub.f32 %v473_v41, %v479_v48 }
 0x4a6   :  { %v484_v50 = vmul.f32 1.442695, %v481_v49 }
 0x4a7   :  { %v547_v51 = vpop.permute.xlu0 %546 }
 0x4a8   :  { %5012 = vpow2.f32 %v484_v50  ;;  %v552_v52 = vsel %vm277_vm3, %v547_v51, 0 }
 0x4a9   :  { %4585 = vmatpush3.bf16.msra.mxu0 %v552_v52 }
 0x4aa   :  { %4596 = vmatprep.subr.bf16.mxu0 %v5140_v1 }
 0x4ab   :  { %v690_v29 = vpop.permute.xlu0 %689 }
 0x4b1   :  { %v5011_v53 = vpop.eup %5010 }
 0x4b2   :  { %v486_v54 = vsel %vm149_vm2, %v5011_v53, 0.0 }
 0x4b3   :  { %487 = vadd.xlane.f32.xlu1 %v486_v54 }
 0x4b5   :  { %v5013_v55 = vpop.eup %5012 }
 0x4b6   :  { %v489_v56 = vsel %vm149_vm2, %v5013_v55, 0.0 }
 0x4b7   :  { %490 = vadd.xlane.f32.xlu1 %v489_v56 }
 0x4c8   :  { %498 = vrot.lane.b32.xlu1 %v5220_v10, %s5147_s7 }
 0x4cc   :  { %691 = vrot.lane.b32.xlu1 %v5220_v10, %s5149_s9 }
 0x4d0   :  { %741 = vrot.lane.b32.xlu1 %v5224_v14, %s5149_s9 }
 0x4d4   :  { %739 = vrot.lane.b32.xlu1 %v5224_v14, %s5148_s8 }
 0x53c   :  { %v488_v57 = vpop.xlane.xlu1 %487 }
 0x53d   :  { %5014 = vrcp.f32 %v488_v57 }
 0x540   :  { %v491_v58 = vpop.xlane.xlu1 %490 }
 0x541   :  { %5016 = vrcp.f32 %v491_v58 }
 0x544   :  { %v499_v59 = vpop.permute.xlu1 %498 }
 0x545   :  { %v504_v60 = vsel %vm277_vm3, %v499_v59, 0 }
 0x546   :  { %4579 = vmatpush3.bf16.msra.mxu1 %v504_v60 }
 0x547   :  { %4590 = vmatprep.subr.bf16.mxu1 %v5140_v1 }
 0x548   :  { %v692_v8 = vpop.permute.xlu1 %691 }
 0x549   :  { %v697_v24 = vsel %vm149_vm2, %v692_v8, 0 }
 0x54a   :  { %v5015_v61 = vpop.eup %5014 }
 0x54b   :  { %v494_v62 = vmul.f32 %v5015_v61, %v5011_v53 }
 0x54c   :  { %v742_v9 = vpop.permute.xlu1 %741 }
 0x54d   :  { %v496_v63 = vpack.c.bf16 %v494_v62, %v494_v62  ;;  %v747_v11 = vsel %vm149_vm2, %v742_v9, 0 }
 0x54e   :  { %v5017_v0 = vpop.eup %5016 }
 0x54f   :  { %4581 = vmatmul.mubr.msk.bf16.vlgmr.msra.gmra.mxu1 %vm149_vm2, %v496_v63  ;;  %v495_v5 = vmul.f32 %v5017_v0, %v5013_v55 }
 0x550   :  { %4592 = vmatprep.mubr.msk.bf16.mxu1 %vm5141_vm0, %v5140_v1  ;;  %v740_v12 = vpop.permute.xlu1 %739  ;;  %4591 = vmatpush3.bf16.msra.mxu1 %v599_v15 }
 0x551   :  { %v497_v6 = vpack.c.bf16 %v495_v5, %v495_v5  ;;  %4602 = vmatprep.subr.bf16.mxu1 %v5140_v1 }
 0x553   :  { %4587 = vmatmul.mubr.msk.bf16.vlgmr.msra.gmra.mxu0 %vm149_vm2, %v497_v6 }
 0x554   :  { %4597 = vmatpush3.bf16.msra.mxu0 %v646_v7  ;;  %4598 = vmatprep.mubr.msk.bf16.mxu0 %vm5141_vm0, %v5140_v1 }
 0x555   :  { %4608 = vmatprep.subr.bf16.mxu0 %v5140_v1 }
 0x55b   :  { %4599 = vmatmul.mubr.msk.bf16.vlgmr.msra.gmra.mxu0 %vm149_vm2, %v369_v23 }
 0x55c   :  { %4609 = vmatpush3.bf16.xpose.msra.mxu0 %v747_v11  ;;  %4610 = vmatprep.mubr.msk.bf16.mxu0 %vm5141_vm0, %v5140_v1 }
 0x55d   :  { %4620 = vmatprep.subr.bf16.mxu0 %v5140_v1 }
 0x563   :  { %4611 = vmatmul.mubr.msk.bf16.vlgmr.msra.gmra.mxu0 %vm149_vm2, %v740_v12 }
 0x564   :  { %4622 = vmatprep.mubr.msk.bf16.mxu0 %vm5141_vm0, %v5140_v1 }
 0x60f   :  { %v540_v16 = vpop.f32.mrf.mxu1 }
 0x611   :  { %v4582_v17 = vpop.f32.mrf.mxu1 }
 0x613   :  { %v543_v18 = vpop.f32.mrf.mxu1  ;;  %v588_v19 = vpop.f32.mrf.mxu0 }
 0x614   :  { %v594_v20 = vpack.c.bf16 %v588_v19, %v540_v16  ;;  %v4226_v19 = vld [vmem:[%s6082_s3 + $0x18] sm:$0xf] }
 0x615   :  { %v4583_v22 = vpop.f32.mrf.mxu1  ;;  %v4588_v23 = vpop.f32.mrf.mxu0 }
 0x616   :  { %4593 = vmatmul.mubr.msk.bf16.vlgmr.msra.gmra.mxu1 %vm149_vm2, %v594_v20  ;;  %v918_v20 = vsel %vm277_vm3, %v4226_v19, 0 }
 0x617   :  { %4603 = vmatpush3.bf16.xpose.msra.mxu1 %v697_v24  ;;  %v591_v26 = vpop.f32.mrf.mxu0  ;;  %4604 = vmatprep.mubr.msk.bf16.mxu1 %vm5141_vm0, %v5140_v1 }
 0x618   :  { %4614 = vmatprep.subr.bf16.mxu1 %v5140_v1 }
 0x619   :  { %v4589_v27 = vpop.f32.mrf.mxu0 }
 0x61b   :  { %v5350_v28 = vpop.f32.mrf.mxu0 }
 0x61d   :  { %v4600_v30 = vpop.f32.mrf.mxu0 }
 0x61e   :  { %4605 = vmatmul.mubr.msk.bf16.vlgmr.msra.gmra.mxu1 %vm149_vm2, %v690_v29 }
 0x61f   :  { %v5353_v31 = vpop.f32.mrf.mxu0  ;;  %4616 = vmatprep.mubr.msk.bf16.mxu1 %vm5141_vm0, %v5140_v1 }
 0x621   :  { %v4601_v33 = vpop.f32.mrf.mxu0 }
 0x623   :  { %v783_v34 = vpop.f32.mrf.mxu0 }
 0x624   :  { %v790_v35 = vmul.f32 0.35355338, %v783_v34 }
 0x625   :  { %v4612_v36 = vpop.f32.mrf.mxu0 }
 0x626   :  { %v792_v37 = vadd.f32 %v790_v35, %v5251_v38 }
 0x627   :  { %v786_v39 = vpop.f32.mrf.mxu0 }
 0x628   :  { %v796_v40 = vsel %vm149_vm2, %v792_v37, -inf }
 0x629   :  { %797 = vmax.xlane.f32.xlu1 %v796_v40  ;;  %v4613_v41 = vpop.f32.mrf.mxu0 }
 0x63a   :  { %817 = vrot.lane.b32.xlu1 %v5220_v10, %s5150_s14 }
 0x63e   :  { %965 = vrot.lane.b32.xlu1 %v5220_v10, %s5151_s15 }
 0x642   :  { %1015 = vrot.lane.b32.xlu1 %v5224_v14, %s5151_s15 }
 0x646   :  { %1013 = vrot.lane.b32.xlu1 %v5224_v14, %s5152_s16 }
 0x6b2   :  { %v798_v42 = vpop.xlane.xlu1 %797 }
 0x6b3   :  { %v800_v45 = vsub.f32 %v792_v37, %v798_v42 }
 0x6b5   :  { %v803_v46 = vmul.f32 1.442695, %v800_v45 }
 0x6b6   :  { %v818_v43 = vpop.permute.xlu1 %817 }
 0x6b7   :  { %v823_v44 = vsel %vm277_vm3, %v818_v43, 0  ;;  %5018 = vpow2.f32 %v803_v46 }
 0x6b8   :  { %4615 = vmatpush3.bf16.msra.mxu1 %v823_v44 }
 0x6b9   :  { %4626 = vmatprep.subr.bf16.mxu1 %v5140_v1 }
 0x6ba   :  { %v966_v11 = vpop.permute.xlu1 %965 }
 0x6bb   :  { %v971_v13 = vsel %vm149_vm2, %v966_v11, 0 }
 0x6be   :  { %v1016_v29 = vpop.permute.xlu1 %1015 }
 0x6bf   :  { %v1021_v40 = vsel %vm149_vm2, %v1016_v29, 0 }
 0x6c2   :  { %v1014_v45 = vpop.permute.xlu1 %1013 }
 0x6c4   :  { %v5019_v57 = vpop.eup %5018 }
 0x6c5   :  { %v808_v59 = vsel %vm149_vm2, %v5019_v57, 0.0 }
 0x6d6   :  { %v5369_v47 = vpop.f32.mrf.mxu1 }
 0x6d8   :  { %v4594_v48 = vpop.f32.mrf.mxu1 }
 0x6da   :  { %v5371_v49 = vpop.f32.mrf.mxu1 }
 0x6dc   :  { %v4595_v50 = vpop.f32.mrf.mxu1 }
 0x6de   :  { %v733_v51 = vpop.f32.mrf.mxu1 }
 0x6df   :  { %v789_v52 = vmul.f32 0.35355338, %v733_v51 }
 0x6e0   :  { %v4606_v53 = vpop.f32.mrf.mxu1 }
 0x6e1   :  { %v791_v54 = vadd.f32 %v789_v52, %v5248_v32  ;;  %v683_v53 = vadd.f32 %v5350_v28, %v5369_v47 }
 0x6e2   :  { %v736_v55 = vpop.f32.mrf.mxu1 }
 0x6e3   :  { %v793_v56 = vsel %vm149_vm2, %v791_v54, -inf }
 0x6e4   :  { %794 = vmax.xlane.f32.xlu0 %v793_v56  ;;  %v4607_v58 = vpop.f32.mrf.mxu1 }
 0x6e8   :  { %809 = vadd.xlane.f32.xlu0 %v808_v59 }
 0x76d   :  { %v795_v60 = vpop.xlane.xlu0 %794 }
 0x76e   :  { %v799_v61 = vsub.f32 %v791_v54, %v795_v60 }
 0x770   :  { %v801_v62 = vmul.f32 1.442695, %v799_v61 }
 0x771   :  { %v810_v2 = vpop.xlane.xlu0 %809 }
 0x772   :  { %5020 = vpow2.f32 %v801_v62 }
 0x773   :  { %5022 = vrcp.f32 %v810_v2 }
 0x77f   :  { %v5021_v63 = vpop.eup %5020 }
 0x780   :  { %v805_v0 = vsel %vm149_vm2, %v5021_v63, 0.0  ;;  %v5023_v5 = vpop.eup %5022 }
 0x781   :  { %806 = vadd.xlane.f32.xlu0 %v805_v0  ;;  %v814_v7 = vmul.f32 %v5023_v5, %v5019_v57  ;;  %v686_v57 = vadd.f32 %v5353_v31, %v5371_v49 }
 0x783   :  { %v816_v12 = vpack.c.bf16 %v814_v7, %v814_v7 }
 0x797   :  { %865 = vrot.lane.b32.xlu0 %v5224_v14, %s5150_s14 }
 0x79b   :  { %963 = vrot.lane.b32.xlu0 %v5220_v10, %s5152_s16 }
 0x80a   :  { %v807_v6 = vpop.xlane.xlu0 %806 }
 0x80b   :  { %5024 = vrcp.f32 %v807_v6 }
 0x80e   :  { %v866_v8 = vpop.permute.xlu0 %865 }
 0x80f   :  { %v871_v9 = vsel %vm277_vm3, %v866_v8, 0 }
 0x810   :  { %4621 = vmatpush3.bf16.msra.mxu0 %v871_v9 }
 0x811   :  { %4632 = vmatprep.subr.bf16.mxu0 %v5140_v1 }
 0x812   :  { %v964_v17 = vpop.permute.xlu0 %963 }
 0x813   :  { %4623 = vmatmul.mubr.msk.bf16.vlgmr.msra.gmra.mxu0 %vm149_vm2, %v816_v12 }
 0x814   :  { %4633 = vmatpush3.bf16.xpose.msra.mxu0 %v971_v13  ;;  %4634 = vmatprep.mubr.msk.bf16.mxu0 %vm5141_vm0, %v5140_v1 }
 0x815   :  { %4644 = vmatprep.subr.bf16.mxu0 %v5140_v1 }
 0x818   :  { %v5025_v15 = vpop.eup %5024 }
 0x819   :  { %v813_v16 = vmul.f32 %v5025_v15, %v5021_v63  ;;  %v4227_v15 = vld [vmem:[%s6082_s3 + $0x1c] sm:$0xf] }
 0x81b   :  { %4635 = vmatmul.mubr.msk.bf16.vlgmr.msra.gmra.mxu0 %vm149_vm2, %v964_v17  ;;  %v815_v18 = vpack.c.bf16 %v813_v16, %v813_v16  ;;  %v1192_v16 = vsel %vm277_vm3, %v4227_v15, 0  ;;  %v4988_v15 = vld [vmem:[%s6082_s3 + $0x48] sm:$0xff]  }
 0x81c   :  { %4646 = vmatprep.mubr.msk.bf16.mxu0 %vm5141_vm0, %v5140_v1 }
 0x81d   :  { %4617 = vmatmul.mubr.msk.bf16.vlgmr.msra.gmra.mxu1 %vm149_vm2, %v815_v18 }
 0x81e   :  { %4628 = vmatprep.mubr.msk.bf16.mxu1 %vm5141_vm0, %v5140_v1  ;;  %4627 = vmatpush3.bf16.msra.mxu1 %v918_v20 }
 0x81f   :  { %4638 = vmatprep.subr.bf16.mxu1 %v5140_v1 }
 0x8d3   :  { %v907_v22 = vpop.f32.mrf.mxu0 }
 0x8d5   :  { %v4624_v23 = vpop.f32.mrf.mxu0 }
 0x8d7   :  { %v910_v24 = vpop.f32.mrf.mxu0 }
 0x8d9   :  { %v4625_v26 = vpop.f32.mrf.mxu0 }
 0x8db   :  { %v1007_v27 = vpop.f32.mrf.mxu0 }
 0x8dc   :  { %v1063_v30 = vmul.f32 0.35355338, %v1007_v27 }
 0x8dd   :  { %v859_v33 = vpop.f32.mrf.mxu1  ;;  %v4636_v34 = vpop.f32.mrf.mxu0 }
 0x8de   :  { %v913_v35 = vpack.c.bf16 %v907_v22, %v859_v33  ;;  %v1065_v36 = vadd.f32 %v1063_v30, %v5248_v32 }
 0x8df   :  { %v4618_v37 = vpop.f32.mrf.mxu1  ;;  %v1010_v39 = vpop.f32.mrf.mxu0 }
 0x8e0   :  { %4629 = vmatmul.mubr.msk.bf16.vlgmr.msra.gmra.mxu1 %vm149_vm2, %v913_v35  ;;  %v1067_v41 = vsel %vm149_vm2, %v1065_v36, -inf }
 0x8e1   :  { %4639 = vmatpush3.bf16.xpose.msra.mxu1 %v1021_v40  ;;  %v862_v42 = vpop.f32.mrf.mxu1  ;;  %1068 = vmax.xlane.f32.xlu0 %v1067_v41  ;;  %v4637_v43 = vpop.f32.mrf.mxu0 }
 0x8e2   :  { %4640 = vmatprep.mubr.msk.bf16.mxu1 %vm5141_vm0, %v5140_v1  ;;  %4650 = vmatprep.subr.bf16.mxu1 %v5140_v1 }
 0x8e3   :  { %v4619_v44 = vpop.f32.mrf.mxu1 }
 0x8e8   :  { %4641 = vmatmul.mubr.msk.bf16.vlgmr.msra.gmra.mxu1 %vm149_vm2, %v1014_v45 }
 0x8e9   :  { %4652 = vmatprep.mubr.msk.bf16.mxu1 %vm5141_vm0, %v5140_v1 }
 0x96a   :  { %v1069_v46 = vpop.xlane.xlu0 %1068 }
 0x96b   :  { %v1073_v48 = vsub.f32 %v1065_v36, %v1069_v46  ;;  %v4250_v36 = vld [vmem:[%s6083_s4 + $0x1] ss:$0 sm:$0xff] }
 0x96d   :  { %v1075_v50 = vmul.f32 1.442695, %v1073_v48 }
 0x96f   :  { %5026 = vpow2.f32 %v1075_v50 }
 0x97c   :  { %v5027_v51 = vpop.eup %5026 }
 0x97d   :  { %v1079_v52 = vsel %vm149_vm2, %v5027_v51, 0.0 }
 0x97e   :  { %1080 = vadd.xlane.f32.xlu0 %v1079_v52 }
 0x9a0   :  { %v954_v54 = vpop.f32.mrf.mxu1 }
 0x9a1   :  { %v5412_v55 = vadd.f32 %v954_v54, %v683_v53 }
 0x9a2   :  { %v4630_v56 = vpop.f32.mrf.mxu1 }
 0x9a4   :  { %v957_v58 = vpop.f32.mrf.mxu1 }
 0x9a5   :  { %v5416_v59 = vadd.f32 %v957_v58, %v686_v57 }
 0x9a6   :  { %v4631_v60 = vpop.f32.mrf.mxu1 }
 0x9a8   :  { %v1057_v61 = vpop.f32.mrf.mxu1 }
 0x9a9   :  { %v1064_v62 = vmul.f32 0.35355338, %v1057_v61  ;;  %v4987_v61 = vld [vmem:[%s6082_s3 + $0x20] sm:$0xff]  }
 0x9aa   :  { %v4642_v63 = vpop.f32.mrf.mxu1 }
 0x9ab   :  { %v1066_v0 = vadd.f32 %v1064_v62, %v5251_v38  ;;  %v4990_v62 = vld [vmem:[%s6082_s3 + $0x38] sm:$0xff]  }
 0x9ac   :  { %v1060_v2 = vpop.f32.mrf.mxu1 }
 0x9ad   :  { %v1070_v5 = vsel %vm149_vm2, %v1066_v0, -inf }
 0x9ae   :  { %1071 = vmax.xlane.f32.xlu1 %v1070_v5  ;;  %v4643_v28 = vpop.f32.mrf.mxu1 }
 0x9bf   :  { %1091 = vrot.lane.b32.xlu1 %v5220_v10, %s5153_s19 }
 0xa07   :  { %v1081_v47 = vpop.xlane.xlu0 %1080 }
 0xa08   :  { %5028 = vrcp.f32 %v1081_v47 }
 0xa15   :  { %v5029_v31 = vpop.eup %5028 }
 0xa16   :  { %v1087_v8 = vmul.f32 %v5029_v31, %v5027_v51 }
 0xa18   :  { %v1089_v12 = vpack.c.bf16 %v1087_v8, %v1087_v8 }
 0xa37   :  { %v1072_v49 = vpop.xlane.xlu1 %1071 }
 0xa38   :  { %v1074_v6 = vsub.f32 %v1066_v0, %v1072_v49 }
 0xa3a   :  { %v1077_v7 = vmul.f32 1.442695, %v1074_v6  ;;  %v4251_v6 = vld [vmem:[%s6083_s4 + $0x2] ss:$0 sm:$0xff] }
 0xa3b   :  { %v1092_v9 = vpop.permute.xlu1 %1091 }
 0xa3c   :  { %5030 = vpow2.f32 %v1077_v7  ;;  %v1097_v11 = vsel %vm277_vm3, %v1092_v9, 0 }
 0xa3d   :  { %4645 = vmatpush3.bf16.msra.mxu0 %v1097_v11  ;;  %v4252_v11 = vld [vmem:[%s6083_s4 + $0x3] ss:$0 sm:$0xff] }
 0xa3e   :  { %4656 = vmatprep.subr.bf16.mxu0 %v5140_v1 }
 0xa40   :  { %4647 = vmatmul.mubr.msk.bf16.vlgmr.msra.gmra.mxu0 %vm149_vm2, %v1089_v12 }
 0xa41   :  { %4658 = vmatprep.mubr.msk.bf16.mxu0 %vm5141_vm0, %v5140_v1  ;;  %4657 = vmatpush3.bf16.msra.mxu0 %v1192_v16 }
 0xa42   :  { %4670 = vmatprep.subr.bf16.mxu0 %v5140_v1 }
 0xa49   :  { %v5031_v10 = vpop.eup %5030 }
 0xa4a   :  { %v1082_v13 = vsel %vm149_vm2, %v5031_v10, 0.0 }
 0xa4b   :  { %1083 = vadd.xlane.f32.xlu0 %v1082_v13 }
 0xa61   :  { %1139 = vrot.lane.b32.xlu0 %v5224_v14, %s5153_s19 }
 0xad4   :  { %v1084_v17 = vpop.xlane.xlu0 %1083 }
 0xad5   :  { %5032 = vrcp.f32 %v1084_v17  ;;  %v4989_v17 = vld [vmem:[%s6082_s3 + $0x40] sm:$0xff]  }
 0xad8   :  { %v1140_v18 = vpop.permute.xlu0 %1139 }
 0xad9   :  { %v1145_v19 = vsel %vm277_vm3, %v1140_v18, 0  ;;  %v5490_v18 = vld [vmem:[%s6080_s1] sm:$0xff] }
 0xada   :  { %4651 = vmatpush3.bf16.msra.mxu1 %v1145_v19  ;;  %v5495_v19 = vld [vmem:[%s6080_s1 + $0x8] sm:$0xff] }
 0xadb   :  { %4662 = vmatprep.subr.bf16.mxu1 %v5140_v1 }
 0xae2   :  { %v5033_v20 = vpop.eup %5032 }
 0xae3   :  { %v1088_v22 = vmul.f32 %v5033_v20, %v5031_v10  ;;  %v1461_v20 = vpack.c.bf16 %v5495_v19, %v5490_v18 }
 0xae5   :  { %v1090_v14 = vpack.c.bf16 %v1088_v22, %v1088_v22  ;;  %v4991_v22 = vld [vmem:[%s6082_s3 + $0x30] sm:$0xff]  }
 0xae7   :  { %4653 = vmatmul.mubr.msk.bf16.vlgmr.msra.gmra.mxu1 %vm149_vm2, %v1090_v14  ;;  %v4261_v14 = vld [vmem:[%s6083_s4 + $0x4] ss:$0 sm:$0xff] }
 0xae8   :  { %4666 = vmatprep.mubr.msk.bf16.mxu1 %vm5141_vm0, %v5140_v1 }
 0xb00   :  { %v1133_v23 = vpop.f32.mrf.mxu0 }
 0xb02   :  { %v4648_v24 = vpop.f32.mrf.mxu0 }
 0xb04   :  { %v1136_v26 = vpop.f32.mrf.mxu0 }
 0xb06   :  { %v4649_v27 = vpop.f32.mrf.mxu0 }
 0xba7   :  { %v1181_v29 = vpop.f32.mrf.mxu1 }
 0xba8   :  { %v1187_v30 = vpack.c.bf16 %v1181_v29, %v1133_v23 }
 0xba9   :  { %v4654_v33 = vpop.f32.mrf.mxu1 }
 0xbaa   :  { %4659 = vmatmul.mubr.msk.bf16.vlgmr.msra.gmra.mxu0 %vm149_vm2, %v1187_v30  ;;  %v4274_v33 = vld [vmem:[%s6083_s4 + $0x8] ss:$0 sm:$0xff] }
 0xbab   :  { %v1184_v34 = vpop.f32.mrf.mxu1  ;;  %4674 = vmatprep.mubr.msk.bf16.mxu0 %vm5141_vm0, %v5140_v1  ;;  %4671 = vmatpush3.bf16.xpose.msra.mxu0 %v4990_v62 }
 0xbac   :  { %4672 = vmatprep.subr.bf16.mxu0 %v5140_v1 }
 0xbad   :  { %v4655_v35 = vpop.f32.mrf.mxu1 }
 0xbb3   :  { %4673 = vmatpush3.bf16.xpose.msra.mxu0 %v4991_v22 }
 0xbb4   :  { %4692 = vmatprep.subr.bf16.mxu0 %v5140_v1 }
 0xc6a   :  { %v1228_v37 = vpop.f32.mrf.mxu0 }
 0xc6b   :  { %v1235_v39 = vadd.f32 %v1228_v37, %v5412_v55 }
 0xc6c   :  { %v4660_v40 = vpop.f32.mrf.mxu0 }
 0xc6d   :  { %v1241_v41 = vadd.f32 %v4250_v36, %v1235_v39 }
 0xc6e   :  { %v1231_v42 = vpop.f32.mrf.mxu0 }
 0xc6f   :  { %v1236_v43 = vadd.f32 %v1231_v42, %v5416_v59  ;;  %v1243_v44 = vadd.f32 %v1241_v41, %v5201_v3 }
 0xc70   :  { %v4661_v45 = vpop.f32.mrf.mxu0 }
 0xc71   :  { %v1242_v46 = vadd.f32 %v4250_v36, %v1236_v43  ;;  %v1247_v48 = vsel %vm90_vm1, %v1243_v44, 0.0 }
 0xc72   :  { %1248 = vadd.xlane.f32.xlu1 %v1247_v48 }
 0xc73   :  { %v1244_v50 = vadd.f32 %v1242_v46, %v5206_v4  ;;  %v4986_v4 = vld [vmem:[%s6082_s3 + $0x28] sm:$0xff]  }
 0xc74   :  { %4663 = vmatpush3.bf16.msra.mxu1 %v4986_v4 }
 0xc75   :  { %v1250_v51 = vsel %vm90_vm1, %v1244_v50, 0.0  ;;  %4664 = vmatprep.subr.bf16.mxu1 %v5140_v1 }
 0xc76   :  { %1251 = vadd.xlane.f32.xlu0 %v1250_v51 }
 0xc78   :  { %4665 = vmatpush3.bf16.msra.mxu1 %v4987_v61 }
 0xc79   :  { %4678 = vmatprep.subr.bf16.mxu1 %v5140_v1 }
 0xcfb   :  { %v1249_v52 = vpop.xlane.xlu1 %1248 }
 0xcfc   :  { %v1254_v53 = vmul.f32 0.03125, %v1249_v52 }
 0xcfe   :  { %v1256_v54 = vsub.f32 %v1243_v44, %v1254_v53 }
 0xcff   :  { %v1252_v55 = vpop.xlane.xlu0 %1251 }
 0xd00   :  { %v1255_v56 = vmul.f32 0.03125, %v1252_v55  ;;  %v1258_v57 = vmul.f32 %v1256_v54, %v1256_v54 }
 0xd02   :  { %v1257_v58 = vsub.f32 %v1244_v50, %v1255_v56  ;;  %v1260_v59 = vsel %vm90_vm1, %v1258_v57, 0.0 }
 0xd03   :  { %1261 = vadd.xlane.f32.xlu1 %v1260_v59 }
 0xd04   :  { %v1259_v3 = vmul.f32 %v1257_v58, %v1257_v58 }
 0xd06   :  { %v1263_v60 = vsel %vm90_vm1, %v1259_v3, 0.0  ;;  %v5154_v3 = vmov -1e+09  }
 0xd07   :  { %1264 = vadd.xlane.f32.xlu0 %v1263_v60 }
 0xd8c   :  { %v1262_v63 = vpop.xlane.xlu1 %1261 }
 0xd8d   :  { %v1266_v0 = vmul.f32 0.03125, %v1262_v63 }
 0xd8f   :  { %v1268_v2 = vadd.f32 1e-05, %v1266_v0 }
 0xd90   :  { %v1265_v5 = vpop.xlane.xlu0 %1264 }
 0xd91   :  { %5034 = vrsqrt.f32 %v1268_v2  ;;  %v1267_v28 = vmul.f32 0.03125, %v1265_v5 }
 0xd93   :  { %v1269_v47 = vadd.f32 1e-05, %v1267_v28 }
 0xd95   :  { %5036 = vrsqrt.f32 %v1269_v47 }
 0xd9e   :  { %v5035_v31 = vpop.eup %5034 }
 0xd9f   :  { %v1272_v49 = vmul.f32 %v5035_v31, %v1256_v54  ;;  %v5541_v54 = vld [vmem:[%s6083_s4 + $0x5] ss:$0 sm:$0xff] }
 0xda1   :  { %v1278_v9 = vmul.f32 %v4251_v6, %v1272_v49 }
 0xda2   :  { %v5037_v7 = vpop.eup %5036 }
 0xda3   :  { %v1273_v8 = vmul.f32 %v5037_v7, %v1257_v58  ;;  %v5472_v10 = vadd.f32 %v4252_v11, %v1278_v9  ;;  %v65_v58 = vand.u32 127, %v33_v21 }
 0xda5   :  { %v1279_v12 = vmul.f32 %v4251_v6, %v1273_v8  ;;  %vm66_vm4 = vcmp.le.s32.totalorder %v65_v58, %v5244_v25 }
 0xda6   :  { %v5548_v60 = vsel %vm66_vm4, 0.0, %v5154_v3 }
 0xda7   :  { %v5474_v13 = vadd.f32 %v4252_v11, %v1279_v12 }
 0xda9   :  { %v1298_v16 = vpack.c.bf16 %v5474_v13, %v5472_v10 }
 0xdab   :  { %4667 = vmatmul.mubr.msk.bf16.vlgmr.msra.gmra.mxu1 %vm90_vm1, %v1298_v16 }
 0xdac   :  { %4679 = vmatpush3.bf16.msra.mxu1 %v4988_v15  ;;  %4682 = vmatprep.mubr.msk.bf16.mxu1 %vm5141_vm0, %v5140_v1 }
 0xdad   :  { %4680 = vmatprep.subr.bf16.mxu1 %v5140_v1 }
 0xdb0   :  { %4681 = vmatpush3.bf16.msra.mxu1 %v4989_v17 }
 0xdb1   :  { %4686 = vmatprep.subr.bf16.mxu1 %v5140_v1 }
 0xdb3   :  { %4683 = vmatmul.mubr.msk.bf16.vlgmr.msra.gmra.mxu1 %vm90_vm1, %v1461_v20 }
 0xdb4   :  { %4688 = vmatprep.mubr.msk.bf16.mxu1 %vm5141_vm0, %v5140_v1 }
 0xe6b   :  { %v1352_v23 = vpop.f32.mrf.mxu1 }
 0xe6c   :  { %v1353_v26 = vadd.f32 %v4261_v14, %v1352_v23 }
 0xe6d   :  { %v4668_v24 = vpop.f32.mrf.mxu1 }
 0xe6e   :  { %v1359_v34 = vmax.f32 %v1353_v26, 0.0 }
 0xe6f   :  { %v1355_v27 = vpop.f32.mrf.mxu1 }
 0xe70   :  { %v1356_v29 = vadd.f32 %v4261_v14, %v1355_v27 }
 0xe71   :  { %v4669_v30 = vpop.f32.mrf.mxu1 }
 0xe72   :  { %v1360_v35 = vmax.f32 %v1356_v29, 0.0 }
 0xe73   :  { %v1521_v36 = vpop.f32.mrf.mxu1 }
 0xe74   :  { %v1361_v37 = vpack.c.bf16 %v1360_v35, %v1359_v34  ;;  %v1522_v39 = vadd.f32 %v4274_v33, %v1521_v36 }
 0xe75   :  { %v4684_v40 = vpop.f32.mrf.mxu1 }
 0xe76   :  { %v5514_v41 = vpack.c.bf16 %v1522_v39, %v1522_v39  ;;  %4675 = vmatmul.mubr.bf16.vlgmr.msra.gmra.mxu0 %v1361_v37 }
 0xe77   :  { %v1524_v42 = vpop.f32.mrf.mxu1  ;;  %4694 = vmatprep.mubr.msk.bf16.mxu0 %vm5141_vm0, %v5140_v1 }
 0xe78   :  { %v1525_v43 = vadd.f32 %v4274_v33, %v1524_v42  ;;  %1540 = vrot.lane.b32.xlu1 %v5514_v41, %s5142_s27 }
 0xe79   :  { %v4685_v44 = vpop.f32.mrf.mxu1 }
 0xe7a   :  { %v5520_v45 = vpack.c.bf16 %v1525_v43, %v1525_v43 }
 0xe7c   :  { %1588 = vrot.lane.b32.xlu0 %v5520_v45, %s5142_s27 }
 0xeea   :  { %v1541_v46 = vpop.permute.xlu1 %1540 }
 0xeeb   :  { %v1546_v48 = vsel %vm149_vm2, %v1541_v46, 0 }
 0xeec   :  { %4687 = vmatpush3.bf16.xpose.msra.mxu1 %v1546_v48 }
 0xeed   :  { %4698 = vmatprep.subr.bf16.mxu1 %v5140_v1 }
 0xeee   :  { %v1589_v50 = vpop.permute.xlu0 %1588 }
 0xeef   :  { %v1594_v51 = vsel %vm149_vm2, %v1589_v50, 0 }
 0xef0   :  { %4693 = vmatpush3.bf16.xpose.msra.mxu0 %v1594_v51 }
 0xef1   :  { %4704 = vmatprep.subr.bf16.mxu0 %v5140_v1 }
 0xef3   :  { %4689 = vmatmul.mubr.msk.bf16.vlgmr.msra.gmra.mxu1 %vm149_vm2, %v5514_v41 }
 0xef4   :  { %4700 = vmatprep.mubr.msk.bf16.mxu1 %vm5141_vm0, %v5140_v1 }
 0xef7   :  { %4695 = vmatmul.mubr.msk.bf16.vlgmr.msra.gmra.mxu0 %vm149_vm2, %v5520_v45 }
 0xef8   :  { %4706 = vmatprep.mubr.msk.bf16.mxu0 %vm5141_vm0, %v5140_v1 }
 0xf36   :  { %v5536_v52 = vpop.f32.mrf.mxu0 }
 0xf38   :  { %v4676_v53 = vpop.f32.mrf.mxu0 }
 0xf3a   :  { %v1415_v55 = vpop.f32.mrf.mxu0 }
 0xf3b   :  { %v5544_v56 = vadd.f32 %v5541_v54, %v1415_v55 }
 0xf3c   :  { %v4677_v57 = vpop.f32.mrf.mxu0 }
 0xfb3   :  { %v1582_v59 = vpop.f32.mrf.mxu1 }
 0xfb4   :  { %v1636_v4 = vmul.f32 0.35355338, %v1582_v59 }
 0xfb5   :  { %v4690_v61 = vpop.f32.mrf.mxu1 }
 0xfb6   :  { %v1638_v62 = vadd.f32 %v1636_v4, %v5548_v60 }
 0xfb7   :  { %v1585_v63 = vpop.f32.mrf.mxu1  ;;  %v1630_v0 = vpop.f32.mrf.mxu0 }
 0xfb8   :  { %v1637_v2 = vmul.f32 0.35355338, %v1630_v0  ;;  %v1640_v5 = vsel %vm149_vm2, %v1638_v62, -inf }
 0xfb9   :  { %1641 = vmax.xlane.f32.xlu1 %v1640_v5  ;;  %v4691_v28 = vpop.f32.mrf.mxu1  ;;  %v4696_v47 = vpop.f32.mrf.mxu0 }
 0xfba   :  { %v1639_v21 = vadd.f32 %v1637_v2, %v5548_v60 }
 0xfbb   :  { %v1633_v31 = vpop.f32.mrf.mxu0 }
 0xfbc   :  { %v1643_v25 = vsel %vm149_vm2, %v1639_v21, -inf }
 0xfbd   :  { %1644 = vmax.xlane.f32.xlu0 %v1643_v25  ;;  %v4697_v49 = vpop.f32.mrf.mxu0 }
 0xfca   :  { %1664 = vrot.lane.b32.xlu1 %v5514_v41, %s5144_s2 }
0x1042   :  { %v1642_v6 = vpop.xlane.xlu1 %1641 }
0x1043   :  { %v1646_v7 = vsub.f32 %v1638_v62, %v1642_v6 }
0x1045   :  { %v1648_v8 = vmul.f32 1.442695, %v1646_v7 }
0x1046   :  { %v1665_v9 = vpop.permute.xlu1 %1664  ;;  %v1645_v11 = vpop.xlane.xlu0 %1644 }
0x1047   :  { %5038 = vpow2.f32 %v1648_v8  ;;  %v1670_v12 = vsel %vm277_vm3, %v1665_v9, 0  ;;  %v1647_v15 = vsub.f32 %v1639_v21, %v1645_v11 }
0x1048   :  { %4699 = vmatpush3.bf16.msra.mxu1 %v1670_v12 }
0x1049   :  { %v1650_v16 = vmul.f32 1.442695, %v1647_v15  ;;  %4710 = vmatprep.subr.bf16.mxu1 %v5140_v1 }
0x104b   :  { %5040 = vpow2.f32 %v1650_v16 }
0x1054   :  { %v5039_v17 = vpop.eup %5038 }
0x1055   :  { %v1652_v20 = vsel %vm149_vm2, %v5039_v17, 0.0 }
0x1056   :  { %1653 = vadd.xlane.f32.xlu1 %v1652_v20 }
0x1058   :  { %v5041_v22 = vpop.eup %5040 }
0x1059   :  { %v1655_v14 = vsel %vm149_vm2, %v5041_v22, 0.0 }
0x105a   :  { %1656 = vadd.xlane.f32.xlu0 %v1655_v14 }
0x1067   :  { %1763 = vrot.lane.b32.xlu1 %v5514_v41, %s5145_s30 }
0x106b   :  { %1813 = vrot.lane.b32.xlu1 %v5520_v45, %s5145_s30 }
0x106f   :  { %1811 = vrot.lane.b32.xlu1 %v5520_v45, %s5146_s6 }
0x1070   :  { %1712 = vrot.lane.b32.xlu0 %v5520_v45, %s5144_s2 }
0x1074   :  { %1761 = vrot.lane.b32.xlu0 %v5514_v41, %s5146_s6 }
0x10df   :  { %v1654_v23 = vpop.xlane.xlu1 %1653 }
0x10e0   :  { %5042 = vrcp.f32 %v1654_v23 }
0x10e3   :  { %v1657_v24 = vpop.xlane.xlu0 %1656  ;;  %v1764_v30 = vpop.permute.xlu1 %1763 }
0x10e4   :  { %5044 = vrcp.f32 %v1657_v24  ;;  %v1769_v36 = vsel %vm149_vm2, %v1764_v30, 0 }
0x10e7   :  { %v1713_v26 = vpop.permute.xlu0 %1712  ;;  %v1814_v39 = vpop.permute.xlu1 %1813 }
0x10e8   :  { %v1718_v27 = vsel %vm277_vm3, %v1713_v26, 0  ;;  %v1819_v42 = vsel %vm149_vm2, %v1814_v39, 0 }
0x10e9   :  { %4705 = vmatpush3.bf16.msra.mxu0 %v1718_v27 }
0x10ea   :  { %4716 = vmatprep.subr.bf16.mxu0 %v5140_v1 }
0x10eb   :  { %v1762_v43 = vpop.permute.xlu0 %1761  ;;  %v1812_v44 = vpop.permute.xlu1 %1811 }
0x10ed   :  { %v5043_v29 = vpop.eup %5042 }
0x10ee   :  { %v1660_v33 = vmul.f32 %v5043_v29, %v5039_v17 }
0x10f0   :  { %v1662_v34 = vpack.c.bf16 %v1660_v33, %v1660_v33 }
0x10f1   :  { %v5045_v35 = vpop.eup %5044 }
0x10f2   :  { %4701 = vmatmul.mubr.msk.bf16.vlgmr.msra.gmra.mxu1 %vm149_vm2, %v1662_v34  ;;  %v1661_v37 = vmul.f32 %v5045_v35, %v5041_v22  ;;  %v4278_v35 = vld [vmem:[%s6082_s3 + $0x50] sm:$0xf] }
0x10f3   :  { %4711 = vmatpush3.bf16.xpose.msra.mxu1 %v1769_v36  ;;  %4712 = vmatprep.mubr.msk.bf16.mxu1 %vm5141_vm0, %v5140_v1  ;;  %v2037_v39 = vsel %vm277_vm3, %v4278_v35, 0 }
0x10f4   :  { %v1663_v40 = vpack.c.bf16 %v1661_v37, %v1661_v37  ;;  %4722 = vmatprep.subr.bf16.mxu1 %v5140_v1 }
0x10f6   :  { %4707 = vmatmul.mubr.msk.bf16.vlgmr.msra.gmra.mxu0 %vm149_vm2, %v1663_v40 }
0x10f7   :  { %4717 = vmatpush3.bf16.xpose.msra.mxu0 %v1819_v42  ;;  %4718 = vmatprep.mubr.msk.bf16.mxu0 %vm5141_vm0, %v5140_v1 }
0x10f8   :  { %4728 = vmatprep.subr.bf16.mxu0 %v5140_v1 }
0x10fa   :  { %4713 = vmatmul.mubr.msk.bf16.vlgmr.msra.gmra.mxu1 %vm149_vm2, %v1762_v43 }
0x10fb   :  { %4724 = vmatprep.mubr.msk.bf16.mxu1 %vm5141_vm0, %v5140_v1 }
0x10fe   :  { %4719 = vmatmul.mubr.msk.bf16.vlgmr.msra.gmra.mxu0 %vm149_vm2, %v1812_v44 }
0x10ff   :  { %4730 = vmatprep.mubr.msk.bf16.mxu0 %vm5141_vm0, %v5140_v1 }
0x11b2   :  { %v5588_v46 = vpop.f32.mrf.mxu1 }
0x11b4   :  { %v4702_v48 = vpop.f32.mrf.mxu1 }
0x11b5   :  { %v4279_v48 = vld [vmem:[%s6082_s3 + $0x54] sm:$0xf] }
0x11b6   :  { %v1709_v50 = vpop.f32.mrf.mxu1  ;;  %v5590_v51 = vpop.f32.mrf.mxu0 }
0x11b7   :  { %v1760_v53 = vpack.c.bf16 %v5590_v51, %v5588_v46  ;;  %v1990_v46 = vsel %vm277_vm3, %v4279_v48, 0 }
0x11b8   :  { %v4703_v55 = vpop.f32.mrf.mxu1  ;;  %v4708_v57 = vpop.f32.mrf.mxu0 }
0x11ba   :  { %v1757_v58 = vpop.f32.mrf.mxu0  ;;  %v1805_v59 = vpop.f32.mrf.mxu1 }
0x11bb   :  { %v1861_v3 = vmul.f32 0.35355338, %v1805_v59 }
0x11bc   :  { %v4709_v4 = vpop.f32.mrf.mxu0  ;;  %v4714_v61 = vpop.f32.mrf.mxu1 }
0x11bd   :  { %v1863_v62 = vadd.f32 %v1861_v3, %v5548_v60 }
0x11be   :  { %v1808_v63 = vpop.f32.mrf.mxu1  ;;  %v1855_v0 = vpop.f32.mrf.mxu0 }
0x11bf   :  { %v1862_v2 = vmul.f32 0.35355338, %v1855_v0  ;;  %v1865_v5 = vsel %vm149_vm2, %v1863_v62, -inf }
0x11c0   :  { %1866 = vmax.xlane.f32.xlu0 %v1865_v5  ;;  %v4715_v28 = vpop.f32.mrf.mxu1  ;;  %v4720_v47 = vpop.f32.mrf.mxu0 }
0x11c1   :  { %v1864_v21 = vadd.f32 %v1862_v2, %v5548_v60 }
0x11c2   :  { %v1858_v31 = vpop.f32.mrf.mxu0 }
0x11c3   :  { %v1868_v25 = vsel %vm149_vm2, %v1864_v21, -inf }
0x11c4   :  { %1869 = vmax.xlane.f32.xlu1 %v1868_v25  ;;  %v4721_v49 = vpop.f32.mrf.mxu0 }
0x11d5   :  { %1889 = vrot.lane.b32.xlu1 %v5514_v41, %s5147_s7 }
0x11d9   :  { %2082 = vrot.lane.b32.xlu1 %v5514_v41, %s5149_s9 }
0x11dd   :  { %2132 = vrot.lane.b32.xlu1 %v5520_v45, %s5149_s9 }
0x11e1   :  { %2130 = vrot.lane.b32.xlu1 %v5520_v45, %s5148_s8 }
0x1249   :  { %v1867_v6 = vpop.xlane.xlu0 %1866 }
0x124a   :  { %v1871_v7 = vsub.f32 %v1863_v62, %v1867_v6 }
0x124c   :  { %v1873_v8 = vmul.f32 1.442695, %v1871_v7 }
0x124d   :  { %v1870_v9 = vpop.xlane.xlu1 %1869 }
0x124e   :  { %5046 = vpow2.f32 %v1873_v8  ;;  %v1872_v11 = vsub.f32 %v1864_v21, %v1870_v9 }
0x1250   :  { %v1875_v12 = vmul.f32 1.442695, %v1872_v11 }
0x1251   :  { %v1890_v15 = vpop.permute.xlu1 %1889 }
0x1252   :  { %5048 = vpow2.f32 %v1875_v12  ;;  %v1895_v16 = vsel %vm277_vm3, %v1890_v15, 0 }
0x1253   :  { %4723 = vmatpush3.bf16.msra.mxu1 %v1895_v16 }
0x1254   :  { %4734 = vmatprep.subr.bf16.mxu1 %v5140_v1 }
0x1255   :  { %v2083_v40 = vpop.permute.xlu1 %2082 }
0x1256   :  { %v2088_v3 = vsel %vm149_vm2, %v2083_v40, 0 }
0x1259   :  { %v2133_v42 = vpop.permute.xlu1 %2132 }
0x125a   :  { %v2138_v43 = vsel %vm149_vm2, %v2133_v42, 0 }
0x125b   :  { %v5047_v17 = vpop.eup %5046 }
0x125c   :  { %v1877_v20 = vsel %vm149_vm2, %v5047_v17, 0.0 }
0x125d   :  { %1878 = vadd.xlane.f32.xlu0 %v1877_v20  ;;  %v2131_v44 = vpop.permute.xlu1 %2130 }
0x125f   :  { %v5049_v22 = vpop.eup %5048 }
0x1260   :  { %v1880_v14 = vsel %vm149_vm2, %v5049_v22, 0.0 }
0x1261   :  { %1881 = vadd.xlane.f32.xlu0 %v1880_v14 }
0x1277   :  { %1937 = vrot.lane.b32.xlu0 %v5520_v45, %s5147_s7 }
0x127b   :  { %2080 = vrot.lane.b32.xlu0 %v5514_v41, %s5148_s8 }
0x12e6   :  { %v1879_v23 = vpop.xlane.xlu0 %1878 }
0x12e7   :  { %5050 = vrcp.f32 %v1879_v23 }
0x12ea   :  { %v1882_v24 = vpop.xlane.xlu0 %1881 }
0x12eb   :  { %5052 = vrcp.f32 %v1882_v24 }
0x12ee   :  { %v1938_v26 = vpop.permute.xlu0 %1937 }
0x12ef   :  { %v1943_v27 = vsel %vm277_vm3, %v1938_v26, 0 }
0x12f0   :  { %4729 = vmatpush3.bf16.msra.mxu0 %v1943_v27 }
0x12f1   :  { %4740 = vmatprep.subr.bf16.mxu0 %v5140_v1 }
0x12f2   :  { %v2081_v63 = vpop.permute.xlu0 %2080 }
0x12f4   :  { %v5051_v29 = vpop.eup %5050 }
0x12f5   :  { %v1885_v30 = vmul.f32 %v5051_v29, %v5047_v17 }
0x12f7   :  { %v1887_v33 = vpack.c.bf16 %v1885_v30, %v1885_v30 }
0x12f8   :  { %v5053_v34 = vpop.eup %5052 }
0x12f9   :  { %4725 = vmatmul.mubr.msk.bf16.vlgmr.msra.gmra.mxu1 %vm149_vm2, %v1887_v33  ;;  %v1886_v36 = vmul.f32 %v5053_v34, %v5049_v22 }
0x12fa   :  { %4736 = vmatprep.mubr.msk.bf16.mxu1 %vm5141_vm0, %v5140_v1  ;;  %4735 = vmatpush3.bf16.msra.mxu1 %v1990_v46 }
0x12fb   :  { %v1888_v37 = vpack.c.bf16 %v1886_v36, %v1886_v36  ;;  %4746 = vmatprep.subr.bf16.mxu1 %v5140_v1 }
0x12fd   :  { %4731 = vmatmul.mubr.msk.bf16.vlgmr.msra.gmra.mxu0 %vm149_vm2, %v1888_v37 }
0x12fe   :  { %4741 = vmatpush3.bf16.msra.mxu0 %v2037_v39  ;;  %4742 = vmatprep.mubr.msk.bf16.mxu0 %vm5141_vm0, %v5140_v1 }
0x12ff   :  { %4752 = vmatprep.subr.bf16.mxu0 %v5140_v1 }
0x1305   :  { %4743 = vmatmul.mubr.msk.bf16.vlgmr.msra.gmra.mxu0 %vm149_vm2, %v1760_v53 }
0x1306   :  { %4753 = vmatpush3.bf16.xpose.msra.mxu0 %v2138_v43  ;;  %4754 = vmatprep.mubr.msk.bf16.mxu0 %vm5141_vm0, %v5140_v1 }
0x1307   :  { %4764 = vmatprep.subr.bf16.mxu0 %v5140_v1 }
0x130d   :  { %4755 = vmatmul.mubr.msk.bf16.vlgmr.msra.gmra.mxu0 %vm149_vm2, %v2131_v44 }
0x130e   :  { %4766 = vmatprep.mubr.msk.bf16.mxu0 %vm5141_vm0, %v5140_v1 }
0x13b9   :  { %v1931_v50 = vpop.f32.mrf.mxu1 }
0x13bb   :  { %v4726_v51 = vpop.f32.mrf.mxu1 }
0x13bd   :  { %v1934_v53 = vpop.f32.mrf.mxu1  ;;  %v1979_v55 = vpop.f32.mrf.mxu0 }
0x13be   :  { %v1985_v57 = vpack.c.bf16 %v1979_v55, %v1931_v50 }
0x13bf   :  { %v4727_v58 = vpop.f32.mrf.mxu1  ;;  %v4732_v59 = vpop.f32.mrf.mxu0 }
0x13c0   :  { %4737 = vmatmul.mubr.msk.bf16.vlgmr.msra.gmra.mxu1 %vm149_vm2, %v1985_v57 }
0x13c1   :  { %4747 = vmatpush3.bf16.xpose.msra.mxu1 %v2088_v3  ;;  %v1982_v4 = vpop.f32.mrf.mxu0  ;;  %4748 = vmatprep.mubr.msk.bf16.mxu1 %vm5141_vm0, %v5140_v1  ;;  %v4280_v3 = vld [vmem:[%s6082_s3 + $0x58] sm:$0xf] }
0x13c2   :  { %4758 = vmatprep.subr.bf16.mxu1 %v5140_v1  ;;  %v2309_v4 = vsel %vm277_vm3, %v4280_v3, 0 }
0x13c3   :  { %v4733_v61 = vpop.f32.mrf.mxu0 }
0x13c5   :  { %v5648_v62 = vpop.f32.mrf.mxu0 }
0x13c7   :  { %v4744_v0 = vpop.f32.mrf.mxu0 }
0x13c8   :  { %4749 = vmatmul.mubr.msk.bf16.vlgmr.msra.gmra.mxu1 %vm149_vm2, %v2081_v63 }
0x13c9   :  { %v5651_v2 = vpop.f32.mrf.mxu0  ;;  %4760 = vmatprep.mubr.msk.bf16.mxu1 %vm5141_vm0, %v5140_v1 }
0x13cb   :  { %v4745_v5 = vpop.f32.mrf.mxu0 }
0x13cd   :  { %v2174_v28 = vpop.f32.mrf.mxu0 }
0x13ce   :  { %v2181_v47 = vmul.f32 0.35355338, %v2174_v28 }
0x13cf   :  { %v4756_v21 = vpop.f32.mrf.mxu0 }
0x13d0   :  { %v2183_v31 = vadd.f32 %v2181_v47, %v5548_v60 }
0x13d1   :  { %v2177_v25 = vpop.f32.mrf.mxu0 }
0x13d2   :  { %v2187_v49 = vsel %vm149_vm2, %v2183_v31, -inf }
0x13d3   :  { %2188 = vmax.xlane.f32.xlu1 %v2187_v49  ;;  %v4757_v6 = vpop.f32.mrf.mxu0 }
0x13e4   :  { %2208 = vrot.lane.b32.xlu1 %v5514_v41, %s5150_s14 }
0x13e8   :  { %2356 = vrot.lane.b32.xlu1 %v5514_v41, %s5151_s15 }
0x13ec   :  { %2406 = vrot.lane.b32.xlu1 %v5520_v45, %s5151_s15 }
0x13f0   :  { %2404 = vrot.lane.b32.xlu1 %v5520_v45, %s5152_s16 }
0x145c   :  { %v2189_v7 = vpop.xlane.xlu1 %2188 }
0x145d   :  { %v2191_v11 = vsub.f32 %v2183_v31, %v2189_v7 }
0x145f   :  { %v2194_v12 = vmul.f32 1.442695, %v2191_v11 }
0x1460   :  { %v2209_v8 = vpop.permute.xlu1 %2208 }
0x1461   :  { %v2214_v9 = vsel %vm277_vm3, %v2209_v8, 0  ;;  %5054 = vpow2.f32 %v2194_v12 }
0x1462   :  { %4759 = vmatpush3.bf16.msra.mxu1 %v2214_v9 }
0x1463   :  { %4770 = vmatprep.subr.bf16.mxu1 %v5140_v1 }
0x1464   :  { %v2357_v50 = vpop.permute.xlu1 %2356 }
0x1465   :  { %v2362_v53 = vsel %vm149_vm2, %v2357_v50, 0 }
0x1468   :  { %v2407_v47 = vpop.permute.xlu1 %2406 }
0x1469   :  { %v2412_v9 = vsel %vm149_vm2, %v2407_v47, 0 }
0x146e   :  { %v5055_v29 = vpop.eup %5054 }
0x146f   :  { %v2199_v33 = vsel %vm149_vm2, %v5055_v29, 0.0 }
0x1480   :  { %v5667_v15 = vpop.f32.mrf.mxu1 }
0x1482   :  { %v4738_v16 = vpop.f32.mrf.mxu1 }
0x1484   :  { %v5669_v17 = vpop.f32.mrf.mxu1 }
0x1486   :  { %v4739_v20 = vpop.f32.mrf.mxu1 }
0x1488   :  { %v2124_v22 = vpop.f32.mrf.mxu1 }
0x1489   :  { %v2180_v14 = vmul.f32 0.35355338, %v2124_v22  ;;  %v2405_v22 = vpop.permute.xlu1 %2404 }
0x148a   :  { %v4750_v23 = vpop.f32.mrf.mxu1 }
0x148b   :  { %v2182_v24 = vadd.f32 %v2180_v14, %v5548_v60 }
0x148c   :  { %v2127_v26 = vpop.f32.mrf.mxu1 }
0x148d   :  { %v2184_v27 = vsel %vm149_vm2, %v2182_v24, -inf }
0x148e   :  { %2185 = vmax.xlane.f32.xlu0 %v2184_v27  ;;  %v4751_v30 = vpop.f32.mrf.mxu1 }
0x1492   :  { %2200 = vadd.xlane.f32.xlu0 %v2199_v33 }
0x1517   :  { %v2186_v34 = vpop.xlane.xlu0 %2185 }
0x1518   :  { %v2190_v35 = vsub.f32 %v2182_v24, %v2186_v34 }
0x151a   :  { %v2192_v36 = vmul.f32 1.442695, %v2190_v35  ;;  %v2077_v35 = vadd.f32 %v5651_v2, %v5669_v17  ;;  %v1413_v2 = vadd.f32 %v5541_v54, %v5536_v52  ;;  %v1420_v54 = vadd.f32 %v5544_v56, %v5474_v13 }
0x151b   :  { %v2201_v40 = vpop.xlane.xlu0 %2200 }
0x151c   :  { %5056 = vpow2.f32 %v2192_v36  ;;  %v1426_v3 = vsel %vm90_vm1, %v1420_v54, 0.0 }
0x151d   :  { %5058 = vrcp.f32 %v2201_v40 }
0x1529   :  { %v5057_v37 = vpop.eup %5056 }
0x152a   :  { %v2196_v39 = vsel %vm149_vm2, %v5057_v37, 0.0  ;;  %v5059_v42 = vpop.eup %5058 }
0x152b   :  { %2197 = vadd.xlane.f32.xlu0 %v2196_v39  ;;  %v2205_v44 = vmul.f32 %v5059_v42, %v5055_v29  ;;  %v2074_v29 = vadd.f32 %v5648_v62, %v5667_v15  ;;  %v1419_v15 = vadd.f32 %v1413_v2, %v5472_v10 }
0x152d   :  { %v2207_v51 = vpack.c.bf16 %v2205_v44, %v2205_v44  ;;  %v1423_v17 = vsel %vm90_vm1, %v1419_v15, 0.0 }
0x1541   :  { %2256 = vrot.lane.b32.xlu0 %v5520_v45, %s5150_s14 }
0x1545   :  { %2354 = vrot.lane.b32.xlu0 %v5514_v41, %s5152_s16 }
0x15b4   :  { %v2198_v43 = vpop.xlane.xlu0 %2197 }
0x15b5   :  { %5060 = vrcp.f32 %v2198_v43 }
0x15b8   :  { %v2257_v48 = vpop.permute.xlu0 %2256 }
0x15b9   :  { %v2262_v46 = vsel %vm277_vm3, %v2257_v48, 0 }
0x15ba   :  { %4765 = vmatpush3.bf16.msra.mxu0 %v2262_v46 }
0x15bb   :  { %4776 = vmatprep.subr.bf16.mxu0 %v5140_v1 }
0x15bc   :  { %v2355_v58 = vpop.permute.xlu0 %2354 }
0x15bd   :  { %4767 = vmatmul.mubr.msk.bf16.vlgmr.msra.gmra.mxu0 %vm149_vm2, %v2207_v51 }
0x15be   :  { %4777 = vmatpush3.bf16.xpose.msra.mxu0 %v2362_v53  ;;  %4778 = vmatprep.mubr.msk.bf16.mxu0 %vm5141_vm0, %v5140_v1 }
0x15bf   :  { %4788 = vmatprep.subr.bf16.mxu0 %v5140_v1 }
0x15c2   :  { %v5061_v55 = vpop.eup %5060 }
0x15c3   :  { %v2204_v57 = vmul.f32 %v5061_v55, %v5057_v37 }
0x15c5   :  { %4779 = vmatmul.mubr.msk.bf16.vlgmr.msra.gmra.mxu0 %vm149_vm2, %v2355_v58  ;;  %v2206_v59 = vpack.c.bf16 %v2204_v57, %v2204_v57 }
0x15c6   :  { %4790 = vmatprep.mubr.msk.bf16.mxu0 %vm5141_vm0, %v5140_v1 }
0x15c7   :  { %4761 = vmatmul.mubr.msk.bf16.vlgmr.msra.gmra.mxu1 %vm149_vm2, %v2206_v59 }
0x15c8   :  { %4772 = vmatprep.mubr.msk.bf16.mxu1 %vm5141_vm0, %v5140_v1  ;;  %4771 = vmatpush3.bf16.msra.mxu1 %v2309_v4  ;;  %v4281_v4 = vld [vmem:[%s6082_s3 + $0x5c] sm:$0xf] }
0x15c9   :  { %4782 = vmatprep.subr.bf16.mxu1 %v5140_v1 }
0x167d   :  { %v2298_v61 = vpop.f32.mrf.mxu0 }
0x167f   :  { %v4768_v63 = vpop.f32.mrf.mxu0 }
0x1681   :  { %v2301_v0 = vpop.f32.mrf.mxu0 }
0x1683   :  { %v4769_v5 = vpop.f32.mrf.mxu0 }
0x1685   :  { %v2398_v28 = vpop.f32.mrf.mxu0 }
0x1686   :  { %v2454_v21 = vmul.f32 0.35355338, %v2398_v28 }
0x1687   :  { %v2250_v31 = vpop.f32.mrf.mxu1  ;;  %v4780_v25 = vpop.f32.mrf.mxu0 }
0x1688   :  { %v2304_v49 = vpack.c.bf16 %v2298_v61, %v2250_v31  ;;  %v2456_v6 = vadd.f32 %v2454_v21, %v5548_v60  ;;  %v2583_v61 = vsel %vm277_vm3, %v4281_v4, 0 }
0x1689   :  { %v4762_v7 = vpop.f32.mrf.mxu1  ;;  %v2401_v8 = vpop.f32.mrf.mxu0 }
0x168a   :  { %4773 = vmatmul.mubr.msk.bf16.vlgmr.msra.gmra.mxu1 %vm149_vm2, %v2304_v49  ;;  %v2458_v11 = vsel %vm149_vm2, %v2456_v6, -inf }
0x168b   :  { %4783 = vmatpush3.bf16.xpose.msra.mxu1 %v2412_v9  ;;  %v2253_v12 = vpop.f32.mrf.mxu1  ;;  %2459 = vmax.xlane.f32.xlu0 %v2458_v11  ;;  %v4781_v16 = vpop.f32.mrf.mxu0 }
0x168c   :  { %4784 = vmatprep.mubr.msk.bf16.mxu1 %vm5141_vm0, %v5140_v1  ;;  %4794 = vmatprep.subr.bf16.mxu1 %v5140_v1  ;;  %v4304_v16 = vld [vmem:[%s6083_s4 + $0x9] ss:$0 sm:$0xff] }
0x168d   :  { %v4763_v20 = vpop.f32.mrf.mxu1 }
0x1692   :  { %4785 = vmatmul.mubr.msk.bf16.vlgmr.msra.gmra.mxu1 %vm149_vm2, %v2405_v22 }
0x1693   :  { %4796 = vmatprep.mubr.msk.bf16.mxu1 %vm5141_vm0, %v5140_v1 }
0x1714   :  { %v2460_v14 = vpop.xlane.xlu0 %2459 }
0x1715   :  { %v2464_v23 = vsub.f32 %v2456_v6, %v2460_v14 }
0x1717   :  { %v2466_v24 = vmul.f32 1.442695, %v2464_v23 }
0x1719   :  { %5062 = vpow2.f32 %v2466_v24 }
0x1726   :  { %v5063_v26 = vpop.eup %5062 }
0x1727   :  { %v2470_v27 = vsel %vm149_vm2, %v5063_v26, 0.0 }
0x1728   :  { %2471 = vadd.xlane.f32.xlu0 %v2470_v27 }
0x174a   :  { %v2345_v30 = vpop.f32.mrf.mxu1 }
0x174b   :  { %v5710_v33 = vadd.f32 %v2345_v30, %v2074_v29 }
0x174c   :  { %v4774_v34 = vpop.f32.mrf.mxu1 }
0x174e   :  { %v2348_v36 = vpop.f32.mrf.mxu1 }
0x174f   :  { %v5714_v37 = vadd.f32 %v2348_v36, %v2077_v35 }
0x1750   :  { %v4775_v39 = vpop.f32.mrf.mxu1 }
0x1752   :  { %v2448_v40 = vpop.f32.mrf.mxu1 }
0x1753   :  { %v2455_v42 = vmul.f32 0.35355338, %v2448_v40 }
0x1754   :  { %v4786_v43 = vpop.f32.mrf.mxu1 }
0x1755   :  { %v2457_v44 = vadd.f32 %v2455_v42, %v5548_v60 }
0x1756   :  { %v2451_v48 = vpop.f32.mrf.mxu1 }
0x1757   :  { %v2461_v46 = vsel %vm149_vm2, %v2457_v44, -inf  ;;  %v4993_v48 = vld [vmem:[%s6082_s3 + $0x70] sm:$0xff]  }
0x1758   :  { %2462 = vmax.xlane.f32.xlu1 %v2461_v46  ;;  %v4787_v62 = vpop.f32.mrf.mxu1 }
0x1769   :  { %2482 = vrot.lane.b32.xlu1 %v5514_v41, %s5153_s19 }
0x178d   :  { %1424 = vadd.xlane.f32.xlu1 %v1423_v17 }
0x17b1   :  { %v2472_v50 = vpop.xlane.xlu0 %2471 }
0x17b2   :  { %5064 = vrcp.f32 %v2472_v50 }
0x17bf   :  { %v5065_v51 = vpop.eup %5064 }
0x17c0   :  { %v2478_v57 = vmul.f32 %v5065_v51, %v5063_v26 }
0x17c2   :  { %v2480_v41 = vpack.c.bf16 %v2478_v57, %v2478_v57 }
0x17e1   :  { %v2463_v60 = vpop.xlane.xlu1 %2462 }
0x17e2   :  { %v2465_v53 = vsub.f32 %v2457_v44, %v2463_v60 }
0x17e4   :  { %v2468_v55 = vmul.f32 1.442695, %v2465_v53 }
0x17e5   :  { %v2483_v58 = vpop.permute.xlu1 %2482 }
0x17e6   :  { %5066 = vpow2.f32 %v2468_v55  ;;  %v2488_v59 = vsel %vm277_vm3, %v2483_v58, 0 }
0x17e7   :  { %4789 = vmatpush3.bf16.msra.mxu0 %v2488_v59 }
0x17e8   :  { %4800 = vmatprep.subr.bf16.mxu0 %v5140_v1 }
0x17ea   :  { %4791 = vmatmul.mubr.msk.bf16.vlgmr.msra.gmra.mxu0 %vm149_vm2, %v2480_v41 }
0x17eb   :  { %4802 = vmatprep.mubr.msk.bf16.mxu0 %vm5141_vm0, %v5140_v1  ;;  %4801 = vmatpush3.bf16.msra.mxu0 %v2583_v61 }
0x17ec   :  { %4814 = vmatprep.subr.bf16.mxu0 %v5140_v1 }
0x17f3   :  { %v5067_v10 = vpop.eup %5066 }
0x17f4   :  { %v2473_v52 = vsel %vm149_vm2, %v5067_v10, 0.0 }
0x17f5   :  { %2474 = vadd.xlane.f32.xlu0 %v2473_v52 }
0x180b   :  { %2530 = vrot.lane.b32.xlu0 %v5520_v45, %s5153_s19 }
0x1816   :  { %v1425_v9 = vpop.xlane.xlu1 %1424 }
0x1817   :  { %v1429_v11 = vmul.f32 0.03125, %v1425_v9 }
0x1819   :  { %v1431_v23 = vsub.f32 %v1419_v15, %v1429_v11  ;;  %v4305_v11 = vld [vmem:[%s6083_s4 + $0xa] ss:$0 sm:$0xff] }
0x181b   :  { %v1433_v40 = vmul.f32 %v1431_v23, %v1431_v23 }
0x182a   :  { %1427 = vadd.xlane.f32.xlu0 %v1426_v3  ;;  %v4268_v3 = vld [vmem:[%s6083_s4 + $0x6] ss:$0 sm:$0xff] }
0x187e   :  { %v2475_v63 = vpop.xlane.xlu0 %2474 }
0x187f   :  { %5068 = vrcp.f32 %v2475_v63 }
0x1882   :  { %v2531_v0 = vpop.permute.xlu0 %2530 }
0x1883   :  { %v2536_v45 = vsel %vm277_vm3, %v2531_v0, 0  ;;  %v4269_v0 = vld [vmem:[%s6083_s4 + $0x7] ss:$0 sm:$0xff] }
0x1884   :  { %4795 = vmatpush3.bf16.msra.mxu1 %v2536_v45 }
0x1885   :  { %4806 = vmatprep.subr.bf16.mxu1 %v5140_v1 }
0x188c   :  { %v5069_v13 = vpop.eup %5068 }
0x188d   :  { %v2479_v56 = vmul.f32 %v5069_v13, %v5067_v10 }
0x188f   :  { %v2481_v5 = vpack.c.bf16 %v2479_v56, %v2479_v56 }
0x1891   :  { %4797 = vmatmul.mubr.msk.bf16.vlgmr.msra.gmra.mxu1 %vm149_vm2, %v2481_v5 }
0x1892   :  { %4810 = vmatprep.mubr.msk.bf16.mxu1 %vm5141_vm0, %v5140_v1 }
0x18aa   :  { %v2524_v28 = vpop.f32.mrf.mxu0 }
0x18ac   :  { %v4792_v47 = vpop.f32.mrf.mxu0 }
0x18ad   :  { %v4995_v47 = vld [vmem:[%s6082_s3 + $0x60] sm:$0xff]  }
0x18ae   :  { %v2527_v21 = vpop.f32.mrf.mxu0 }
0x18b0   :  { %v4793_v31 = vpop.f32.mrf.mxu0 }
0x18b3   :  { %v1428_v12 = vpop.xlane.xlu0 %1427 }
0x18b4   :  { %v1430_v24 = vmul.f32 0.03125, %v1428_v12 }
0x18b6   :  { %v1432_v35 = vsub.f32 %v1420_v54, %v1430_v24 }
0x18b8   :  { %v1434_v44 = vmul.f32 %v1432_v35, %v1432_v35 }
0x1951   :  { %v2572_v25 = vpop.f32.mrf.mxu1 }
0x1952   :  { %v2578_v49 = vpack.c.bf16 %v2572_v25, %v2524_v28  ;;  %v4994_v28 = vld [vmem:[%s6082_s3 + $0x68] sm:$0xff]  }
0x1953   :  { %v4798_v6 = vpop.f32.mrf.mxu1  ;;  %4807 = vmatpush3.bf16.msra.mxu1 %v4994_v28 }
0x1954   :  { %4803 = vmatmul.mubr.msk.bf16.vlgmr.msra.gmra.mxu0 %vm149_vm2, %v2578_v49  ;;  %4808 = vmatprep.subr.bf16.mxu1 %v5140_v1 }
0x1955   :  { %v2575_v7 = vpop.f32.mrf.mxu1  ;;  %4818 = vmatprep.mubr.msk.bf16.mxu0 %vm5141_vm0, %v5140_v1 }
0x1957   :  { %v4799_v8 = vpop.f32.mrf.mxu1  ;;  %4809 = vmatpush3.bf16.msra.mxu1 %v4995_v47 }
0x1958   :  { %4822 = vmatprep.subr.bf16.mxu1 %v5140_v1 }
0x1a14   :  { %v2619_v20 = vpop.f32.mrf.mxu0 }
0x1a15   :  { %v2626_v22 = vadd.f32 %v2619_v20, %v5710_v33  ;;  %v1435_v33 = vsel %vm90_vm1, %v1433_v40, 0.0 }
0x1a16   :  { %v4804_v14 = vpop.f32.mrf.mxu0 }
0x1a17   :  { %v2632_v26 = vadd.f32 %v4304_v16, %v2626_v22  ;;  %v4306_v22 = vld [vmem:[%s6083_s4 + $0xb] ss:$0 sm:$0xff] }
0x1a18   :  { %v2622_v27 = vpop.f32.mrf.mxu0 }
0x1a19   :  { %v2627_v29 = vadd.f32 %v2622_v27, %v5714_v37  ;;  %v2634_v30 = vadd.f32 %v2632_v26, %v5490_v18  ;;  %v1438_v37 = vsel %vm90_vm1, %v1434_v44, 0.0  ;;  %v4992_v18 = vld [vmem:[%s6082_s3 + $0x78] sm:$0xff]   ;;  %v4319_v27 = vld [vmem:[%s6083_s4 + $0xd] ss:$0 sm:$0xff]  ;;  %v4311_v44 = vld [vmem:[%s6083_s4 + $0xc] ss:$0 sm:$0xff] }
0x1a1a   :  { %v4805_v34 = vpop.f32.mrf.mxu0  ;;  %4815 = vmatpush3.bf16.msra.mxu0 %v4992_v18 }
0x1a1b   :  { %v2633_v36 = vadd.f32 %v4304_v16, %v2627_v29  ;;  %v2638_v39 = vsel %vm90_vm1, %v2634_v30, 0.0  ;;  %4816 = vmatprep.subr.bf16.mxu0 %v5140_v1 }
0x1a1c   :  { %2639 = vadd.xlane.f32.xlu1 %v2638_v39 }
0x1a1d   :  { %v2635_v42 = vadd.f32 %v2633_v36, %v5495_v19 }
0x1a1e   :  { %4817 = vmatpush3.bf16.msra.mxu0 %v4993_v48 }
0x1a1f   :  { %v2641_v43 = vsel %vm90_vm1, %v2635_v42, 0.0  ;;  %4828 = vmatprep.subr.bf16.mxu0 %v5140_v1 }
0x1a20   :  { %1436 = vadd.xlane.f32.xlu1 %v1435_v33  ;;  %2642 = vadd.xlane.f32.xlu0 %v2641_v43 }
0x1a24   :  { %1439 = vadd.xlane.f32.xlu0 %v1438_v37 }
0x1aa5   :  { %v2640_v19 = vpop.xlane.xlu1 %2639 }
0x1aa6   :  { %v2644_v46 = vmul.f32 0.03125, %v2640_v19 }
0x1aa8   :  { %v2646_v62 = vsub.f32 %v2634_v30, %v2644_v46 }
0x1aa9   :  { %v1437_v2 = vpop.xlane.xlu1 %1436  ;;  %v2643_v15 = vpop.xlane.xlu0 %2642 }
0x1aaa   :  { %v1441_v17 = vmul.f32 0.03125, %v1437_v2  ;;  %v2645_v50 = vmul.f32 0.03125, %v2643_v15  ;;  %v2648_v51 = vmul.f32 %v2646_v62, %v2646_v62 }
0x1aac   :  { %v1443_v60 = vadd.f32 1e-05, %v1441_v17  ;;  %v2647_v53 = vsub.f32 %v2635_v42, %v2645_v50  ;;  %v2650_v55 = vsel %vm90_vm1, %v2648_v51, 0.0 }
0x1aad   :  { %2651 = vadd.xlane.f32.xlu1 %v2650_v55  ;;  %v1440_v57 = vpop.xlane.xlu0 %1439 }
0x1aae   :  { %5070 = vrsqrt.f32 %v1443_v60  ;;  %v1442_v58 = vmul.f32 0.03125, %v1440_v57  ;;  %v2649_v59 = vmul.f32 %v2647_v53, %v2647_v53 }
0x1ab0   :  { %v1444_v41 = vadd.f32 1e-05, %v1442_v58  ;;  %v2653_v10 = vsel %vm90_vm1, %v2649_v59, 0.0 }
0x1ab1   :  { %2654 = vadd.xlane.f32.xlu0 %v2653_v10 }
0x1ab2   :  { %5072 = vrsqrt.f32 %v1444_v41 }
0x1abb   :  { %v5071_v52 = vpop.eup %5070 }
0x1abc   :  { %v1447_v54 = vmul.f32 %v5071_v52, %v1431_v23 }
0x1abe   :  { %v1453_v63 = vmul.f32 %v4268_v3, %v1447_v54 }
0x1abf   :  { %v5073_v4 = vpop.eup %5072 }
0x1ac0   :  { %v1448_v61 = vmul.f32 %v5073_v4, %v1432_v35  ;;  %v1459_v13 = vadd.f32 %v4269_v0, %v1453_v63 }
0x1ac2   :  { %v1454_v45 = vmul.f32 %v4268_v3, %v1448_v61 }
0x1ac4   :  { %v1460_v56 = vadd.f32 %v4269_v0, %v1454_v45 }
0x1ac6   :  { %v2743_v5 = vpack.c.bf16 %v1460_v56, %v1459_v13 }
0x1ac8   :  { %4819 = vmatmul.mubr.msk.bf16.vlgmr.msra.gmra.mxu0 %vm90_vm1, %v2743_v5 }
0x1ac9   :  { %4830 = vmatprep.mubr.msk.bf16.mxu0 %vm5141_vm0, %v5140_v1 }
0x1b36   :  { %v2652_v21 = vpop.xlane.xlu1 %2651 }
0x1b37   :  { %v2656_v31 = vmul.f32 0.03125, %v2652_v21 }
0x1b39   :  { %v2658_v25 = vadd.f32 1e-05, %v2656_v31 }
0x1b3a   :  { %v2655_v49 = vpop.xlane.xlu0 %2654 }
0x1b3b   :  { %5074 = vrsqrt.f32 %v2658_v25  ;;  %v2657_v6 = vmul.f32 0.03125, %v2655_v49 }
0x1b3d   :  { %v2659_v7 = vadd.f32 1e-05, %v2657_v6 }
0x1b3f   :  { %5076 = vrsqrt.f32 %v2659_v7 }
0x1b48   :  { %v5075_v8 = vpop.eup %5074 }
0x1b49   :  { %v2662_v9 = vmul.f32 %v5075_v8, %v2646_v62 }
0x1b4b   :  { %v2668_v20 = vmul.f32 %v4305_v11, %v2662_v9 }
0x1b4c   :  { %v5077_v12 = vpop.eup %5076 }
0x1b4d   :  { %v2663_v16 = vmul.f32 %v5077_v12, %v2647_v53  ;;  %v5792_v23 = vadd.f32 %v4306_v22, %v2668_v20 }
0x1b4f   :  { %v2669_v14 = vmul.f32 %v4305_v11, %v2663_v16 }
0x1b51   :  { %v5794_v24 = vadd.f32 %v4306_v22, %v2669_v14 }
0x1b53   :  { %v2676_v26 = vpack.c.bf16 %v5794_v24, %v5792_v23 }
0x1b55   :  { %4811 = vmatmul.mubr.msk.bf16.vlgmr.msra.gmra.mxu1 %vm90_vm1, %v2676_v26 }
0x1b56   :  { %4824 = vmatprep.mubr.msk.bf16.mxu1 %vm5141_vm0, %v5140_v1 }
0x1b88   :  { %v2803_v29 = vpop.f32.mrf.mxu0 }
0x1b89   :  { %v2804_v30 = vadd.f32 %v4319_v27, %v2803_v29 }
0x1b8a   :  { %v4820_v34 = vpop.f32.mrf.mxu0 }
0x1b8b   :  { %v5804_v35 = vpack.c.bf16 %v2804_v30, %v2804_v30 }
0x1b8c   :  { %v2806_v36 = vpop.f32.mrf.mxu0 }
0x1b8d   :  { %v2807_v39 = vadd.f32 %v4319_v27, %v2806_v36  ;;  %v2832_v40 = vsel %vm149_vm2, %v5804_v35, 0 }
0x1b8e   :  { %v4821_v42 = vpop.f32.mrf.mxu0  ;;  %4823 = vmatpush3.bf16.xpose.msra.mxu1 %v2832_v40 }
0x1b8f   :  { %v5808_v33 = vpack.c.bf16 %v2807_v39, %v2807_v39  ;;  %4834 = vmatprep.subr.bf16.mxu1 %v5140_v1 }
0x1b91   :  { %v2878_v43 = vsel %vm149_vm2, %v5808_v33, 0 }
0x1b92   :  { %4829 = vmatpush3.bf16.xpose.msra.mxu0 %v2878_v43 }
0x1b93   :  { %4840 = vmatprep.subr.bf16.mxu0 %v5140_v1 }
0x1c15   :  { %v2736_v37 = vpop.f32.mrf.mxu1 }
0x1c16   :  { %v2737_v18 = vadd.f32 %v4311_v44, %v2736_v37 }
0x1c17   :  { %v4812_v48 = vpop.f32.mrf.mxu1 }
0x1c18   :  { %v5817_v19 = vpack.c.bf16 %v2737_v18, %v2737_v18 }
0x1c19   :  { %v2739_v46 = vpop.f32.mrf.mxu1 }
0x1c1a   :  { %v2740_v62 = vadd.f32 %v4311_v44, %v2739_v46  ;;  %4825 = vmatmul.mubr.msk.bf16.vlgmr.msra.gmra.mxu1 %vm149_vm2, %v5817_v19 }
0x1c1b   :  { %v4813_v2 = vpop.f32.mrf.mxu1  ;;  %4836 = vmatprep.mubr.msk.bf16.mxu1 %vm5141_vm0, %v5140_v1 }
0x1c1c   :  { %v5823_v15 = vpack.c.bf16 %v2740_v62, %v2740_v62 }
0x1c1e   :  { %4831 = vmatmul.mubr.msk.bf16.vlgmr.msra.gmra.mxu0 %vm149_vm2, %v5823_v15 }
0x1c1f   :  { %4842 = vmatprep.mubr.msk.bf16.mxu0 %vm5141_vm0, %v5140_v1 }
0x1cda   :  { %v2868_v17 = vpop.f32.mrf.mxu1 }
0x1cdb   :  { %v2920_v50 = vmul.f32 0.35355338, %v2868_v17 }
0x1cdc   :  { %v4826_v51 = vpop.f32.mrf.mxu1 }
0x1cdd   :  { %v2922_v60 = vadd.f32 %v2920_v50, %v5248_v32 }
0x1cde   :  { %v2871_v53 = vpop.f32.mrf.mxu1  ;;  %v2914_v55 = vpop.f32.mrf.mxu0 }
0x1cdf   :  { %v2921_v57 = vmul.f32 0.35355338, %v2914_v55  ;;  %v2924_v58 = vsel %vm149_vm2, %v2922_v60, -inf }
0x1ce0   :  { %2925 = vmax.xlane.f32.xlu1 %v2924_v58  ;;  %v4827_v59 = vpop.f32.mrf.mxu1  ;;  %v4832_v41 = vpop.f32.mrf.mxu0 }
0x1ce1   :  { %v2923_v10 = vadd.f32 %v2921_v57, %v5251_v38 }
0x1ce2   :  { %v2917_v52 = vpop.f32.mrf.mxu0 }
0x1ce3   :  { %v2927_v54 = vsel %vm149_vm2, %v2923_v10, -inf }
0x1ce4   :  { %2928 = vmax.xlane.f32.xlu0 %v2927_v54  ;;  %v4833_v3 = vpop.f32.mrf.mxu0 }
0x1cf1   :  { %2948 = vrot.lane.b32.xlu1 %v5804_v35, %s5142_s27 }
0x1d69   :  { %v2926_v4 = vpop.xlane.xlu1 %2925 }
0x1d6a   :  { %v2930_v61 = vsub.f32 %v2922_v60, %v2926_v4 }
0x1d6c   :  { %v2932_v63 = vmul.f32 1.442695, %v2930_v61 }
0x1d6d   :  { %v2949_v0 = vpop.permute.xlu1 %2948  ;;  %v2929_v45 = vpop.xlane.xlu0 %2928 }
0x1d6e   :  { %5078 = vpow2.f32 %v2932_v63  ;;  %v2954_v13 = vsel %vm277_vm3, %v2949_v0, 0  ;;  %v2931_v56 = vsub.f32 %v2923_v10, %v2929_v45 }
0x1d6f   :  { %4835 = vmatpush3.bf16.msra.mxu1 %v2954_v13 }
0x1d70   :  { %v2934_v5 = vmul.f32 1.442695, %v2931_v56  ;;  %4846 = vmatprep.subr.bf16.mxu1 %v5140_v1 }
0x1d72   :  { %5080 = vpow2.f32 %v2934_v5 }
0x1d7b   :  { %v5079_v28 = vpop.eup %5078 }
0x1d7c   :  { %v2936_v47 = vsel %vm149_vm2, %v5079_v28, 0.0 }
0x1d7d   :  { %2937 = vadd.xlane.f32.xlu1 %v2936_v47 }
0x1d7f   :  { %v5081_v21 = vpop.eup %5080 }
0x1d80   :  { %v2939_v31 = vsel %vm149_vm2, %v5081_v21, 0.0 }
0x1d81   :  { %2940 = vadd.xlane.f32.xlu0 %v2939_v31 }
0x1d8e   :  { %3047 = vrot.lane.b32.xlu1 %v5804_v35, %s5146_s6 }
0x1d92   :  { %3097 = vrot.lane.b32.xlu1 %v5808_v33, %s5146_s6 }
0x1d96   :  { %3095 = vrot.lane.b32.xlu1 %v5823_v15, %s5146_s6 }
0x1d97   :  { %2996 = vrot.lane.b32.xlu0 %v5808_v33, %s5142_s27 }
0x1d9b   :  { %3045 = vrot.lane.b32.xlu0 %v5817_v19, %s5146_s6 }
0x1e06   :  { %v2938_v25 = vpop.xlane.xlu1 %2937 }
0x1e07   :  { %5082 = vrcp.f32 %v2938_v25 }
0x1e0a   :  { %v2941_v49 = vpop.xlane.xlu0 %2940  ;;  %v3048_v9 = vpop.permute.xlu1 %3047 }
0x1e0b   :  { %5084 = vrcp.f32 %v2941_v49  ;;  %v3053_v20 = vsel %vm149_vm2, %v3048_v9, 0 }
0x1e0e   :  { %v2997_v6 = vpop.permute.xlu0 %2996  ;;  %v3098_v14 = vpop.permute.xlu1 %3097 }
0x1e0f   :  { %v3002_v7 = vsel %vm277_vm3, %v2997_v6, 0  ;;  %v3103_v27 = vsel %vm149_vm2, %v3098_v14, 0 }
0x1e10   :  { %4841 = vmatpush3.bf16.msra.mxu0 %v3002_v7 }
0x1e11   :  { %4852 = vmatprep.subr.bf16.mxu0 %v5140_v1 }
0x1e12   :  { %v3046_v29 = vpop.permute.xlu0 %3045  ;;  %v3096_v30 = vpop.permute.xlu1 %3095 }
0x1e14   :  { %v5083_v8 = vpop.eup %5082 }
0x1e15   :  { %v2944_v11 = vmul.f32 %v5083_v8, %v5079_v28  ;;  %v4323_v8 = vld [vmem:[%s6082_s3 + $0x80] sm:$0xf] }
0x1e17   :  { %v2946_v12 = vpack.c.bf16 %v2944_v11, %v2944_v11 }
0x1e18   :  { %v5085_v16 = vpop.eup %5084 }
0x1e19   :  { %4837 = vmatmul.mubr.msk.bf16.vlgmr.msra.gmra.mxu1 %vm149_vm2, %v2946_v12  ;;  %v2945_v22 = vmul.f32 %v5085_v16, %v5081_v21  ;;  %v3321_v12 = vsel %vm277_vm3, %v4323_v8, 0 }
0x1e1a   :  { %4847 = vmatpush3.bf16.xpose.msra.mxu1 %v3053_v20  ;;  %4848 = vmatprep.mubr.msk.bf16.mxu1 %vm5141_vm0, %v5140_v1 }
0x1e1b   :  { %v2947_v26 = vpack.c.bf16 %v2945_v22, %v2945_v22  ;;  %4858 = vmatprep.subr.bf16.mxu1 %v5140_v1 }
0x1e1d   :  { %4843 = vmatmul.mubr.msk.bf16.vlgmr.msra.gmra.mxu0 %vm149_vm2, %v2947_v26  ;;  %v4324_v26 = vld [vmem:[%s6082_s3 + $0x84] sm:$0xf] }
0x1e1e   :  { %4853 = vmatpush3.bf16.xpose.msra.mxu0 %v3103_v27  ;;  %4854 = vmatprep.mubr.msk.bf16.mxu0 %vm5141_vm0, %v5140_v1  ;;  %v3274_v27 = vsel %vm277_vm3, %v4324_v26, 0 }
0x1e1f   :  { %4864 = vmatprep.subr.bf16.mxu0 %v5140_v1 }
0x1e21   :  { %4849 = vmatmul.mubr.msk.bf16.vlgmr.msra.gmra.mxu1 %vm149_vm2, %v3046_v29 }
0x1e22   :  { %4860 = vmatprep.mubr.msk.bf16.mxu1 %vm5141_vm0, %v5140_v1 }
0x1e25   :  { %4855 = vmatmul.mubr.msk.bf16.vlgmr.msra.gmra.mxu0 %vm149_vm2, %v3096_v30 }
0x1e26   :  { %4866 = vmatprep.mubr.msk.bf16.mxu0 %vm5141_vm0, %v5140_v1 }
0x1ed9   :  { %v5867_v34 = vpop.f32.mrf.mxu1 }
0x1edb   :  { %v4838_v36 = vpop.f32.mrf.mxu1 }
0x1edd   :  { %v2993_v39 = vpop.f32.mrf.mxu1  ;;  %v5869_v40 = vpop.f32.mrf.mxu0 }
0x1ede   :  { %v3044_v42 = vpack.c.bf16 %v5869_v40, %v5867_v34 }
0x1edf   :  { %v4839_v43 = vpop.f32.mrf.mxu1  ;;  %v4844_v44 = vpop.f32.mrf.mxu0 }
0x1ee1   :  { %v3041_v37 = vpop.f32.mrf.mxu0  ;;  %v3089_v18 = vpop.f32.mrf.mxu1 }
0x1ee2   :  { %v3145_v48 = vmul.f32 0.35355338, %v3089_v18 }
0x1ee3   :  { %v4845_v46 = vpop.f32.mrf.mxu0  ;;  %v4850_v62 = vpop.f32.mrf.mxu1 }
0x1ee4   :  { %v3147_v2 = vadd.f32 %v3145_v48, %v5248_v32 }
0x1ee5   :  { %v3092_v17 = vpop.f32.mrf.mxu1  ;;  %v3139_v50 = vpop.f32.mrf.mxu0 }
0x1ee6   :  { %v3146_v51 = vmul.f32 0.35355338, %v3139_v50  ;;  %v3149_v60 = vsel %vm149_vm2, %v3147_v2, -inf }
0x1ee7   :  { %3150 = vmax.xlane.f32.xlu0 %v3149_v60  ;;  %v4851_v53 = vpop.f32.mrf.mxu1  ;;  %v4856_v55 = vpop.f32.mrf.mxu0 }
0x1ee8   :  { %v3148_v57 = vadd.f32 %v3146_v51, %v5251_v38 }
0x1ee9   :  { %v3142_v58 = vpop.f32.mrf.mxu0 }
0x1eea   :  { %v3152_v59 = vsel %vm149_vm2, %v3148_v57, -inf }
0x1eeb   :  { %3153 = vmax.xlane.f32.xlu1 %v3152_v59  ;;  %v4857_v41 = vpop.f32.mrf.mxu0 }
0x1efc   :  { %3173 = vrot.lane.b32.xlu1 %v5804_v35, %s5145_s30 }
0x1f00   :  { %3366 = vrot.lane.b32.xlu1 %v5804_v35, %s5148_s8 }
0x1f04   :  { %3416 = vrot.lane.b32.xlu1 %v5808_v33, %s5148_s8 }
0x1f08   :  { %3414 = vrot.lane.b32.xlu1 %v5823_v15, %s5148_s8 }
0x1f70   :  { %v3151_v10 = vpop.xlane.xlu0 %3150 }
0x1f71   :  { %v3155_v52 = vsub.f32 %v3147_v2, %v3151_v10 }
0x1f73   :  { %v3157_v54 = vmul.f32 1.442695, %v3155_v52 }
0x1f74   :  { %v3154_v3 = vpop.xlane.xlu1 %3153 }
0x1f75   :  { %5086 = vpow2.f32 %v3157_v54  ;;  %v3156_v4 = vsub.f32 %v3148_v57, %v3154_v3 }
0x1f77   :  { %v3159_v61 = vmul.f32 1.442695, %v3156_v4 }
0x1f78   :  { %v3174_v63 = vpop.permute.xlu1 %3173 }
0x1f79   :  { %5088 = vpow2.f32 %v3159_v61  ;;  %v3179_v0 = vsel %vm277_vm3, %v3174_v63, 0 }
0x1f7a   :  { %4859 = vmatpush3.bf16.msra.mxu1 %v3179_v0 }
0x1f7b   :  { %4870 = vmatprep.subr.bf16.mxu1 %v5140_v1 }
0x1f7c   :  { %v3367_v16 = vpop.permute.xlu1 %3366 }
0x1f7d   :  { %v3372_v43 = vsel %vm149_vm2, %v3367_v16, 0 }
0x1f80   :  { %v3417_v20 = vpop.permute.xlu1 %3416 }
0x1f81   :  { %v3422_v22 = vsel %vm149_vm2, %v3417_v20, 0 }
0x1f82   :  { %v5087_v45 = vpop.eup %5086 }
0x1f83   :  { %v3161_v13 = vsel %vm149_vm2, %v5087_v45, 0.0 }
0x1f84   :  { %3162 = vadd.xlane.f32.xlu0 %v3161_v13  ;;  %v3415_v14 = vpop.permute.xlu1 %3414 }
0x1f86   :  { %v5089_v56 = vpop.eup %5088 }
0x1f87   :  { %v3164_v5 = vsel %vm149_vm2, %v5089_v56, 0.0 }
0x1f88   :  { %3165 = vadd.xlane.f32.xlu0 %v3164_v5 }
0x1f9e   :  { %3221 = vrot.lane.b32.xlu0 %v5808_v33, %s5145_s30 }
0x1fa2   :  { %3364 = vrot.lane.b32.xlu0 %v5817_v19, %s5148_s8 }
0x200d   :  { %v3163_v28 = vpop.xlane.xlu0 %3162 }
0x200e   :  { %5090 = vrcp.f32 %v3163_v28 }
0x2011   :  { %v3166_v47 = vpop.xlane.xlu0 %3165 }
0x2012   :  { %5092 = vrcp.f32 %v3166_v47 }
0x2015   :  { %v3222_v21 = vpop.permute.xlu0 %3221 }
0x2016   :  { %v3227_v31 = vsel %vm277_vm3, %v3222_v21, 0 }
0x2017   :  { %4865 = vmatpush3.bf16.msra.mxu0 %v3227_v31 }
0x2018   :  { %4876 = vmatprep.subr.bf16.mxu0 %v5140_v1 }
0x2019   :  { %v3365_v48 = vpop.permute.xlu0 %3364 }
0x201b   :  { %v5091_v25 = vpop.eup %5090 }
0x201c   :  { %v3169_v49 = vmul.f32 %v5091_v25, %v5087_v45 }
0x201e   :  { %v3171_v6 = vpack.c.bf16 %v3169_v49, %v3169_v49 }
0x201f   :  { %v5093_v7 = vpop.eup %5092 }
0x2020   :  { %4861 = vmatmul.mubr.msk.bf16.vlgmr.msra.gmra.mxu1 %vm149_vm2, %v3171_v6  ;;  %v3170_v9 = vmul.f32 %v5093_v7, %v5089_v56 }
0x2021   :  { %4872 = vmatprep.mubr.msk.bf16.mxu1 %vm5141_vm0, %v5140_v1  ;;  %4871 = vmatpush3.bf16.msra.mxu1 %v3274_v27 }
0x2022   :  { %v3172_v11 = vpack.c.bf16 %v3170_v9, %v3170_v9  ;;  %4882 = vmatprep.subr.bf16.mxu1 %v5140_v1 }
0x2024   :  { %4867 = vmatmul.mubr.msk.bf16.vlgmr.msra.gmra.mxu0 %vm149_vm2, %v3172_v11 }
0x2025   :  { %4877 = vmatpush3.bf16.msra.mxu0 %v3321_v12  ;;  %4878 = vmatprep.mubr.msk.bf16.mxu0 %vm5141_vm0, %v5140_v1 }
0x2026   :  { %4888 = vmatprep.subr.bf16.mxu0 %v5140_v1 }
0x202c   :  { %4879 = vmatmul.mubr.msk.bf16.vlgmr.msra.gmra.mxu0 %vm149_vm2, %v3044_v42 }
0x202d   :  { %4889 = vmatpush3.bf16.xpose.msra.mxu0 %v3422_v22  ;;  %4890 = vmatprep.mubr.msk.bf16.mxu0 %vm5141_vm0, %v5140_v1 }
0x202e   :  { %4900 = vmatprep.subr.bf16.mxu0 %v5140_v1 }
0x2034   :  { %4891 = vmatmul.mubr.msk.bf16.vlgmr.msra.gmra.mxu0 %vm149_vm2, %v3415_v14 }
0x2035   :  { %4902 = vmatprep.mubr.msk.bf16.mxu0 %vm5141_vm0, %v5140_v1 }
0x20e0   :  { %v3215_v29 = vpop.f32.mrf.mxu1 }
0x20e2   :  { %v4862_v30 = vpop.f32.mrf.mxu1 }
0x20e3   :  { %v4325_v30 = vld [vmem:[%s6082_s3 + $0x88] sm:$0xf] }
0x20e4   :  { %v3218_v34 = vpop.f32.mrf.mxu1  ;;  %v3263_v36 = vpop.f32.mrf.mxu0 }
0x20e5   :  { %v3269_v39 = vpack.c.bf16 %v3263_v36, %v3215_v29  ;;  %v3593_v34 = vsel %vm277_vm3, %v4325_v30, 0 }
0x20e6   :  { %v4863_v40 = vpop.f32.mrf.mxu1  ;;  %v4868_v42 = vpop.f32.mrf.mxu0 }
0x20e7   :  { %4873 = vmatmul.mubr.msk.bf16.vlgmr.msra.gmra.mxu1 %vm149_vm2, %v3269_v39 }
0x20e8   :  { %4883 = vmatpush3.bf16.xpose.msra.mxu1 %v3372_v43  ;;  %v3266_v44 = vpop.f32.mrf.mxu0  ;;  %4884 = vmatprep.mubr.msk.bf16.mxu1 %vm5141_vm0, %v5140_v1 }
0x20e9   :  { %4894 = vmatprep.subr.bf16.mxu1 %v5140_v1 }
0x20ea   :  { %v4869_v37 = vpop.f32.mrf.mxu0 }
0x20ec   :  { %v5927_v18 = vpop.f32.mrf.mxu0 }
0x20ee   :  { %v4880_v46 = vpop.f32.mrf.mxu0 }
0x20ef   :  { %4885 = vmatmul.mubr.msk.bf16.vlgmr.msra.gmra.mxu1 %vm149_vm2, %v3365_v48 }
0x20f0   :  { %v5930_v62 = vpop.f32.mrf.mxu0  ;;  %4896 = vmatprep.mubr.msk.bf16.mxu1 %vm5141_vm0, %v5140_v1 }
0x20f2   :  { %v4881_v2 = vpop.f32.mrf.mxu0 }
0x20f4   :  { %v3458_v17 = vpop.f32.mrf.mxu0 }
0x20f5   :  { %v3465_v50 = vmul.f32 0.35355338, %v3458_v17 }
0x20f6   :  { %v4892_v51 = vpop.f32.mrf.mxu0 }
0x20f7   :  { %v3467_v60 = vadd.f32 %v3465_v50, %v5251_v38 }
0x20f8   :  { %v3461_v53 = vpop.f32.mrf.mxu0 }
0x20f9   :  { %v3471_v55 = vsel %vm149_vm2, %v3467_v60, -inf }
0x20fa   :  { %3472 = vmax.xlane.f32.xlu1 %v3471_v55  ;;  %v4893_v57 = vpop.f32.mrf.mxu0 }
0x210b   :  { %3492 = vrot.lane.b32.xlu1 %v5804_v35, %s5149_s9 }
0x210f   :  { %3640 = vrot.lane.b32.xlu1 %v5804_v35, %s5152_s16 }
0x2113   :  { %3690 = vrot.lane.b32.xlu1 %v5808_v33, %s5152_s16 }
0x2117   :  { %3688 = vrot.lane.b32.xlu1 %v5823_v15, %s5152_s16 }
0x2183   :  { %v3473_v58 = vpop.xlane.xlu1 %3472 }
0x2184   :  { %v3475_v10 = vsub.f32 %v3467_v60, %v3473_v58 }
0x2186   :  { %v3478_v52 = vmul.f32 1.442695, %v3475_v10 }
0x2187   :  { %v3493_v59 = vpop.permute.xlu1 %3492 }
0x2188   :  { %v3498_v41 = vsel %vm277_vm3, %v3493_v59, 0  ;;  %5094 = vpow2.f32 %v3478_v52 }
0x2189   :  { %4895 = vmatpush3.bf16.msra.mxu1 %v3498_v41 }
0x218a   :  { %4906 = vmatprep.subr.bf16.mxu1 %v5140_v1 }
0x218b   :  { %v3641_v20 = vpop.permute.xlu1 %3640 }
0x218c   :  { %v3646_v14 = vsel %vm149_vm2, %v3641_v20, 0 }
0x218f   :  { %v3691_v44 = vpop.permute.xlu1 %3690 }
0x2190   :  { %v3696_v60 = vsel %vm149_vm2, %v3691_v44, 0 }
0x2195   :  { %v5095_v5 = vpop.eup %5094 }
0x2196   :  { %v3483_v47 = vsel %vm149_vm2, %v5095_v5, 0.0 }
0x21a7   :  { %v5946_v54 = vpop.f32.mrf.mxu1 }
0x21a9   :  { %v4874_v3 = vpop.f32.mrf.mxu1 }
0x21ab   :  { %v5948_v4 = vpop.f32.mrf.mxu1 }
0x21ad   :  { %v4875_v61 = vpop.f32.mrf.mxu1 }
0x21ae   :  { %v3358_v61 = vadd.f32 %v5927_v18, %v5946_v54 }
0x21af   :  { %v3408_v63 = vpop.f32.mrf.mxu1 }
0x21b0   :  { %v3464_v0 = vmul.f32 0.35355338, %v3408_v63 }
0x21b1   :  { %v4886_v45 = vpop.f32.mrf.mxu1 }
0x21b2   :  { %v3466_v15 = vadd.f32 %v3464_v0, %v5248_v32 }
0x21b3   :  { %v3411_v13 = vpop.f32.mrf.mxu1 }
0x21b4   :  { %v3468_v56 = vsel %vm149_vm2, %v3466_v15, -inf }
0x21b5   :  { %3469 = vmax.xlane.f32.xlu0 %v3468_v56  ;;  %v4887_v28 = vpop.f32.mrf.mxu1 }
0x21b9   :  { %3484 = vadd.xlane.f32.xlu0 %v3483_v47 }
0x223e   :  { %v3470_v21 = vpop.xlane.xlu0 %3469 }
0x223f   :  { %v3474_v31 = vsub.f32 %v3466_v15, %v3470_v21  ;;  %v3361_v15 = vadd.f32 %v5930_v62, %v5948_v4 }
0x2241   :  { %v3476_v25 = vmul.f32 1.442695, %v3474_v31 }
0x2242   :  { %v3485_v7 = vpop.xlane.xlu0 %3484 }
0x2243   :  { %5096 = vpow2.f32 %v3476_v25 }
0x2244   :  { %5098 = vrcp.f32 %v3485_v7 }
0x2250   :  { %v5097_v49 = vpop.eup %5096 }
0x2251   :  { %v3480_v6 = vsel %vm149_vm2, %v5097_v49, 0.0  ;;  %v5099_v8 = vpop.eup %5098 }
0x2252   :  { %3481 = vadd.xlane.f32.xlu0 %v3480_v6  ;;  %v3489_v11 = vmul.f32 %v5099_v8, %v5095_v5 }
0x2254   :  { %v3491_v22 = vpack.c.bf16 %v3489_v11, %v3489_v11 }
0x2268   :  { %3540 = vrot.lane.b32.xlu0 %v5808_v33, %s5149_s9 }
0x226c   :  { %3638 = vrot.lane.b32.xlu0 %v5817_v19, %s5152_s16 }
0x22db   :  { %v3482_v9 = vpop.xlane.xlu0 %3481 }
0x22dc   :  { %5100 = vrcp.f32 %v3482_v9 }
0x22df   :  { %v3541_v12 = vpop.permute.xlu0 %3540 }
0x22e0   :  { %v3546_v16 = vsel %vm277_vm3, %v3541_v12, 0 }
0x22e1   :  { %4901 = vmatpush3.bf16.msra.mxu0 %v3546_v16  ;;  %v4326_v16 = vld [vmem:[%s6082_s3 + $0x8c] sm:$0xf] }
0x22e2   :  { %4912 = vmatprep.subr.bf16.mxu0 %v5140_v1  ;;  %v3867_v20 = vsel %vm277_vm3, %v4326_v16, 0 }
0x22e3   :  { %v3639_v27 = vpop.permute.xlu0 %3638 }
0x22e4   :  { %4903 = vmatmul.mubr.msk.bf16.vlgmr.msra.gmra.mxu0 %vm149_vm2, %v3491_v22 }
0x22e5   :  { %4913 = vmatpush3.bf16.xpose.msra.mxu0 %v3646_v14  ;;  %4914 = vmatprep.mubr.msk.bf16.mxu0 %vm5141_vm0, %v5140_v1 }
0x22e6   :  { %4924 = vmatprep.subr.bf16.mxu0 %v5140_v1 }
0x22e9   :  { %v5101_v19 = vpop.eup %5100 }
0x22ea   :  { %v3488_v26 = vmul.f32 %v5101_v19, %v5097_v49 }
0x22ec   :  { %v3490_v29 = vpack.c.bf16 %v3488_v26, %v3488_v26  ;;  %4915 = vmatmul.mubr.msk.bf16.vlgmr.msra.gmra.mxu0 %vm149_vm2, %v3639_v27 }
0x22ed   :  { %4926 = vmatprep.mubr.msk.bf16.mxu0 %vm5141_vm0, %v5140_v1 }
0x22ee   :  { %4897 = vmatmul.mubr.msk.bf16.vlgmr.msra.gmra.mxu1 %vm149_vm2, %v3490_v29 }
0x22ef   :  { %4908 = vmatprep.mubr.msk.bf16.mxu1 %vm5141_vm0, %v5140_v1  ;;  %4907 = vmatpush3.bf16.msra.mxu1 %v3593_v34 }
0x22f0   :  { %4918 = vmatprep.subr.bf16.mxu1 %v5140_v1 }
0x23a4   :  { %v3582_v36 = vpop.f32.mrf.mxu0 }
0x23a6   :  { %v4904_v39 = vpop.f32.mrf.mxu0 }
0x23a8   :  { %v3585_v40 = vpop.f32.mrf.mxu0 }
0x23aa   :  { %v4905_v42 = vpop.f32.mrf.mxu0 }
0x23ac   :  { %v3682_v43 = vpop.f32.mrf.mxu0 }
0x23ad   :  { %v3738_v37 = vmul.f32 0.35355338, %v3682_v43 }
0x23ae   :  { %v3534_v48 = vpop.f32.mrf.mxu1  ;;  %v4916_v46 = vpop.f32.mrf.mxu0 }
0x23af   :  { %v3740_v2 = vadd.f32 %v3738_v37, %v5248_v32  ;;  %v3588_v17 = vpack.c.bf16 %v3582_v36, %v3534_v48  ;;  %v3689_v32 = vpop.permute.xlu1 %3688  ;;  %v4351_v37 = vld [vmem:[%s6083_s4 + $0xe] ss:$0 sm:$0xff] }
0x23b0   :  { %v4898_v50 = vpop.f32.mrf.mxu1  ;;  %v3685_v51 = vpop.f32.mrf.mxu0 }
0x23b1   :  { %4909 = vmatmul.mubr.msk.bf16.vlgmr.msra.gmra.mxu1 %vm149_vm2, %v3588_v17  ;;  %v3742_v53 = vsel %vm149_vm2, %v3740_v2, -inf }
0x23b2   :  { %4919 = vmatpush3.bf16.xpose.msra.mxu1 %v3696_v60  ;;  %v3537_v55 = vpop.f32.mrf.mxu1  ;;  %3743 = vmax.xlane.f32.xlu0 %v3742_v53  ;;  %v4917_v57 = vpop.f32.mrf.mxu0 }
0x23b3   :  { %4920 = vmatprep.mubr.msk.bf16.mxu1 %vm5141_vm0, %v5140_v1  ;;  %4930 = vmatprep.subr.bf16.mxu1 %v5140_v1 }
0x23b4   :  { %v4899_v58 = vpop.f32.mrf.mxu1 }
0x23b9   :  { %4921 = vmatmul.mubr.msk.bf16.vlgmr.msra.gmra.mxu1 %vm149_vm2, %v3689_v32 }
0x23ba   :  { %4932 = vmatprep.mubr.msk.bf16.mxu1 %vm5141_vm0, %v5140_v1 }
0x243b   :  { %v3744_v59 = vpop.xlane.xlu0 %3743 }
0x243c   :  { %v3748_v41 = vsub.f32 %v3740_v2, %v3744_v59 }
0x243e   :  { %v3750_v10 = vmul.f32 1.442695, %v3748_v41 }
0x2440   :  { %5102 = vpow2.f32 %v3750_v10 }
0x244d   :  { %v5103_v52 = vpop.eup %5102 }
0x244e   :  { %v3754_v3 = vsel %vm149_vm2, %v5103_v52, 0.0 }
0x244f   :  { %3755 = vadd.xlane.f32.xlu0 %v3754_v3 }
0x2471   :  { %v3629_v63 = vpop.f32.mrf.mxu1 }
0x2472   :  { %v3636_v0 = vadd.f32 %v3629_v63, %v3358_v61 }
0x2473   :  { %v4910_v45 = vpop.f32.mrf.mxu1 }
0x2475   :  { %v3632_v13 = vpop.f32.mrf.mxu1 }
0x2476   :  { %v3637_v56 = vadd.f32 %v3632_v13, %v3361_v15  ;;  %v4997_v15 = vld [vmem:[%s6082_s3 + $0x90] sm:$0xff]   ;;  %v4998_v13 = vld [vmem:[%s6082_s3 + $0xa8] sm:$0xff]  }
0x2477   :  { %v4911_v5 = vpop.f32.mrf.mxu1 }
0x2479   :  { %v3732_v28 = vpop.f32.mrf.mxu1 }
0x247a   :  { %v3739_v47 = vmul.f32 0.35355338, %v3732_v28 }
0x247b   :  { %v4922_v21 = vpop.f32.mrf.mxu1 }
0x247c   :  { %v3741_v31 = vadd.f32 %v3739_v47, %v5251_v38 }
0x247d   :  { %v3735_v25 = vpop.f32.mrf.mxu1 }
0x247e   :  { %v3745_v49 = vsel %vm149_vm2, %v3741_v31, -inf }
0x247f   :  { %3746 = vmax.xlane.f32.xlu1 %v3745_v49  ;;  %v4923_v6 = vpop.f32.mrf.mxu1 }
0x2480   :  { %v4352_v6 = vld [vmem:[%s6083_s4 + $0xf] ss:$0 sm:$0xff] }
0x2490   :  { %3766 = vrot.lane.b32.xlu1 %v5804_v35, %s5151_s15 }
0x24d8   :  { %v3756_v18 = vpop.xlane.xlu0 %3755 }
0x24d9   :  { %5104 = vrcp.f32 %v3756_v18 }
0x24e6   :  { %v5105_v54 = vpop.eup %5104 }
0x24e7   :  { %v3762_v7 = vmul.f32 %v5105_v54, %v5103_v52 }
0x24e9   :  { %v3764_v38 = vpack.c.bf16 %v3762_v7, %v3762_v7 }
0x2508   :  { %v3747_v62 = vpop.xlane.xlu1 %3746 }
0x2509   :  { %v3749_v4 = vsub.f32 %v3741_v31, %v3747_v62 }
0x250b   :  { %v3752_v8 = vmul.f32 1.442695, %v3749_v4  ;;  %v4353_v4 = vld [vmem:[%s6083_s4 + $0x10] ss:$0 sm:$0xff] }
0x250c   :  { %v3767_v9 = vpop.permute.xlu1 %3766 }
0x250d   :  { %5106 = vpow2.f32 %v3752_v8  ;;  %v3772_v11 = vsel %vm277_vm3, %v3767_v9, 0 }
0x250e   :  { %4925 = vmatpush3.bf16.msra.mxu0 %v3772_v11 }
0x250f   :  { %4936 = vmatprep.subr.bf16.mxu0 %v5140_v1 }
0x2511   :  { %4927 = vmatmul.mubr.msk.bf16.vlgmr.msra.gmra.mxu0 %vm149_vm2, %v3764_v38  ;;  %v4999_v38 = vld [vmem:[%s6082_s3 + $0xa0] sm:$0xff]  }
0x2512   :  { %4938 = vmatprep.mubr.msk.bf16.mxu0 %vm5141_vm0, %v5140_v1  ;;  %4937 = vmatpush3.bf16.msra.mxu0 %v3867_v20 }
0x2513   :  { %4950 = vmatprep.subr.bf16.mxu0 %v5140_v1 }
0x251a   :  { %v5107_v35 = vpop.eup %5106 }
0x251b   :  { %v3757_v12 = vsel %vm149_vm2, %v5107_v35, 0.0 }
0x251c   :  { %3758 = vadd.xlane.f32.xlu0 %v3757_v12 }
0x2532   :  { %3814 = vrot.lane.b32.xlu0 %v5808_v33, %s5151_s15  ;;  %s4209_s15 = sshll.u32 %s5155_s23, 4  ;;  %s4210_s15 = int_to_ptr.vmem [resolvable:$true] %s4209_s15 }
0x2533   :  { %s5118_s24 = scalar_lea.vmem %s4210_s15, 256  ;;  %p5123_p1 = scmp.lt.s32.totalorder %s4210_s15, %s4210_s15 }
0x2534   :  { %p5119_p0 = scmp.ne.s32.totalorder %s4210_s15, %s5118_s24  ;;  %p5124_p2 = scmp.lt.s32.totalorder %s5118_s24, %s5118_s24 }
0x2536   :  { %p5125_p3 = por %p5124_p2, %p5123_p1 }
0x2538   :  { %p5126_p4 = pnand %p5125_p3, %p5119_p0 }
0x25a5   :  { %v3759_v22 = vpop.xlane.xlu0 %3758 }
0x25a6   :  { %5108 = vrcp.f32 %v3759_v22 }
0x25a9   :  { %v3815_v14 = vpop.permute.xlu0 %3814 }
0x25aa   :  { %v3820_v19 = vsel %vm277_vm3, %v3815_v14, 0 }
0x25ab   :  { %4931 = vmatpush3.bf16.msra.mxu1 %v3820_v19 }
0x25ac   :  { %4942 = vmatprep.subr.bf16.mxu1 %v5140_v1 }
0x25b3   :  { %v5109_v26 = vpop.eup %5108 }
0x25b4   :  { %v3763_v27 = vmul.f32 %v5109_v26, %v5107_v35  ;;  %v4362_v35 = vld [vmem:[%s6083_s4 + $0x11] ss:$0 sm:$0xff] }
0x25b6   :  { %v3765_v33 = vpack.c.bf16 %v3763_v27, %v3763_v27 }
0x25b8   :  { %4933 = vmatmul.mubr.msk.bf16.vlgmr.msra.gmra.mxu1 %vm149_vm2, %v3765_v33 }
0x25b9   :  { %4946 = vmatprep.mubr.msk.bf16.mxu1 %vm5141_vm0, %v5140_v1 }
0x25d1   :  { %v3808_v29 = vpop.f32.mrf.mxu0 }
0x25d3   :  { %v4928_v30 = vpop.f32.mrf.mxu0 }
0x25d5   :  { %v3811_v34 = vpop.f32.mrf.mxu0 }
0x25d7   :  { %v4929_v36 = vpop.f32.mrf.mxu0 }
0x2678   :  { %v3856_v39 = vpop.f32.mrf.mxu1 }
0x2679   :  { %v3862_v40 = vpack.c.bf16 %v3856_v39, %v3808_v29  ;;  %v4366_v29 = vld [vmem:[%s6083_s4 + $0x12] ss:$0 sm:$0xff] }
0x267a   :  { %v4934_v42 = vpop.f32.mrf.mxu1 }
0x267b   :  { %4939 = vmatmul.mubr.msk.bf16.vlgmr.msra.gmra.mxu0 %vm149_vm2, %v3862_v40 }
0x267c   :  { %v3859_v43 = vpop.f32.mrf.mxu1  ;;  %4954 = vmatprep.mubr.msk.bf16.mxu0 %vm5141_vm0, %v5140_v1  ;;  %4951 = vmatpush3.bf16.xpose.msra.mxu0 %v4998_v13  ;;  %v4370_v13 = vld [vmem:[%s6083_s4 + $0x14] ss:$0 sm:$0xff] }
0x267d   :  { %4952 = vmatprep.subr.bf16.mxu0 %v5140_v1 }
0x267e   :  { %v4935_v44 = vpop.f32.mrf.mxu1 }
0x2684   :  { %4953 = vmatpush3.bf16.xpose.msra.mxu0 %v4999_v38 }
0x273b   :  { %v3903_v48 = vpop.f32.mrf.mxu0 }
0x273c   :  { %v3910_v46 = vadd.f32 %v3903_v48, %v3636_v0 }
0x273d   :  { %v4940_v2 = vpop.f32.mrf.mxu0 }
0x273e   :  { %v3916_v17 = vadd.f32 %v4351_v37, %v3910_v46 }
0x273f   :  { %v3906_v50 = vpop.f32.mrf.mxu0 }
0x2740   :  { %v3911_v51 = vadd.f32 %v3906_v50, %v3637_v56  ;;  %v3918_v60 = vadd.f32 %v3916_v17, %v5792_v23 }
0x2741   :  { %v4941_v53 = vpop.f32.mrf.mxu0 }
0x2742   :  { %v3917_v55 = vadd.f32 %v4351_v37, %v3911_v51  ;;  %v3922_v57 = vsel %vm90_vm1, %v3918_v60, 0.0 }
0x2743   :  { %3923 = vadd.xlane.f32.xlu1 %v3922_v57 }
0x2744   :  { %v3919_v58 = vadd.f32 %v3917_v55, %v5794_v24  ;;  %v4996_v24 = vld [vmem:[%s6082_s3 + $0x98] sm:$0xff]  }
0x2745   :  { %4943 = vmatpush3.bf16.msra.mxu1 %v4996_v24 }
0x2746   :  { %v3925_v32 = vsel %vm90_vm1, %v3919_v58, 0.0  ;;  %4944 = vmatprep.subr.bf16.mxu1 %v5140_v1 }
0x2747   :  { %3926 = vadd.xlane.f32.xlu0 %v3925_v32  ;;  %v5000_v32 = vld [vmem:[%s6082_s3 + $0xb8] sm:$0xff]  }
0x2749   :  { %4945 = vmatpush3.bf16.msra.mxu1 %v4997_v15 }
0x274a   :  { %4958 = vmatprep.subr.bf16.mxu1 %v5140_v1 }
0x27cc   :  { %v3924_v59 = vpop.xlane.xlu1 %3923 }
0x27cd   :  { %v3928_v41 = vmul.f32 0.03125, %v3924_v59  ;;  %v5001_v59 = vld [vmem:[%s6082_s3 + $0xb0] sm:$0xff]  }
0x27cf   :  { %v3930_v10 = vsub.f32 %v3918_v60, %v3928_v41 }
0x27d0   :  { %v3927_v52 = vpop.xlane.xlu0 %3926 }
0x27d1   :  { %v3929_v3 = vmul.f32 0.03125, %v3927_v52  ;;  %v3932_v61 = vmul.f32 %v3930_v10, %v3930_v10 }
0x27d3   :  { %v3931_v63 = vsub.f32 %v3919_v58, %v3929_v3  ;;  %v3934_v0 = vsel %vm90_vm1, %v3932_v61, 0.0 }
0x27d4   :  { %3935 = vadd.xlane.f32.xlu1 %v3934_v0 }
0x27d5   :  { %v3933_v23 = vmul.f32 %v3931_v63, %v3931_v63 }
0x27d7   :  { %v3937_v45 = vsel %vm90_vm1, %v3933_v23, 0.0 }
0x27d8   :  { %3938 = vadd.xlane.f32.xlu0 %v3937_v45  ;;  %v4369_v45 = vld [vmem:[%s6083_s4 + $0x13] ss:$0 sm:$0xff] }
0x285d   :  { %v3936_v56 = vpop.xlane.xlu1 %3935 }
0x285e   :  { %v3940_v5 = vmul.f32 0.03125, %v3936_v56 }
0x2860   :  { %v3942_v28 = vadd.f32 1e-05, %v3940_v5 }
0x2861   :  { %v3939_v47 = vpop.xlane.xlu0 %3938 }
0x2862   :  { %5110 = vrsqrt.f32 %v3942_v28  ;;  %v3941_v21 = vmul.f32 0.03125, %v3939_v47 }
0x2864   :  { %v3943_v31 = vadd.f32 1e-05, %v3941_v21  ;;  %v4375_v21 = vld [vmem:[%s6083_s4 + $0x15] ss:$0 sm:$0xff] }
0x2866   :  { %5112 = vrsqrt.f32 %v3943_v31 }
0x286f   :  { %v5111_v25 = vpop.eup %5110 }
0x2870   :  { %v3946_v49 = vmul.f32 %v5111_v25, %v3930_v10 }
0x2872   :  { %v3952_v54 = vmul.f32 %v4352_v6, %v3946_v49 }
0x2873   :  { %v5113_v18 = vpop.eup %5112 }
0x2874   :  { %v3947_v62 = vmul.f32 %v5113_v18, %v3931_v63  ;;  %v3958_v8 = vadd.f32 %v4353_v4, %v3952_v54 }
0x2876   :  { %v3953_v7 = vmul.f32 %v4352_v6, %v3947_v62 }
0x2878   :  { %v3959_v9 = vadd.f32 %v4353_v4, %v3953_v7 }
0x287a   :  { %v3972_v11 = vpack.c.bf16 %v3959_v9, %v3958_v8 }
0x287c   :  { %4947 = vmatmul.mubr.msk.bf16.vlgmr.msra.gmra.mxu1 %vm90_vm1, %v3972_v11 }
0x287d   :  { %4962 = vmatprep.mubr.msk.bf16.mxu1 %vm5141_vm0, %v5140_v1  ;;  %4959 = vmatpush3.bf16.msra.mxu1 %v5000_v32 }
0x287e   :  { %4960 = vmatprep.subr.bf16.mxu1 %v5140_v1 }
0x2881   :  { %4961 = vmatpush3.bf16.msra.mxu1 %v5001_v59 }
0x293c   :  { %v4026_v12 = vpop.f32.mrf.mxu1 }
0x293d   :  { %v4027_v20 = vadd.f32 %v4362_v35, %v4026_v12 }
0x293e   :  { %v4948_v16 = vpop.f32.mrf.mxu1 }
0x293f   :  { %v4033_v26 = vmax.f32 %v4027_v20, 0.0 }
0x2940   :  { %v4029_v22 = vpop.f32.mrf.mxu1 }
0x2941   :  { %v4030_v14 = vadd.f32 %v4362_v35, %v4029_v22 }
0x2942   :  { %v4949_v19 = vpop.f32.mrf.mxu1 }
0x2943   :  { %v4034_v27 = vmax.f32 %v4030_v14, 0.0 }
0x2945   :  { %v4035_v33 = vpack.c.bf16 %v4034_v27, %v4033_v26 }
0x2947   :  { %4955 = vmatmul.mubr.bf16.vlgmr.msra.gmra.mxu0 %v4035_v33 }
0x2a07   :  { %v4086_v30 = vpop.f32.mrf.mxu0 }
0x2a08   :  { %v4087_v34 = vadd.f32 %v4366_v29, %v4086_v30 }
0x2a09   :  { %v4956_v36 = vpop.f32.mrf.mxu0 }
0x2a0a   :  { %v4093_v39 = vadd.f32 %v4087_v34, %v3958_v8 }
0x2a0b   :  { %v4089_v40 = vpop.f32.mrf.mxu0 }
0x2a0c   :  { %v4090_v42 = vadd.f32 %v4366_v29, %v4089_v40  ;;  %v4097_v43 = vsel %vm90_vm1, %v4093_v39, 0.0 }
0x2a0d   :  { %4098 = vadd.xlane.f32.xlu1 %v4097_v43  ;;  %v4957_v44 = vpop.f32.mrf.mxu0 }
0x2a0e   :  { %v4094_v37 = vadd.f32 %v4090_v42, %v3959_v9 }
0x2a10   :  { %v4100_v48 = vsel %vm90_vm1, %v4094_v37, 0.0 }
0x2a11   :  { %4101 = vadd.xlane.f32.xlu0 %v4100_v48 }
0x2a96   :  { %v4099_v46 = vpop.xlane.xlu1 %4098 }
0x2a97   :  { %v4103_v2 = vmul.f32 0.03125, %v4099_v46 }
0x2a99   :  { %v4105_v17 = vsub.f32 %v4093_v39, %v4103_v2 }
0x2a9a   :  { %v4102_v50 = vpop.xlane.xlu0 %4101 }
0x2a9b   :  { %v4104_v51 = vmul.f32 0.03125, %v4102_v50  ;;  %v4107_v60 = vmul.f32 %v4105_v17, %v4105_v17 }
0x2a9d   :  { %v4106_v53 = vsub.f32 %v4094_v37, %v4104_v51  ;;  %v4109_v55 = vsel %vm90_vm1, %v4107_v60, 0.0 }
0x2a9e   :  { %4110 = vadd.xlane.f32.xlu1 %v4109_v55 }
0x2a9f   :  { %v4108_v57 = vmul.f32 %v4106_v53, %v4106_v53 }
0x2aa1   :  { %v4112_v58 = vsel %vm90_vm1, %v4108_v57, 0.0 }
0x2aa2   :  { %4113 = vadd.xlane.f32.xlu0 %v4112_v58 }
0x2b27   :  { %v4111_v41 = vpop.xlane.xlu1 %4110 }
0x2b28   :  { %v4115_v10 = vmul.f32 0.03125, %v4111_v41 }
0x2b2a   :  { %v4117_v52 = vadd.f32 1e-05, %v4115_v10 }
0x2b2b   :  { %v4114_v3 = vpop.xlane.xlu0 %4113 }
0x2b2c   :  { %5114 = vrsqrt.f32 %v4117_v52  ;;  %v4116_v61 = vmul.f32 0.03125, %v4114_v3 }
0x2b2e   :  { %v4118_v63 = vadd.f32 1e-05, %v4116_v61 }
0x2b30   :  { %5116 = vrsqrt.f32 %v4118_v63 }
0x2b39   :  { %v5115_v0 = vpop.eup %5114 }
0x2b3a   :  { %v4121_v23 = vmul.f32 %v5115_v0, %v4105_v17 }
0x2b3c   :  { %v4127_v24 = vmul.f32 %v4369_v45, %v4121_v23 }
0x2b3d   :  { %v5117_v1 = vpop.eup %5116 }
0x2b3e   :  { %v4122_v15 = vmul.f32 %v5117_v1, %v4106_v53  ;;  %v4133_v5 = vadd.f32 %v4370_v13, %v4127_v24 }
0x2b40   :  { %v4128_v56 = vmul.f32 %v4369_v45, %v4122_v15 }
0x2b42   :  { %v4134_v28 = vadd.f32 %v4370_v13, %v4128_v56 }
0x2b44   :  { %v4135_v47 = vpack.c.bf16 %v4134_v28, %v4133_v5 }
0x2b46   :  { %4963 = vmatmul.mubr.msk.bf16.vlgmr.msra.gmra.mxu1 %vm90_vm1, %v4135_v47 }
0x2c06   :  { %v4195_v31 = vpop.f32.mrf.mxu1 }
0x2c07   :  { %v4196_v25 = vadd.f32 %v4375_v21, %v4195_v31 }
0x2c08   :  { %v4964_v49 = vpop.f32.mrf.mxu1 }
0x2c09   :  { %4202 = vst [vmem:[#allocation2] sm:$0xff] %v4196_v25 }
0x2c0a   :  { %v4198_v6 = vpop.f32.mrf.mxu1 }
0x2c0b   :  { %v4199_v18 = vadd.f32 %v4375_v21, %v4198_v6 }
0x2c0c   :  { %v4965_v54 = vpop.f32.mrf.mxu1 }
0x2c0d   :  { %4203 = vst [vmem:[#allocation2 + $0x8] sm:$0xff] %v4199_v18 }
0x2c0e   :  { %5129 = shalt.err (!%p5126_p4)
}
0x2c0f   :  { %s5156_s25 = smov 128   ;;  %s5157_s4 = smov 8  }
0x2c10   :  { %4215 = dma.vmem_to_hbm [thread:$0]  %s4210_s15, 256, %s6084_s5, [#allocation3], %s5156_s25, %s5156_s25, %s5157_s4  }
0x2c11   :  { %5138 = dma.done.wait [#allocation3], 256  }
0x2c12   :  { %5139 = vsyncadd [#allocation3], 4294967040 }
0x2c13   :  { %4219 = vsyncpa [#allocation3], 1 }

</bundles_post_ra>
